<compile_context>
chip_gen: v7x
topology: tpu7x:2x2x1
jax: 0.10.0
libtpu: 0.0.40
codegen_flags: <defaults>
</compile_context>

<pallas_src>
import functools

import jax
import jax.numpy as jnp
from jax.experimental import pallas as pl
from jax.experimental.pallas import tpu as pltpu


RESNET_FEATS = 2048   # resnet50 fc.in_features
VIT_FEATS = 768       # vit_b_16 heads.head.in_features
CONV_OUT = 64         # resnet50 conv1 output channels
LANE = 128
_VMEM_LIMIT = 32 * 1024 * 1024   # explicit scoped-VMEM budget; safe on v5e/v6e/v7x


def _round_up(n, m):
    return ((n + m - 1) // m) * m


# ----------------------------------------------------------------------------- kernels
def _conv_gap_kernel(x_ref, w_ref, b_ref, o_ref, *, ho, wo, row_chunk):
    """Fused conv7x7/s2 (+bias+ReLU) + global average pool for ONE image.

    x_ref:  [Hp2, Wp2, 16]  bf16 space-to-depth padded image (channels 3 -> 4 zero-padded)
    w_ref:  [256, 128]      bf16 conv weight in (di, dj, pi, pj, ch) x out layout, out padded
    b_ref:  [1, 128]        f32 bias (zero-padded lanes 64..127)
    o_ref:  [1, 128]        f32 pooled conv features for this image
    """
    w = w_ref[...]                       # hoisted: resident across the row-chunk loop
    b = b_ref[...]
    kdim, nout = w.shape
    acc = jnp.zeros((1, nout), jnp.float32)
    for oh0 in range(0, ho, row_chunk):
        th = min(row_chunk, ho - oh0)
        # row band covering output rows [oh0, oh0+th): needs s2d rows [oh0, oh0+th+3)
        band = x_ref[oh0:oh0 + th + 3, :, :].astype(jnp.float32)      # [th+3, Wp2, 16]
        taps = []
        for di in range(4):
            for dj in range(4):
                taps.append(band[di:di + th, dj:dj + wo, :])          # [th, wo, 16]
        patch = jnp.concatenate(taps, axis=-1)                        # [th, wo, 256]
        patch = patch.reshape(th * wo, kdim).astype(jnp.bfloat16)     # lane-dense MXU operand
        conv = jnp.dot(patch, w, preferred_element_type=jnp.float32)
        conv = jnp.maximum(conv + b, 0.0)                             # bias + ReLU in f32
        acc = acc + jnp.sum(conv, axis=0, keepdims=True)
    o_ref[...] = (acc * (1.0 / (ho * wo))).astype(o_ref.dtype)


def _vit_reduce_head_kernel(pr_ref, patch_ref, wr_ref, br_ref, wv_ref, bv_ref,
                            cwr_ref, cwv_ref, cb_ref, o_ref, acc_ref, *, inv_n):
    """Tiled patch mean-pool (reduction grid axis) fused with the whole ensemble head."""
    s = pl.program_id(0)

    @pl.when(s == 0)
    def _():
        acc_ref[...] = jnp.zeros_like(acc_ref)

    # accumulate the patch sum for this tile of the patch axis
    acc_ref[...] += jnp.sum(patch_ref[...].astype(jnp.float32), axis=1)

    @pl.when(s == pl.num_programs(0) - 1)
    def _():
        # ResNet branch: pooled conv features [B,128] -> 2048-wide feature
        r = jnp.dot(pr_ref[...].astype(jnp.bfloat16), wr_ref[...],
                    preferred_element_type=jnp.float32) + br_ref[...]
        # ViT branch: mean over patches then linear patch embedding
        # (pool-then-project == project-then-pool for the linear stand-in)
        v = jnp.dot((acc_ref[...] * inv_n).astype(jnp.bfloat16), wv_ref[...],
                    preferred_element_type=jnp.float32) + bv_ref[...]
        # classifier on concat((r, v), dim=1): weight stored transposed and row-split
        out = jnp.dot(r.astype(jnp.bfloat16), cwr_ref[...], preferred_element_type=jnp.float32)
        out = out + jnp.dot(v.astype(jnp.bfloat16), cwv_ref[...],
                            preferred_element_type=jnp.float32)
        o_ref[...] = (out + cb_ref[...]).astype(o_ref.dtype)


# ----------------------------------------------------------------------------- wrappers
def conv_gap(s2d, w, b, *, ho, wo):
    B, hp2, wp2, c4 = s2d.shape
    kdim, nout = w.shape
    row_chunk = min(ho, 16)
    flops = 2 * B * ho * wo * kdim * nout
    bytes_accessed = (s2d.size * s2d.dtype.itemsize + w.size * 2 + b.size * 4 + B * nout * 4)
    out = pl.pallas_call(
        functools.partial(_conv_gap_kernel, ho=ho, wo=wo, row_chunk=row_chunk),
        out_shape=jax.ShapeDtypeStruct((B, 1, nout), jnp.float32),
        grid=(B,),
        in_specs=[
            pl.BlockSpec((None, hp2, wp2, c4), lambda i: (i, 0, 0, 0)),  # one image / step
            pl.BlockSpec((kdim, nout), lambda i: (0, 0)),                # resident weight
            pl.BlockSpec((1, nout), lambda i: (0, 0)),                   # resident bias
        ],
        out_specs=pl.BlockSpec((None, 1, nout), lambda i: (i, 0, 0)),
        compiler_params=pltpu.CompilerParams(
            dimension_semantics=("parallel",),          # megacore: split images across TCs
            vmem_limit_bytes=_VMEM_LIMIT),
        cost_estimate=pl.CostEstimate(flops=flops, transcendentals=0,
                                      bytes_accessed=bytes_accessed),
    )(s2d, w, b)
    return out[:, 0, :]                                                   # [B, 128] f32


def vit_reduce_head(pooled_conv, patches, kp):
    """Fused: tiled mean over the patch axis + vit proj + resnet proj + concat classifier."""
    B, S, D = patches.shape
    nconv = pooled_conv.shape[1]
    ncls = kp["cls_b"].shape[1]

    # tile over the patch axis; cap so the double-buffered patch slab stays <= ~4 MiB
    ts = min(512, _round_up(S, 8))
    max_ts = max(8, ((4 << 20) // (B * D * patches.dtype.itemsize)) // 8 * 8)
    ts = min(ts, max_ts)
    s_pad = _round_up(S, ts)
    if s_pad != S:
        patches = jnp.pad(patches, ((0, 0), (0, s_pad - S), (0, 0)))   # zeros keep the sum

    flops = (B * s_pad * D
             + 2 * B * (nconv * RESNET_FEATS + D * D + RESNET_FEATS * ncls + D * ncls))
    bytes_accessed = (patches.size * patches.dtype.itemsize
                      + pooled_conv.size * 4
                      + (kp["proj_r_w"].size + kp["vit_w"].size
                         + kp["cls_wr"].size + kp["cls_wv"].size) * 2
                      + (kp["proj_r_b"].size + kp["vit_b"].size + kp["cls_b"].size) * 4
                      + B * ncls * 4)

    return pl.pallas_call(
        functools.partial(_vit_reduce_head_kernel, inv_n=1.0 / S),
        out_shape=jax.ShapeDtypeStruct((B, ncls), jnp.float32),
        grid=(s_pad // ts,),
        in_specs=[
            pl.BlockSpec((B, nconv), lambda s: (0, 0)),                 # pooled conv feats
            pl.BlockSpec((B, ts, D), lambda s: (0, s, 0)),              # patch tile (reduction)
            pl.BlockSpec((nconv, RESNET_FEATS), lambda s: (0, 0)),      # resnet proj W
            pl.BlockSpec((1, RESNET_FEATS), lambda s: (0, 0)),          # resnet proj b
            pl.BlockSpec((D, D), lambda s: (0, 0)),                     # vit patch-embed W
            pl.BlockSpec((1, D), lambda s: (0, 0)),                     # vit patch-embed b
            pl.BlockSpec((RESNET_FEATS, ncls), lambda s: (0, 0)),       # classifier W (resnet rows)
            pl.BlockSpec((D, ncls), lambda s: (0, 0)),                  # classifier W (vit rows)
            pl.BlockSpec((1, ncls), lambda s: (0, 0)),                  # classifier b
        ],
        out_specs=pl.BlockSpec((B, ncls), lambda s: (0, 0)),
        scratch_shapes=[pltpu.VMEM((B, D), jnp.float32)],               # patch-sum accumulator
        compiler_params=pltpu.CompilerParams(
            dimension_semantics=("arbitrary",),          # reduction axis
            vmem_limit_bytes=_VMEM_LIMIT),
        cost_estimate=pl.CostEstimate(flops=flops, transcendentals=0,
                                      bytes_accessed=bytes_accessed),
    )(pooled_conv, patches,
      kp["proj_r_w"], kp["proj_r_b"], kp["vit_w"], kp["vit_b"],
      kp["cls_wr"], kp["cls_wv"], kp["cls_b"])


# ----------------------------------------------------------------------------- params
def init_params(key, class_num):
    ks = jax.random.split(key, 5)
    s = 0.02
    return {
        # simplified ResNet50 conv stem: 7x7 / stride 2 / pad 3, 3 -> 64 channels
        "conv_w": jax.random.normal(ks[0], (7, 7, 3, CONV_OUT), jnp.float32) * s,
        "conv_b": jnp.zeros((CONV_OUT,), jnp.float32),
        # projection to the resnet feature width (2048)
        "resnet_proj_w": jax.random.normal(ks[1], (CONV_OUT, RESNET_FEATS), jnp.float32) * s,
        "resnet_proj_b": jnp.zeros((RESNET_FEATS,), jnp.float32),
        # ViT-B/16 linear patch embedding, 16*16*3 = 768 -> 768
        "vit_patch_w": jax.random.normal(ks[2], (VIT_FEATS, VIT_FEATS), jnp.float32) * s,
        "vit_patch_b": jnp.zeros((VIT_FEATS,), jnp.float32),
        # classifier: nn.Linear(2048 + 768, class_num); stored transposed and row-split
        "cls_wr": jax.random.normal(ks[3], (RESNET_FEATS, class_num), jnp.float32) * s,
        "cls_wv": jax.random.normal(ks[4], (VIT_FEATS, class_num), jnp.float32) * s,
        "cls_b": jnp.zeros((class_num,), jnp.float32),
    }


def prepare_params(p, class_num):
    """One-time (outside the hot path) layout prep: bf16 cast, lane padding, conv-weight
    rearrangement into the space-to-depth (di, dj, pi, pj, ch) order used by the kernel."""
    c_pad = 4                                             # conv input channels padded 3 -> 4
    nconv = _round_up(CONV_OUT, LANE)                     # 64  -> 128 (lane-dense conv output)
    ncls = _round_up(class_num, LANE)                     # 10  -> 128 (lane-dense logits)

    # 7x7 taps zero-padded to 8x8, folded into a 4x4 conv over the space-to-depth input.
    w8 = jnp.zeros((8, 8, c_pad, CONV_OUT), jnp.float32).at[:7, :7, :3, :].set(p["conv_w"])
    w4 = w8.reshape(4, 2, 4, 2, c_pad, CONV_OUT).transpose(0, 2, 1, 3, 4, 5)  # (di,dj,pi,pj,ch,o)
    wconv = w4.reshape(4 * 4 * 2 * 2 * c_pad, CONV_OUT)                       # [256, 64]
    wconv = jnp.pad(wconv, ((0, 0), (0, nconv - CONV_OUT)))

    return {
        "conv_w": wconv.astype(jnp.bfloat16),                                           # [256, 128]
        "conv_b": jnp.pad(p["conv_b"], (0, nconv - CONV_OUT)).reshape(1, nconv),        # f32
        "proj_r_w": jnp.pad(p["resnet_proj_w"],
                            ((0, nconv - CONV_OUT), (0, 0))).astype(jnp.bfloat16),      # [128, 2048]
        "proj_r_b": p["resnet_proj_b"].reshape(1, RESNET_FEATS),                        # f32
        "vit_w": p["vit_patch_w"].astype(jnp.bfloat16),                                 # [768, 768]
        "vit_b": p["vit_patch_b"].reshape(1, VIT_FEATS),                                # f32
        "cls_wr": jnp.pad(p["cls_wr"], ((0, 0), (0, ncls - class_num))).astype(jnp.bfloat16),
        "cls_wv": jnp.pad(p["cls_wv"], ((0, 0), (0, ncls - class_num))).astype(jnp.bfloat16),
        "cls_b": jnp.pad(p["cls_b"], (0, ncls - class_num)).reshape(1, ncls),           # f32
    }


# ----------------------------------------------------------------------------- model
def ensemble_forward(x_nchw, kp, class_num):
    # layout: PyTorch NCHW -> NHWC so contraction dims land on TPU lanes; bf16 activations.
    x = jnp.transpose(x_nchw, (0, 2, 3, 1)).astype(jnp.bfloat16)
    B, H, W, C = x.shape
    assert H % 16 == 0 and W % 16 == 0, "stand-in backbones need H, W divisible by 16"

    # --- "ResNet" branch: 7x7/s2/p3 conv stem + bias + ReLU + global average pool, fused.
    # Space-to-depth (factor 2) is a pure permutation of the padded input (no HBM blowup); it
    # turns the stride-2 conv into a stride-1 4x4 conv whose im2col happens in VMEM.
    xp = jnp.pad(x, ((0, 0), (3, 3), (3, 3), (0, 1)))                 # spatial pad 3, C 3->4
    hp2, wp2 = (H + 6) // 2, (W + 6) // 2
    s2d = xp.reshape(B, hp2, 2, wp2, 2, 4).transpose(0, 1, 3, 2, 4, 5).reshape(B, hp2, wp2, 16)
    pooled_conv = conv_gap(s2d, kp["conv_w"], kp["conv_b"], ho=H // 2, wo=W // 2)   # [B, 128]

    # --- "ViT" branch patchify (pure layout, no blowup): [B, Np, 768] bf16.
    P = 16
    patches = x.reshape(B, H // P, P, W // P, P, C).transpose(0, 1, 3, 2, 4, 5)
    patches = patches.reshape(B, (H // P) * (W // P), P * P * C)

    # --- fused: tiled patch mean-pool + vit proj + resnet proj (->2048) + concat classifier.
    logits = vit_reduce_head(pooled_conv, patches, kp)                 # [B, 128] (padded)
    return logits[:, :class_num]


# ----------------------------------------------------------------------------- main
if __name__ == "__main__":
    CLASS_NUM = 10
    key = jax.random.PRNGKey(0)
    k_x, k_p = jax.random.split(key)

    # small, shape-consistent input: batch=2, 3 channels, 32x32 (divisible by patch size 16)
    x = jax.random.normal(k_x, (2, 3, 32, 32), dtype=jnp.float32)
    params = init_params(k_p, CLASS_NUM)
    kparams = prepare_params(params, CLASS_NUM)   # one-time layout / bf16 prep, outside jit

    fwd = jax.jit(ensemble_forward, static_argnames=("class_num",))
    out = fwd(x, kparams, class_num=CLASS_NUM)
    jax.block_until_ready(out)

    assert out.shape == (2, CLASS_NUM), out.shape
    assert jnp.all(jnp.isfinite(out))
    print("KERNEL_OK")
</pallas_src>

<mosaic_0001>
module attributes {stable_mosaic.version = 11 : i64} {
  func.func @_conv_gap_kernel(%arg0: i32, %arg1: memref<1x19x19x16xbf16, #tpu.memory_space<vmem>>, %arg2: memref<256x128xbf16, #tpu.memory_space<vmem>>, %arg3: memref<1x128xf32, #tpu.memory_space<vmem>>, %arg4: memref<1x1x128xf32, #tpu.memory_space<vmem>>) attributes {dimension_semantics = [#tpu.dimension_semantics<parallel>], iteration_bounds = array<i64: 2>, scalar_prefetch = 0 : i64, scratch_operands = 0 : i64, tpu.core_type = #tpu.core_type<tc>, window_params = [{transform_indices = @transform_0, window_bounds = array<i64: 1, 19, 19, 16>}, {pipeline_mode = #tpu.pipeline_mode<synchronous>, transform_indices = @transform_1, window_bounds = array<i64: 256, 128>}, {pipeline_mode = #tpu.pipeline_mode<synchronous>, transform_indices = @transform_2, window_bounds = array<i64: 1, 128>}, {transform_indices = @transform_3, window_bounds = array<i64: 1, 1, 128>}]} {
    %c0 = arith.constant 0 : index
    %c0_0 = arith.constant 0 : index
    %0 = vector.load %arg2[%c0, %c0_0] : memref<256x128xbf16, #tpu.memory_space<vmem>>, vector<256x128xbf16>
    %c0_1 = arith.constant 0 : index
    %c0_2 = arith.constant 0 : index
    %1 = vector.load %arg3[%c0_1, %c0_2] : memref<1x128xf32, #tpu.memory_space<vmem>>, vector<1x128xf32>
    %cst = arith.constant 0.000000e+00 : f32
    %2 = vector.broadcast %cst : f32 to vector<1x128xf32>
    %c0_3 = arith.constant 0 : index
    %c0_4 = arith.constant 0 : index
    %c0_5 = arith.constant 0 : index
    %c0_6 = arith.constant 0 : index
    %3 = vector.load %arg1[%c0_3, %c0_4, %c0_5, %c0_6] : memref<1x19x19x16xbf16, #tpu.memory_space<vmem>>, vector<1x19x19x16xbf16>
    %4 = vector.shape_cast %3 : vector<1x19x19x16xbf16> to vector<19x19x16xbf16>
    %5 = arith.extf %4 : vector<19x19x16xbf16> to vector<19x19x16xf32>
    %6 = vector.extract_strided_slice %5 {offsets = [0, 0, 0], sizes = [16, 16, 16], strides = [1, 1, 1]} : vector<19x19x16xf32> to vector<16x16x16xf32>
    %7 = vector.extract_strided_slice %5 {offsets = [0, 1, 0], sizes = [16, 16, 16], strides = [1, 1, 1]} : vector<19x19x16xf32> to vector<16x16x16xf32>
    %8 = vector.extract_strided_slice %5 {offsets = [0, 2, 0], sizes = [16, 16, 16], strides = [1, 1, 1]} : vector<19x19x16xf32> to vector<16x16x16xf32>
    %9 = vector.extract_strided_slice %5 {offsets = [0, 3, 0], sizes = [16, 16, 16], strides = [1, 1, 1]} : vector<19x19x16xf32> to vector<16x16x16xf32>
    %10 = vector.extract_strided_slice %5 {offsets = [1, 0, 0], sizes = [16, 16, 16], strides = [1, 1, 1]} : vector<19x19x16xf32> to vector<16x16x16xf32>
    %11 = vector.extract_strided_slice %5 {offsets = [1, 1, 0], sizes = [16, 16, 16], strides = [1, 1, 1]} : vector<19x19x16xf32> to vector<16x16x16xf32>
    %12 = vector.extract_strided_slice %5 {offsets = [1, 2, 0], sizes = [16, 16, 16], strides = [1, 1, 1]} : vector<19x19x16xf32> to vector<16x16x16xf32>
    %13 = vector.extract_strided_slice %5 {offsets = [1, 3, 0], sizes = [16, 16, 16], strides = [1, 1, 1]} : vector<19x19x16xf32> to vector<16x16x16xf32>
    %14 = vector.extract_strided_slice %5 {offsets = [2, 0, 0], sizes = [16, 16, 16], strides = [1, 1, 1]} : vector<19x19x16xf32> to vector<16x16x16xf32>
    %15 = vector.extract_strided_slice %5 {offsets = [2, 1, 0], sizes = [16, 16, 16], strides = [1, 1, 1]} : vector<19x19x16xf32> to vector<16x16x16xf32>
    %16 = vector.extract_strided_slice %5 {offsets = [2, 2, 0], sizes = [16, 16, 16], strides = [1, 1, 1]} : vector<19x19x16xf32> to vector<16x16x16xf32>
    %17 = vector.extract_strided_slice %5 {offsets = [2, 3, 0], sizes = [16, 16, 16], strides = [1, 1, 1]} : vector<19x19x16xf32> to vector<16x16x16xf32>
    %18 = vector.extract_strided_slice %5 {offsets = [3, 0, 0], sizes = [16, 16, 16], strides = [1, 1, 1]} : vector<19x19x16xf32> to vector<16x16x16xf32>
    %19 = vector.extract_strided_slice %5 {offsets = [3, 1, 0], sizes = [16, 16, 16], strides = [1, 1, 1]} : vector<19x19x16xf32> to vector<16x16x16xf32>
    %20 = vector.extract_strided_slice %5 {offsets = [3, 2, 0], sizes = [16, 16, 16], strides = [1, 1, 1]} : vector<19x19x16xf32> to vector<16x16x16xf32>
    %21 = vector.extract_strided_slice %5 {offsets = [3, 3, 0], sizes = [16, 16, 16], strides = [1, 1, 1]} : vector<19x19x16xf32> to vector<16x16x16xf32>
    %22 = tpu.concatenate %6, %7, %8, %9, %10, %11, %12, %13, %14, %15, %16, %17, %18, %19, %20, %21 in 2 : vector<16x16x16xf32>, vector<16x16x16xf32>, vector<16x16x16xf32>, vector<16x16x16xf32>, vector<16x16x16xf32>, vector<16x16x16xf32>, vector<16x16x16xf32>, vector<16x16x16xf32>, vector<16x16x16xf32>, vector<16x16x16xf32>, vector<16x16x16xf32>, vector<16x16x16xf32>, vector<16x16x16xf32>, vector<16x16x16xf32>, vector<16x16x16xf32>, vector<16x16x16xf32> -> vector<16x16x256xf32>
    %23 = vector.shape_cast %22 : vector<16x16x256xf32> to vector<256x256xf32>
    %24 = arith.truncf %23 : vector<256x256xf32> to vector<256x256xbf16>
    %cst_7 = arith.constant dense<0.000000e+00> : vector<256x128xf32>
    %25 = tpu.matmul %24, %0, %cst_7 {dimension_numbers = #tpu.dot_dimension_numbers<[1], [0], [0], [1], [0, 0, 1, 1], [], []>} : vector<256x256xbf16>, vector<256x128xbf16>, vector<256x128xf32> -> vector<256x128xf32>
    %26 = vector.broadcast %1 : vector<1x128xf32> to vector<256x128xf32>
    %27 = arith.addf %25, %26 : vector<256x128xf32>
    %cst_8 = arith.constant 0.000000e+00 : f32
    %28 = vector.broadcast %cst_8 : f32 to vector<256x128xf32>
    %29 = arith.maximumf %27, %28 : vector<256x128xf32>
    %cst_9 = arith.constant dense<0.000000e+00> : vector<128xf32>
    %30 = vector.multi_reduction <add>, %29, %cst_9 [0] : vector<256x128xf32> to vector<128xf32>
    %31 = vector.shape_cast %30 : vector<128xf32> to vector<1x128xf32>
    %32 = arith.addf %2, %31 : vector<1x128xf32>
    %cst_10 = arith.constant 3.906250e-03 : f32
    %33 = vector.broadcast %cst_10 : f32 to vector<1x128xf32>
    %34 = arith.mulf %32, %33 : vector<1x128xf32>
    %c0_11 = arith.constant 0 : index
    %c0_12 = arith.constant 0 : index
    %c0_13 = arith.constant 0 : index
    %35 = vector.load %arg4[%c0_11, %c0_12, %c0_13] : memref<1x1x128xf32, #tpu.memory_space<vmem>>, vector<1x1x128xf32>
    %36 = vector.shape_cast %35 : vector<1x1x128xf32> to vector<1x128xf32>
    %37 = vector.shape_cast %34 : vector<1x128xf32> to vector<1x1x128xf32>
    tpu.vector_store %arg4[%c0_11, %c0_12, %c0_13], %37 {strides = array<i32>} : memref<1x1x128xf32, #tpu.memory_space<vmem>>, vector<1x1x128xf32>,
    return
  }
  func.func @transform_0(%arg0: i32) -> (i32, i32, i32, i32) {
    %c0_i32 = arith.constant 0 : i32
    %c0_i32_0 = arith.constant 0 : i32
    %c0_i32_1 = arith.constant 0 : i32
    %c0_i32_2 = arith.constant 0 : i32
    return %arg0, %c0_i32, %c0_i32_0, %c0_i32_1 : i32, i32, i32, i32
  }
  func.func @transform_1(%arg0: i32) -> (i32, i32) {
    %c0_i32 = arith.constant 0 : i32
    %c0_i32_0 = arith.constant 0 : i32
    %c0_i32_1 = arith.constant 0 : i32
    return %c0_i32, %c0_i32_0 : i32, i32
  }
  func.func @transform_2(%arg0: i32) -> (i32, i32) {
    %c0_i32 = arith.constant 0 : i32
    %c0_i32_0 = arith.constant 0 : i32
    %c0_i32_1 = arith.constant 0 : i32
    return %c0_i32, %c0_i32_0 : i32, i32
  }
  func.func @transform_3(%arg0: i32) -> (i32, i32, i32) {
    %c0_i32 = arith.constant 0 : i32
    %c0_i32_0 = arith.constant 0 : i32
    %c0_i32_1 = arith.constant 0 : i32
    return %arg0, %c0_i32, %c0_i32_0 : i32, i32, i32
  }
}

module attributes {stable_mosaic.version = 11 : i64} {
  func.func @_vit_reduce_head_kernel(%arg0: i32, %arg1: memref<2x128xf32, #tpu.memory_space<vmem>>, %arg2: memref<2x8x768xbf16, #tpu.memory_space<vmem>>, %arg3: memref<128x2048xbf16, #tpu.memory_space<vmem>>, %arg4: memref<1x2048xf32, #tpu.memory_space<vmem>>, %arg5: memref<768x768xbf16, #tpu.memory_space<vmem>>, %arg6: memref<1x768xf32, #tpu.memory_space<vmem>>, %arg7: memref<2048x128xbf16, #tpu.memory_space<vmem>>, %arg8: memref<768x128xbf16, #tpu.memory_space<vmem>>, %arg9: memref<1x128xf32, #tpu.memory_space<vmem>>, %arg10: memref<2x128xf32, #tpu.memory_space<vmem>>, %arg11: memref<2x768xf32, #tpu.memory_space<vmem>>) attributes {dimension_semantics = [#tpu.dimension_semantics<arbitrary>], iteration_bounds = array<i64: 1>, scalar_prefetch = 0 : i64, scratch_operands = 1 : i64, tpu.core_type = #tpu.core_type<tc>, window_params = [{pipeline_mode = #tpu.pipeline_mode<synchronous>, transform_indices = @transform_0, window_bounds = array<i64: 2, 128>}, {transform_indices = @transform_1, window_bounds = array<i64: 2, 8, 768>}, {pipeline_mode = #tpu.pipeline_mode<synchronous>, transform_indices = @transform_2, window_bounds = array<i64: 128, 2048>}, {pipeline_mode = #tpu.pipeline_mode<synchronous>, transform_indices = @transform_3, window_bounds = array<i64: 1, 2048>}, {pipeline_mode = #tpu.pipeline_mode<synchronous>, transform_indices = @transform_4, window_bounds = array<i64: 768, 768>}, {pipeline_mode = #tpu.pipeline_mode<synchronous>, transform_indices = @transform_5, window_bounds = array<i64: 1, 768>}, {pipeline_mode = #tpu.pipeline_mode<synchronous>, transform_indices = @transform_6, window_bounds = array<i64: 2048, 128>}, {pipeline_mode = #tpu.pipeline_mode<synchronous>, transform_indices = @transform_7, window_bounds = array<i64: 768, 128>}, {pipeline_mode = #tpu.pipeline_mode<synchronous>, transform_indices = @transform_8, window_bounds = array<i64: 1, 128>}, {pipeline_mode = #tpu.pipeline_mode<synchronous>, transform_indices = @transform_9, window_bounds = array<i64: 2, 128>}]} {
    %c0_i32 = arith.constant 0 : i32
    %0 = arith.cmpi eq, %arg0, %c0_i32 : i32
    %1 = arith.extui %0 : i1 to i32
    %c0_i32_0 = arith.constant 0 : i32
    %2 = arith.cmpi ne, %1, %c0_i32_0 : i32
    scf.if %2 {
      %cst_9 = arith.constant 0.000000e+00 : f32
      %12 = vector.broadcast %cst_9 : f32 to vector<2x768xf32>
      %c0_10 = arith.constant 0 : index
      %c0_11 = arith.constant 0 : index
      %13 = vector.load %arg11[%c0_10, %c0_11] : memref<2x768xf32, #tpu.memory_space<vmem>>, vector<2x768xf32>
      tpu.vector_store %arg11[%c0_10, %c0_11], %12 {strides = array<i32>} : memref<2x768xf32, #tpu.memory_space<vmem>>, vector<2x768xf32>,
    } else {
    }
    %c0 = arith.constant 0 : index
    %c0_1 = arith.constant 0 : index
    %3 = vector.load %arg11[%c0, %c0_1] : memref<2x768xf32, #tpu.memory_space<vmem>>, vector<2x768xf32>
    %c0_2 = arith.constant 0 : index
    %c0_3 = arith.constant 0 : index
    %c0_4 = arith.constant 0 : index
    %4 = vector.load %arg2[%c0_2, %c0_3, %c0_4] : memref<2x8x768xbf16, #tpu.memory_space<vmem>>, vector<2x8x768xbf16>
    %5 = arith.extf %4 : vector<2x8x768xbf16> to vector<2x8x768xf32>
    %cst = arith.constant dense<0.000000e+00> : vector<2x768xf32>
    %6 = vector.multi_reduction <add>, %5, %cst [1] : vector<2x8x768xf32> to vector<2x768xf32>
    %7 = arith.addf %3, %6 : vector<2x768xf32>
    %c0_5 = arith.constant 0 : index
    %c0_6 = arith.constant 0 : index
    %8 = vector.load %arg11[%c0_5, %c0_6] : memref<2x768xf32, #tpu.memory_space<vmem>>, vector<2x768xf32>
    tpu.vector_store %arg11[%c0_5, %c0_6], %7 {strides = array<i32>} : memref<2x768xf32, #tpu.memory_space<vmem>>, vector<2x768xf32>,
    %c0_i32_7 = arith.constant 0 : i32
    %9 = arith.cmpi eq, %arg0, %c0_i32_7 : i32
    %10 = arith.extui %9 : i1 to i32
    %c0_i32_8 = arith.constant 0 : i32
    %11 = arith.cmpi ne, %10, %c0_i32_8 : i32
    scf.if %11 {
      %c0_9 = arith.constant 0 : index
      %c0_10 = arith.constant 0 : index
      %12 = vector.load %arg1[%c0_9, %c0_10] : memref<2x128xf32, #tpu.memory_space<vmem>>, vector<2x128xf32>
      %13 = arith.truncf %12 : vector<2x128xf32> to vector<2x128xbf16>
      %c0_11 = arith.constant 0 : index
      %c0_12 = arith.constant 0 : index
      %14 = vector.load %arg3[%c0_11, %c0_12] : memref<128x2048xbf16, #tpu.memory_space<vmem>>, vector<128x2048xbf16>
      %cst_13 = arith.constant dense<0.000000e+00> : vector<2x2048xf32>
      %15 = tpu.matmul %13, %14, %cst_13 {dimension_numbers = #tpu.dot_dimension_numbers<[1], [0], [0], [1], [0, 0, 1, 1], [], []>} : vector<2x128xbf16>, vector<128x2048xbf16>, vector<2x2048xf32> -> vector<2x2048xf32>
      %c0_14 = arith.constant 0 : index
      %c0_15 = arith.constant 0 : index
      %16 = vector.load %arg4[%c0_14, %c0_15] : memref<1x2048xf32, #tpu.memory_space<vmem>>, vector<1x2048xf32>
      %17 = vector.broadcast %16 : vector<1x2048xf32> to vector<2x2048xf32>
      %18 = arith.addf %15, %17 : vector<2x2048xf32>
      %c0_16 = arith.constant 0 : index
      %c0_17 = arith.constant 0 : index
      %19 = vector.load %arg11[%c0_16, %c0_17] : memref<2x768xf32, #tpu.memory_space<vmem>>, vector<2x768xf32>
      %cst_18 = arith.constant 2.500000e-01 : f32
      %20 = vector.broadcast %cst_18 : f32 to vector<2x768xf32>
      %21 = arith.mulf %19, %20 : vector<2x768xf32>
      %22 = arith.truncf %21 : vector<2x768xf32> to vector<2x768xbf16>
      %c0_19 = arith.constant 0 : index
      %c0_20 = arith.constant 0 : index
      %23 = vector.load %arg5[%c0_19, %c0_20] : memref<768x768xbf16, #tpu.memory_space<vmem>>, vector<768x768xbf16>
      %cst_21 = arith.constant dense<0.000000e+00> : vector<2x768xf32>
      %24 = tpu.matmul %22, %23, %cst_21 {dimension_numbers = #tpu.dot_dimension_numbers<[1], [0], [0], [1], [0, 0, 1, 1], [], []>} : vector<2x768xbf16>, vector<768x768xbf16>, vector<2x768xf32> -> vector<2x768xf32>
      %c0_22 = arith.constant 0 : index
      %c0_23 = arith.constant 0 : index
      %25 = vector.load %arg6[%c0_22, %c0_23] : memref<1x768xf32, #tpu.memory_space<vmem>>, vector<1x768xf32>
      %26 = vector.broadcast %25 : vector<1x768xf32> to vector<2x768xf32>
      %27 = arith.addf %24, %26 : vector<2x768xf32>
      %28 = arith.truncf %18 : vector<2x2048xf32> to vector<2x2048xbf16>
      %c0_24 = arith.constant 0 : index
      %c0_25 = arith.constant 0 : index
      %29 = vector.load %arg7[%c0_24, %c0_25] : memref<2048x128xbf16, #tpu.memory_space<vmem>>, vector<2048x128xbf16>
      %cst_26 = arith.constant dense<0.000000e+00> : vector<2x128xf32>
      %30 = tpu.matmul %28, %29, %cst_26 {dimension_numbers = #tpu.dot_dimension_numbers<[1], [0], [0], [1], [0, 0, 1, 1], [], []>} : vector<2x2048xbf16>, vector<2048x128xbf16>, vector<2x128xf32> -> vector<2x128xf32>
      %31 = arith.truncf %27 : vector<2x768xf32> to vector<2x768xbf16>
      %c0_27 = arith.constant 0 : index
      %c0_28 = arith.constant 0 : index
      %32 = vector.load %arg8[%c0_27, %c0_28] : memref<768x128xbf16, #tpu.memory_space<vmem>>, vector<768x128xbf16>
      %cst_29 = arith.constant dense<0.000000e+00> : vector<2x128xf32>
      %33 = tpu.matmul %31, %32, %cst_29 {dimension_numbers = #tpu.dot_dimension_numbers<[1], [0], [0], [1], [0, 0, 1, 1], [], []>} : vector<2x768xbf16>, vector<768x128xbf16>, vector<2x128xf32> -> vector<2x128xf32>
      %34 = arith.addf %30, %33 : vector<2x128xf32>
      %c0_30 = arith.constant 0 : index
      %c0_31 = arith.constant 0 : index
      %35 = vector.load %arg9[%c0_30, %c0_31] : memref<1x128xf32, #tpu.memory_space<vmem>>, vector<1x128xf32>
      %36 = vector.broadcast %35 : vector<1x128xf32> to vector<2x128xf32>
      %37 = arith.addf %34, %36 : vector<2x128xf32>
      %c0_32 = arith.constant 0 : index
      %c0_33 = arith.constant 0 : index
      %38 = vector.load %arg10[%c0_32, %c0_33] : memref<2x128xf32, #tpu.memory_space<vmem>>, vector<2x128xf32>
      tpu.vector_store %arg10[%c0_32, %c0_33], %37 {strides = array<i32>} : memref<2x128xf32, #tpu.memory_space<vmem>>, vector<2x128xf32>,
    } else {
    }
    return
  }
  func.func @transform_0(%arg0: i32) -> (i32, i32) {
    %c0_i32 = arith.constant 0 : i32
    %c0_i32_0 = arith.constant 0 : i32
    %c0_i32_1 = arith.constant 0 : i32
    return %c0_i32, %c0_i32_0 : i32, i32
  }
  func.func @transform_1(%arg0: i32) -> (i32, i32, i32) {
    %c0_i32 = arith.constant 0 : i32
    %c0_i32_0 = arith.constant 0 : i32
    %c0_i32_1 = arith.constant 0 : i32
    return %c0_i32, %arg0, %c0_i32_0 : i32, i32, i32
  }
  func.func @transform_2(%arg0: i32) -> (i32, i32) {
    %c0_i32 = arith.constant 0 : i32
    %c0_i32_0 = arith.constant 0 : i32
    %c0_i32_1 = arith.constant 0 : i32
    return %c0_i32, %c0_i32_0 : i32, i32
  }
  func.func @transform_3(%arg0: i32) -> (i32, i32) {
    %c0_i32 = arith.constant 0 : i32
    %c0_i32_0 = arith.constant 0 : i32
    %c0_i32_1 = arith.constant 0 : i32
    return %c0_i32, %c0_i32_0 : i32, i32
  }
  func.func @transform_4(%arg0: i32) -> (i32, i32) {
    %c0_i32 = arith.constant 0 : i32
    %c0_i32_0 = arith.constant 0 : i32
    %c0_i32_1 = arith.constant 0 : i32
    return %c0_i32, %c0_i32_0 : i32, i32
  }
  func.func @transform_5(%arg0: i32) -> (i32, i32) {
    %c0_i32 = arith.constant 0 : i32
    %c0_i32_0 = arith.constant 0 : i32
    %c0_i32_1 = arith.constant 0 : i32
    return %c0_i32, %c0_i32_0 : i32, i32
  }
  func.func @transform_6(%arg0: i32) -> (i32, i32) {
    %c0_i32 = arith.constant 0 : i32
    %c0_i32_0 = arith.constant 0 : i32
    %c0_i32_1 = arith.constant 0 : i32
    return %c0_i32, %c0_i32_0 : i32, i32
  }
  func.func @transform_7(%arg0: i32) -> (i32, i32) {
    %c0_i32 = arith.constant 0 : i32
    %c0_i32_0 = arith.constant 0 : i32
    %c0_i32_1 = arith.constant 0 : i32
    return %c0_i32, %c0_i32_0 : i32, i32
  }
  func.func @transform_8(%arg0: i32) -> (i32, i32) {
    %c0_i32 = arith.constant 0 : i32
    %c0_i32_0 = arith.constant 0 : i32
    %c0_i32_1 = arith.constant 0 : i32
    return %c0_i32, %c0_i32_0 : i32, i32
  }
  func.func @transform_9(%arg0: i32) -> (i32, i32) {
    %c0_i32 = arith.constant 0 : i32
    %c0_i32_0 = arith.constant 0 : i32
    %c0_i32_1 = arith.constant 0 : i32
    return %c0_i32, %c0_i32_0 : i32, i32
  }
}

</mosaic_0001>

<bundles_post_ra>
// kernel: ensemble_forward.2
= control target key start
LH: loop header
LB: loop body
LE: loop exit
PB: predicated region body
PF: predicated region fallthrough
CT: control target
= control target key end

     0   :  { %s2974_s12 = smov 0   ;;  %s4407_s0 = inlined_call_operand.vmem [shape: bf16[2,19,19,16], index: 0, kind: input, shape index: {}]   ;;  %s4408_s1 = inlined_call_operand.vmem [shape: bf16[256,128], index: 1, kind: input, shape index: {}]   ;;  %s4409_s2 = inlined_call_operand.vmem [shape: f32[1,128], index: 2, kind: input, shape index: {}]   ;;  %s4410_s3 = inlined_call_operand.vmem [shape: f32[2,1,128], index: 3, kind: output, shape index: {}]  }
   0x1 LB: > { %s2075_s13 = sadd.s32 4294967295, %s2945_s12   ;;  %p2079_p0 = scmp.ge.s32.totalorder %s2945_s12, 1  ;;  %s2945_s12 = sphi %s2974_s12, %s13_s12  }
   0x2   : > { %p137_p1 = scmp.lt.s32.totalorder %s2945_s12, 3 }
   0x4   : > { %p138_p2 = pnand %p2079_p0, %p137_p1 }
   0x6   : > { %141 = sbr.rel (%p138_p2) target bundleno = 640 (0x280), region = 32 }
   0xd   : > { %p159_p3 = scmp.lt.s32.totalorder %s2075_s13, 1  ;;  %vm363_vm0 = vcmask 1046528   ;;  %s2947_s18 = smov 16   ;;  %vm540_vm1 = vcmask 1045504   ;;  %vm717_vm2 = vcmask 1044480   ;;  %vm1416_vm3 = vcmask 130048  }
   0xe   : > { %s2948_s19 = smov 32   ;;  %s2949_s15 = smov 48   ;;  %vm1449_vm4 = vcmask 261120   ;;  %vm1482_vm5 = vcmask 392192   ;;  %vm1515_vm6 = vcmask 523264   ;;  %vm1548_vm7 = vcmask 654336  }
   0xf   : > { %s4595_s13 = smov (!%p159_p3, %s2075_s13), 1  ;;  %s2950_s23 = smov 64   ;;  %vm1581_vm8 = vcmask 785408   ;;  %vm1614_vm9 = vcmask 916480  }
  0x10   : > { %s2277_s14 = smul.u32 228, %s4595_s13  ;;  %s2951_s28 = smov 80  }
  0x11   : > { %s2952_s6 = smov 96   ;;  %s2953_s7 = smov 112  }
  0x12   : > { %s2988_s17 = scalar_lea.vmem %s4407_s0, %s2277_s14  ;;  %s166_s9 = scalar_lea.vmem %s4410_s3, %s4595_s13 }
  0x13   : > { %v2140_v0 = vld [vmem:[%s2988_s17 + $0x18] sm:$0xff]   ;;  %v209_v1 = vld [vmem:[%s2988_s17 + $0x20] sm:$0x3]  ;;  %v203_v7 = vld [vmem:[%s2988_s17 + $0x8] sm:$0x3] }
  0x14   : > { %v2101_v2 = vld [vmem:[%s2988_s17] sm:$0xff]   ;;  %v2993_v3 = vunpack.c.l.bf16 %v2140_v0  ;;  %v2995_v4 = vunpack.c.h.bf16 %v2140_v0  ;;  %v2997_v5 = vunpack.c.l.bf16 %v209_v1  ;;  %v212_v9 = vld [vmem:[%s2988_s17 + $0x2c] sm:$0x3]  ;;  %v3006_v11 = vunpack.c.l.bf16 %v203_v7  ;;  %v206_v26 = vld [vmem:[%s2988_s17 + $0x14] sm:$0x3] }
  0x15   : > { %v2999_v6 = vunpack.c.l.bf16 %v2101_v2  ;;  %v210_v8 = vld [vmem:[%s2988_s17 + $0x24] sm:$0xff]   ;;  %v3004_v10 = vunpack.c.h.bf16 %v2101_v2  ;;  %v204_v14 = vld [vmem:[%s2988_s17 + $0xc] sm:$0xff]   ;;  %v3019_v21 = vunpack.c.l.bf16 %v212_v9  ;;  %v216_v28 = vld [vmem:[%s2988_s17 + $0x3c] sm:$0xff]   ;;  %v3041_v38 = vunpack.c.l.bf16 %v206_v26 }
  0x16   : > { %v3008_v12 = vunpack.c.l.bf16 %v210_v8  ;;  %v3010_v13 = vunpack.c.h.bf16 %v210_v8  ;;  %v374_v15 = vrot.slane %v2993_v3, 1  ;;  %v375_v16 = vrot.slane %v2995_v4, 1  ;;  %v218_v32 = vld [vmem:[%s2988_s17 + $0x44] sm:$0x3]  ;;  %v2141_v33 = vld [vmem:[%s2988_s17 + $0x30] sm:$0xff]   ;;  %v2142_v62 = vld [vmem:[%s2988_s17 + $0x48] sm:$0xff]  }
  0x17   : > { %v377_v17 = vrot.slane %v2997_v5, 1  ;;  %v364_v18 = vrot.slane %v2999_v6, 1  ;;  %v365_v19 = vrot.slane %v3004_v10, 1  ;;  %v367_v20 = vrot.slane %v3006_v11, 1  ;;  %v215_v42 = vld [vmem:[%s2988_s17 + $0x38] sm:$0x3] }
  0x18   : > { %v379_v22 = vrot.slane %v3008_v12, 1  ;;  %v376_v23 = vsel %vm363_vm0, %v374_v15, %v375_v16  ;;  %v380_v25 = vrot.slane %v3010_v13, 1  ;;  %v3026_v27 = vunpack.c.l.bf16 %v204_v14  ;;  %v222_v47 = vld [vmem:[%s2988_s17 + $0x54] sm:$0xff]   ;;  %v224_v56 = vld [vmem:[%s2988_s17 + $0x5c] sm:$0x3] }
  0x19   : > { %v378_v24 = vsel %vm363_vm0, %v375_v16, %v377_v17  ;;  %v366_v30 = vsel %vm363_vm0, %v364_v18, %v365_v19  ;;  %v368_v31 = vsel %vm363_vm0, %v365_v19, %v367_v20  ;;  %v382_v36 = vrot.slane %v3019_v21, 1  ;;  %v221_v57 = vld [vmem:[%s2988_s17 + $0x50] sm:$0x3]  ;;  %v230_v7 = vld [vmem:[%s2988_s17 + $0x74] sm:$0x3] }
  0x1a   : > { %v3029_v29 = vpack.i.bf16 %v378_v24, %v376_v23  ;;  %v2293_v34 = vpack.i.bf16 %v368_v31, %v366_v30  ;;  %v381_v35 = vsel %vm363_vm0, %v379_v22, %v380_v25  ;;  %v3037_v37 = vunpack.c.h.bf16 %v204_v14  ;;  %v228_v16 = vld [vmem:[%s2988_s17 + $0x6c] sm:$0xff]   ;;  %v2143_v22 = vld [vmem:[%s2988_s17 + $0x60] sm:$0xff]  }
  0x1b   : > { %v369_v39 = vrot.slane %v3026_v27, 1  ;;  %v3044_v40 = vunpack.c.l.bf16 %v216_v28  ;;  %v3046_v41 = vunpack.c.h.bf16 %v216_v28  ;;  %v383_v43 = vsel %vm363_vm0, %v380_v25, %v382_v36  ;;  %v227_v28 = vld [vmem:[%s2988_s17 + $0x68] sm:$0x3] }
  0x1c   : > { %2304 = vrot.lane.b32.xlu1 %v3029_v29, %s2947_s18  ;;  %2294 = vrot.lane.b32.xlu0 %v2293_v34, %s2947_s18  ;;  %v370_v44 = vrot.slane %v3037_v37, 1  ;;  %v3052_v45 = vunpack.c.l.bf16 %v218_v32  ;;  %v3054_v46 = vunpack.c.l.bf16 %v2141_v33  ;;  %v3057_v48 = vpack.i.bf16 %v383_v43, %v381_v35  ;;  %v236_v43 = vld [vmem:[%s2988_s17 + $0x8c] sm:$0x3] }
  0x1d   : > { %v372_v49 = vrot.slane %v3041_v38, 1  ;;  %v389_v50 = vrot.slane %v3044_v40, 1  ;;  %v390_v51 = vrot.slane %v3046_v41, 1  ;;  %v3064_v54 = vunpack.c.h.bf16 %v2141_v33 }
  0x1e   : > { %v371_v52 = vsel %vm363_vm0, %v369_v39, %v370_v44  ;;  %v392_v53 = vrot.slane %v3052_v45, 1  ;;  %v3066_v55 = vunpack.c.l.bf16 %v215_v42  ;;  %v384_v60 = vrot.slane %v3054_v46, 1  ;;  %v234_v42 = vld [vmem:[%s2988_s17 + $0x84] sm:$0xff]  }
  0x1f   : > { %v373_v58 = vsel %vm363_vm0, %v370_v44, %v372_v49  ;;  %v391_v59 = vsel %vm363_vm0, %v389_v50, %v390_v51  ;;  %v3075_v61 = vunpack.c.l.bf16 %v222_v47  ;;  %v385_v1 = vrot.slane %v3064_v54, 1 }
  0x20   : > { %2309 = vrot.lane.b32.xlu1 %v3057_v48, %s2947_s18  ;;  %v3078_v63 = vpack.i.bf16 %v373_v58, %v371_v52  ;;  %v393_v0 = vsel %vm363_vm0, %v390_v51, %v392_v53  ;;  %v387_v2 = vrot.slane %v3066_v55, 1  ;;  %v3086_v9 = vunpack.c.h.bf16 %v222_v47 }
  0x21   : > { %4480 = vst [vmem:[#allocation2_spill] sm:$0xff] %v3075_v61  ;;  %v3084_v8 = vpack.i.bf16 %v393_v0, %v391_v59  ;;  %v3088_v14 = vunpack.c.l.bf16 %v224_v56  ;;  %v399_v15 = vrot.slane %v3075_v61, 1  ;;  %v386_v17 = vsel %vm363_vm0, %v384_v60, %v385_v1 }
  0x22   : > { %4481 = vst [vmem:[#allocation3_spill] sm:$0xff] %v3086_v9  ;;  %2299 = vrot.lane.b32.xlu0 %v3078_v63, %s2947_s18  ;;  %v388_v18 = vsel %vm363_vm0, %v385_v1, %v387_v2  ;;  %v3096_v19 = vunpack.c.l.bf16 %v2142_v62  ;;  %v3098_v20 = vunpack.c.h.bf16 %v2142_v62  ;;  %v400_v24 = vrot.slane %v3086_v9, 1  ;;  %v2144_v62 = vld [vmem:[%s2988_s17 + $0x78] sm:$0xff]  }
  0x23   : > { %4482 = vst [vmem:[#allocation4_spill] sm:$0xff] %v3088_v14  ;;  %v3103_v23 = vpack.i.bf16 %v388_v18, %v386_v17  ;;  %v402_v25 = vrot.slane %v3088_v14, 1  ;;  %v3107_v26 = vunpack.c.l.bf16 %v221_v57  ;;  %v3112_v32 = vunpack.c.l.bf16 %v228_v16 }
  0x24   : > { %4483 = vst [vmem:[#allocation5_spill] sm:$0xff] %v3096_v19  ;;  %4484 = vst [vmem:[#allocation6_spill] sm:$0xff] %v3098_v20  ;;  %2319 = vrot.lane.b32.xlu1 %v3084_v8, %s2947_s18  ;;  %v394_v30 = vrot.slane %v3096_v19, 1  ;;  %v395_v31 = vrot.slane %v3098_v20, 1  ;;  %v3114_v33 = vunpack.c.h.bf16 %v228_v16  ;;  %v401_v34 = vsel %vm363_vm0, %v399_v15, %v400_v24  ;;  %v233_v15 = vld [vmem:[%s2988_s17 + $0x80] sm:$0x3] }
  0x25   : > { %4485 = vst [vmem:[#allocation7_spill] sm:$0xff] %v3112_v32  ;;  %v403_v35 = vsel %vm363_vm0, %v400_v24, %v402_v25  ;;  %v397_v36 = vrot.slane %v3107_v26, 1  ;;  %v3119_v39 = vunpack.c.l.bf16 %v230_v7  ;;  %v409_v49 = vrot.slane %v3112_v32, 1  ;;  %v240_v16 = vld [vmem:[%s2988_s17 + $0x9c] sm:$0xff]  }
  0x26   : > { %4486 = vst [vmem:[#allocation8_spill] sm:$0xff] %v3114_v33  ;;  %2314 = vrot.lane.b32.xlu0 %v3103_v23, %s2947_s18  ;;  %v3125_v44 = vpack.i.bf16 %v403_v35, %v401_v34  ;;  %v396_v47 = vsel %vm363_vm0, %v394_v30, %v395_v31  ;;  %v410_v50 = vrot.slane %v3114_v33, 1  ;;  %v3132_v53 = vunpack.c.l.bf16 %v2143_v22  ;;  %v242_v34 = vld [vmem:[%s2988_s17 + $0xa4] sm:$0x3] }
  0x27   : > { %4487 = vst [vmem:[#allocation9_spill] sm:$0xff] %v3119_v39  ;;  %v398_v51 = vsel %vm363_vm0, %v395_v31, %v397_v36  ;;  %v412_v52 = vrot.slane %v3119_v39, 1  ;;  %v3134_v56 = vunpack.c.h.bf16 %v2143_v22  ;;  %v3141_v59 = vunpack.c.l.bf16 %v227_v28 }
  0x28   : > { %4488 = vst [vmem:[#allocation10_spill] sm:$0xff] %v3125_v44  ;;  %4489 = vst [vmem:[#allocation11_spill] sm:$0xff] %v3132_v53  ;;  %2329 = vrot.lane.b32.xlu1 %v3125_v44, %s2947_s18  ;;  %v3138_v57 = vpack.i.bf16 %v398_v51, %v396_v47  ;;  %v411_v58 = vsel %vm363_vm0, %v409_v49, %v410_v50  ;;  %v3143_v60 = vunpack.c.l.bf16 %v234_v42  ;;  %v404_v1 = vrot.slane %v3132_v53, 1  ;;  %v2145_v47 = vld [vmem:[%s2988_s17 + $0x90] sm:$0xff]  }
  0x29   : > { %4490 = vst [vmem:[#allocation12_spill] sm:$0xff] %v3134_v56  ;;  %v413_v0 = vsel %vm363_vm0, %v410_v50, %v412_v52  ;;  %v405_v2 = vrot.slane %v3134_v56, 1  ;;  %v3149_v7 = vunpack.c.h.bf16 %v234_v42  ;;  %v407_v18 = vrot.slane %v3141_v59, 1 }
  0x2a   : > { %4491 = vst [vmem:[#allocation13_spill] sm:$0xff] %v3143_v60  ;;  %2324 = vrot.lane.b32.xlu0 %v3138_v57, %s2947_s18  ;;  %v3155_v17 = vpack.i.bf16 %v413_v0, %v411_v58  ;;  %v3158_v22 = vunpack.c.l.bf16 %v236_v43  ;;  %v419_v24 = vrot.slane %v3143_v60, 1  ;;  %v3163_v30 = vunpack.c.l.bf16 %v2144_v62 }
  0x2b   : > { %4492 = vst [vmem:[#allocation14_spill] sm:$0xff] %v3149_v7  ;;  %v406_v25 = vsel %vm363_vm0, %v404_v1, %v405_v2  ;;  %v420_v28 = vrot.slane %v3149_v7, 1  ;;  %v3165_v31 = vunpack.c.h.bf16 %v2144_v62  ;;  %v408_v35 = vsel %vm363_vm0, %v405_v2, %v407_v18  ;;  %v239_v2 = vld [vmem:[%s2988_s17 + $0x98] sm:$0x3] }
  0x2c   : > { %4493 = vst [vmem:[#allocation15_spill] sm:$0xff] %v3155_v17  ;;  %4494 = vst [vmem:[#allocation16_spill] sm:$0xff] %v3163_v30  ;;  %2339 = vrot.lane.b32.xlu1 %v3155_v17, %s2947_s18  ;;  %v422_v36 = vrot.slane %v3158_v22, 1  ;;  %v3172_v42 = vunpack.c.l.bf16 %v233_v15  ;;  %v3174_v43 = vunpack.c.l.bf16 %v240_v16  ;;  %v3177_v49 = vpack.i.bf16 %v408_v35, %v406_v25  ;;  %v246_v15 = vld [vmem:[%s2988_s17 + $0xb4] sm:$0xff]   ;;  %v248_v17 = vld [vmem:[%s2988_s17 + $0xbc] sm:$0x3] }
  0x2d   : > { %4495 = vst [vmem:[#allocation17_spill] sm:$0xff] %v3165_v31  ;;  %v421_v50 = vsel %vm363_vm0, %v419_v24, %v420_v28  ;;  %v414_v51 = vrot.slane %v3163_v30, 1  ;;  %v415_v52 = vrot.slane %v3165_v31, 1  ;;  %v3184_v0 = vunpack.c.h.bf16 %v240_v16 }
  0x2e   : > { %4496 = vst [vmem:[#allocation18_spill] sm:$0xff] %v3174_v43  ;;  %4497 = vst [vmem:[#allocation19_spill] sm:$0xff] %v3177_v49  ;;  %v423_v58 = vsel %vm363_vm0, %v420_v28, %v422_v36  ;;  %v417_v62 = vrot.slane %v3172_v42, 1  ;;  %v3186_v1 = vunpack.c.l.bf16 %v242_v34  ;;  %2334 = vrot.lane.b32.xlu0 %v3177_v49, %s2947_s18  ;;  %v429_v25 = vrot.slane %v3174_v43, 1  ;;  %v2146_v43 = vld [vmem:[%s2988_s17 + $0xa8] sm:$0xff]  }
  0x2f   : > { %4498 = vst [vmem:[#allocation20_spill] sm:$0xff] %v3184_v0  ;;  %v3192_v18 = vpack.i.bf16 %v423_v58, %v421_v50  ;;  %v416_v24 = vsel %vm363_vm0, %v414_v51, %v415_v52  ;;  %v3196_v28 = vunpack.c.l.bf16 %v2145_v47  ;;  %v430_v34 = vrot.slane %v3184_v0, 1  ;;  %v245_v0 = vld [vmem:[%s2988_s17 + $0xb0] sm:$0x3] }
  0x30   : > { %4499 = vst [vmem:[#allocation21_spill] sm:$0xff] %v3186_v1  ;;  %v418_v16 = vsel %vm363_vm0, %v415_v52, %v417_v62  ;;  %v432_v35 = vrot.slane %v3186_v1, 1  ;;  %v3201_v36 = vunpack.c.h.bf16 %v2145_v47  ;;  %v3208_v51 = vunpack.c.l.bf16 %v239_v2 }
  0x31   : > { %4500 = vst [vmem:[#allocation22_spill] sm:$0xff] %v3192_v18  ;;  %4501 = vst [vmem:[#allocation23_spill] sm:$0xff] %v3196_v28  ;;  %2349 = vrot.lane.b32.xlu1 %v3192_v18, %s2947_s18  ;;  %v3206_v50 = vpack.i.bf16 %v418_v16, %v416_v24  ;;  %v424_v58 = vrot.slane %v3196_v28, 1  ;;  %v3211_v49 = vunpack.c.l.bf16 %v246_v15  ;;  %v431_v52 = vsel %vm363_vm0, %v429_v25, %v430_v34 }
  0x32   : > { %4502 = vst [vmem:[#allocation24_spill] sm:$0xff] %v3201_v36  ;;  %v433_v62 = vsel %vm363_vm0, %v430_v34, %v432_v35  ;;  %v425_v47 = vrot.slane %v3201_v36, 1  ;;  %v3217_v1 = vunpack.c.h.bf16 %v246_v15  ;;  %v427_v2 = vrot.slane %v3208_v51, 1 }
  0x33   : > { %4503 = vst [vmem:[#allocation25_spill] sm:$0xff] %v3206_v50  ;;  %4504 = vst [vmem:[#allocation26_spill] sm:$0xff] %v3211_v49  ;;  %2344 = vrot.lane.b32.xlu0 %v3206_v50, %s2947_s18  ;;  %v3222_v24 = vpack.i.bf16 %v433_v62, %v431_v52  ;;  %v3225_v16 = vunpack.c.l.bf16 %v248_v17  ;;  %v439_v18 = vrot.slane %v3211_v49, 1  ;;  %v3230_v35 = vunpack.c.l.bf16 %v2146_v43 }
  0x34   : > { %4505 = vst [vmem:[#allocation27_spill] sm:$0xff] %v3217_v1  ;;  %v426_v25 = vsel %vm363_vm0, %v424_v58, %v425_v47  ;;  %v440_v34 = vrot.slane %v3217_v1, 1  ;;  %v3232_v15 = vunpack.c.h.bf16 %v2146_v43  ;;  %v428_v52 = vsel %vm363_vm0, %v425_v47, %v427_v2 }
  0x35   : > { %4506 = vst [vmem:[#allocation28_spill] sm:$0xff] %v3222_v24  ;;  %4507 = vst [vmem:[#allocation29_spill] sm:$0xff] %v3225_v16  ;;  %2359 = vrot.lane.b32.xlu1 %v3222_v24, %s2947_s18  ;;  %v442_v62 = vrot.slane %v3225_v16, 1  ;;  %v3238_v50 = vunpack.c.l.bf16 %v245_v0  ;;  %v546_v17 = vrot.slane %v3026_v27, 2  ;;  %v3241_v49 = vpack.i.bf16 %v428_v52, %v426_v25 }
  0x36   : > { %4508 = vst [vmem:[#allocation30_spill] sm:$0xff] %v3230_v35  ;;  %4509 = vst [vmem:[#allocation31_spill] sm:$0xff] %v3232_v15  ;;  %v441_v58 = vsel %vm363_vm0, %v439_v18, %v440_v34  ;;  %v434_v1 = vrot.slane %v3230_v35, 1  ;;  %v435_v43 = vrot.slane %v3232_v15, 1  ;;  %v547_v47 = vrot.slane %v3037_v37, 2 }
  0x37   : > { %4510 = vst [vmem:[#allocation32_spill] sm:$0xff] %v3238_v50  ;;  %4511 = vst [vmem:[#allocation33_spill] sm:$0xff] %v3241_v49  ;;  %v443_v44 = vsel %vm363_vm0, %v440_v34, %v442_v62  ;;  %v437_v24 = vrot.slane %v3238_v50, 1  ;;  %v549_v2 = vrot.slane %v3041_v38, 2  ;;  %2354 = vrot.lane.b32.xlu0 %v3241_v49, %s2947_s18  ;;  %v541_v18 = vrot.slane %v2999_v6, 2 }
  0x38   : > { %v3252_v0 = vpack.i.bf16 %v443_v44, %v441_v58  ;;  %v436_v25 = vsel %vm363_vm0, %v434_v1, %v435_v43  ;;  %v548_v16 = vsel %vm540_vm1, %v546_v17, %v547_v47  ;;  %v542_v62 = vrot.slane %v3004_v10, 2 }
  0x39   : > { %v438_v52 = vsel %vm363_vm0, %v435_v43, %v437_v24  ;;  %v550_v34 = vsel %vm540_vm1, %v547_v47, %v549_v2  ;;  %v544_v44 = vrot.slane %v3006_v11, 2  ;;  %v556_v1 = vrot.slane %v3008_v12, 2 }
  0x3a   : > { %4512 = vst [vmem:[#allocation34_spill] sm:$0xff] %v3252_v0  ;;  %2369 = vrot.lane.b32.xlu1 %v3252_v0, %s2947_s18  ;;  %v3262_v50 = vpack.i.bf16 %v438_v52, %v436_v25  ;;  %v3264_v15 = vpack.i.bf16 %v550_v34, %v548_v16  ;;  %v543_v58 = vsel %vm540_vm1, %v541_v18, %v542_v62  ;;  %v557_v24 = vrot.slane %v3010_v13, 2 }
  0x3b   : > { %v559_v17 = vrot.slane %v3019_v21, 2  ;;  %v551_v43 = vrot.slane %v2993_v3, 2  ;;  %v545_v47 = vsel %vm540_vm1, %v542_v62, %v544_v44  ;;  %v552_v16 = vrot.slane %v2995_v4, 2 }
  0x3c   : > { %4513 = vst [vmem:[#allocation35_spill] sm:$0xff] %v3262_v50  ;;  %2364 = vrot.lane.b32.xlu0 %v3262_v50, %s2947_s18  ;;  %v554_v2 = vrot.slane %v2997_v5, 2  ;;  %v566_v25 = vrot.slane %v3044_v40, 2  ;;  %v2373_v52 = vpack.i.bf16 %v545_v47, %v543_v58  ;;  %v558_v18 = vsel %vm540_vm1, %v556_v1, %v557_v24 }
  0x3d   : > { %v560_v34 = vsel %vm540_vm1, %v557_v24, %v559_v17  ;;  %v567_v0 = vrot.slane %v3046_v41, 2  ;;  %v553_v62 = vsel %vm540_vm1, %v551_v43, %v552_v16  ;;  %v569_v35 = vrot.slane %v3052_v45, 2 }
  0x3e   : > { %2379 = vrot.lane.b32.xlu1 %v3264_v15, %s2948_s19  ;;  %v3283_v50 = vpack.i.bf16 %v560_v34, %v558_v18  ;;  %v555_v44 = vsel %vm540_vm1, %v552_v16, %v554_v2  ;;  %v561_v58 = vrot.slane %v3054_v46, 2  ;;  %v562_v24 = vrot.slane %v3064_v54, 2 }
  0x3f   : > { %v3288_v49 = vpack.i.bf16 %v555_v44, %v553_v62  ;;  %v568_v1 = vsel %vm540_vm1, %v566_v25, %v567_v0  ;;  %v570_v17 = vsel %vm540_vm1, %v567_v0, %v569_v35  ;;  %v564_v47 = vrot.slane %v3066_v55, 2  ;;  %v2923_v62 = vld [vmem:[%s4408_s1 + $0x40] sm:$0xff]  }
  0x40   : > { %2374 = vrot.lane.b32.xlu0 %v2373_v52, %s2948_s19  ;;  %v576_v43 = vrot.slane %v3075_v61, 2  ;;  %v577_v16 = vrot.slane %v3086_v9, 2  ;;  %v563_v2 = vsel %vm540_vm1, %v561_v58, %v562_v24  ;;  %v579_v18 = vrot.slane %v3088_v14, 2  ;;  %2149 = vmatprep.subr.bf16.mxu0 %v2923_v62 }
  0x41   : > { %v571_v25 = vrot.slane %v3096_v19, 2  ;;  %v3303_v34 = vpack.i.bf16 %v570_v17, %v568_v1  ;;  %v565_v52 = vsel %vm540_vm1, %v562_v24, %v564_v47  ;;  %v572_v35 = vrot.slane %v3098_v20, 2  ;;  %v2924_v1 = vld [vmem:[%s4408_s1] sm:$0xff]   ;;  %2261 = vmatprep.subr.bf16.mxu1 %v2923_v62 }
  0x42   : > { %2389 = vrot.lane.b32.xlu1 %v3283_v50, %s2948_s19  ;;  %v574_v0 = vrot.slane %v3107_v26, 2  ;;  %v578_v44 = vsel %vm540_vm1, %v576_v43, %v577_v16  ;;  %v580_v58 = vsel %vm540_vm1, %v577_v16, %v579_v18  ;;  %v586_v14 = vrot.slane %v3112_v32, 2  ;;  %2150 = vmatpush3.bf16.msra.mxu0 %v2924_v1 }
  0x43   : > { %v587_v9 = vrot.slane %v3114_v33, 2  ;;  %v3320_v24 = vpack.i.bf16 %v565_v52, %v563_v2  ;;  %v589_v17 = vrot.slane %v3119_v39, 2  ;;  %v573_v47 = vsel %vm540_vm1, %v571_v25, %v572_v35  ;;  %v2925_v25 = vld [vmem:[%s4408_s1 + $0x48] sm:$0xff]   ;;  %2269 = vmatpush3.bf16.msra.mxu1 %v2924_v1 }
  0x44   : > { %2384 = vrot.lane.b32.xlu0 %v3288_v49, %s2948_s19  ;;  %v575_v43 = vsel %vm540_vm1, %v572_v35, %v574_v0  ;;  %v581_v16 = vrot.slane %v3132_v53, 2  ;;  %v582_v18 = vrot.slane %v3134_v56, 2  ;;  %v3329_v33 = vpack.i.bf16 %v580_v58, %v578_v44  ;;  %v2926_v44 = vld [vmem:[%s4408_s1 + $0x8] sm:$0xff]   ;;  %2151 = vmatprep.subr.bf16.mxu0 %v2925_v25 }
  0x45   : > { %v584_v2 = vrot.slane %v3141_v59, 2  ;;  %v596_v52 = vrot.slane %v3143_v60, 2  ;;  %v597_v39 = vrot.slane %v3149_v7, 2  ;;  %v588_v35 = vsel %vm540_vm1, %v586_v14, %v587_v9  ;;  %2262 = vmatprep.subr.bf16.mxu1 %v2925_v25 }
  0x46   : > { %2399 = vrot.lane.b32.xlu1 %v3303_v34, %s2948_s19  ;;  %4514 = vst [vmem:[#allocation36_spill] sm:$0xff] %v3329_v33  ;;  %v590_v0 = vsel %vm540_vm1, %v587_v9, %v589_v17  ;;  %v599_v62 = vrot.slane %v3158_v22, 2  ;;  %v3345_v58 = vpack.i.bf16 %v575_v43, %v573_v47  ;;  %v591_v32 = vrot.slane %v3163_v30, 2  ;;  %2152 = vmatpush3.bf16.msra.mxu0 %v2926_v44  ;;  %v2927_v43 = vld [vmem:[%s4408_s1 + $0x50] sm:$0xff]  }
  0x47   : > { %v592_v61 = vrot.slane %v3165_v31, 2  ;;  %v583_v14 = vsel %vm540_vm1, %v581_v16, %v582_v18  ;;  %v585_v9 = vsel %vm540_vm1, %v582_v18, %v584_v2  ;;  %v594_v1 = vrot.slane %v3172_v42, 2  ;;  %2270 = vmatpush3.bf16.msra.mxu1 %v2926_v44  ;;  %2153 = vmatprep.subr.bf16.mxu0 %v2927_v43 }
  0x48   : > { %2394 = vrot.lane.b32.xlu0 %v3320_v24, %s2948_s19  ;;  %v3354_v17 = vpack.i.bf16 %v590_v0, %v588_v35  ;;  %v598_v47 = vsel %vm540_vm1, %v596_v52, %v597_v39  ;;  %v600_v16 = vsel %vm540_vm1, %v597_v39, %v599_v62  ;;  %v728_v18 = vrot.slane %v2993_v3, 3  ;;  %v2928_v35 = vld [vmem:[%s4408_s1 + $0x10] sm:$0xff]   ;;  %2263 = vmatprep.subr.bf16.mxu1 %v2927_v43 }
  0x49   : > { %v729_v2 = vrot.slane %v2995_v4, 3  ;;  %v731_v25 = vrot.slane %v2997_v5, 3  ;;  %v3369_v52 = vpack.i.bf16 %v585_v9, %v583_v14  ;;  %v593_v0 = vsel %vm540_vm1, %v591_v32, %v592_v61  ;;  %v2929_v32 = vld [vmem:[%s4408_s1 + $0x58] sm:$0xff]  }
  0x4a   : > { %2409 = vrot.lane.b32.xlu1 %v3329_v33, %s2948_s19  ;;  %v595_v39 = vsel %vm540_vm1, %v592_v61, %v594_v1  ;;  %v601_v62 = vrot.slane %v3196_v28, 2  ;;  %v602_v44 = vrot.slane %v3201_v36, 2  ;;  %v604_v5 = vrot.slane %v3208_v51, 2  ;;  %2154 = vmatpush3.bf16.msra.mxu0 %v2928_v35  ;;  %v2930_v9 = vld [vmem:[%s4408_s1 + $0x18] sm:$0xff]  }
  0x4b   : > { %v3378_v33 = vpack.i.bf16 %v600_v16, %v598_v47  ;;  %v730_v14 = vsel %vm717_vm2, %v728_v18, %v729_v2  ;;  %v732_v61 = vsel %vm717_vm2, %v729_v2, %v731_v25  ;;  %2271 = vmatpush3.bf16.msra.mxu1 %v2928_v35  ;;  %v3390_v1 = vpack.i.bf16 %v595_v39, %v593_v0  ;;  %v2931_v35 = vld [vmem:[%s4408_s1 + $0x60] sm:$0xff]  }
  0x4c   : > { %2404 = vrot.lane.b32.xlu0 %v3345_v58, %s2948_s19  ;;  %v718_v47 = vrot.slane %v2999_v6, 3  ;;  %2155 = vmatprep.subr.bf16.mxu0 %v2929_v32  ;;  %v603_v43 = vsel %vm540_vm1, %v601_v62, %v602_v44  ;;  %v605_v16 = vsel %vm540_vm1, %v602_v44, %v604_v5  ;;  %v719_v18 = vrot.slane %v3004_v10, 3  ;;  %v2932_v0 = vld [vmem:[%s4408_s1 + $0x20] sm:$0xff]   ;;  %v2933_v5 = vld [vmem:[%s4408_s1 + $0x68] sm:$0xff]  }
  0x4d   : > { %v721_v2 = vrot.slane %v3006_v11, 3  ;;  %2264 = vmatprep.subr.bf16.mxu1 %v2929_v32  ;;  %v3399_v25 = vpack.i.bf16 %v732_v61, %v730_v14  ;;  %v3409_v11 = vpack.i.bf16 %v605_v16, %v603_v43  ;;  %v2448_v44 = vpack.i.bf16 %v3010_v13, %v3008_v12  ;;  %v2934_v32 = vld [vmem:[%s4408_s1 + $0x28] sm:$0xff]   ;;  %v2935_v61 = vld [vmem:[%s4408_s1 + $0x70] sm:$0xff]  }
  0x4e   : > { %2419 = vrot.lane.b32.xlu1 %v3354_v17, %s2948_s19  ;;  %2156 = vmatpush3.bf16.msra.mxu0 %v2930_v9  ;;  %v720_v39 = vsel %vm717_vm2, %v718_v47, %v719_v18  ;;  %v734_v47 = vrot.slane %v3010_v13, 3  ;;  %v736_v43 = vrot.slane %v3019_v21, 3  ;;  %v2936_v16 = vld [vmem:[%s4408_s1 + $0x30] sm:$0xff]   ;;  %v2937_v21 = vld [vmem:[%s4408_s1 + $0x78] sm:$0xff]  }
  0x4f   : > { %2272 = vmatpush3.bf16.msra.mxu1 %v2930_v9  ;;  %v722_v62 = vsel %vm717_vm2, %v719_v18, %v721_v2  ;;  %2157 = vmatprep.subr.bf16.mxu0 %v2931_v35  ;;  %v733_v9 = vrot.slane %v3008_v12, 3  ;;  %v2453_v18 = vpack.i.bf16 %v3037_v37, %v3026_v27  ;;  %v723_v2 = vrot.slane %v3026_v27, 3 }
  0x50   : > { %2414 = vrot.lane.b32.xlu0 %v3369_v52, %s2948_s19  ;;  %2265 = vmatprep.subr.bf16.mxu1 %v2931_v35  ;;  %v2443_v14 = vpack.i.bf16 %v722_v62, %v720_v39  ;;  %v724_v39 = vrot.slane %v3037_v37, 3  ;;  %v2938_v62 = vld [vmem:[%s4408_s1 + $0x38] sm:$0xff]  }
  0x51   : > { %v735_v35 = vsel %vm717_vm2, %v733_v9, %v734_v47 }
  0x52   : > { %2429 = vrot.lane.b32.xlu1 %v3378_v33, %s2948_s19  ;;  %2158 = vmatpush3.bf16.msra.mxu0 %v2932_v0 }
  0x53   : > { %2273 = vmatpush3.bf16.msra.mxu1 %v2932_v0  ;;  %2159 = vmatprep.subr.bf16.mxu0 %v2933_v5  ;;  %v737_v0 = vsel %vm717_vm2, %v734_v47, %v736_v43 }
  0x54   : > { %2424 = vrot.lane.b32.xlu0 %v3390_v1, %s2948_s19  ;;  %2266 = vmatprep.subr.bf16.mxu1 %v2933_v5  ;;  %v725_v5 = vsel %vm717_vm2, %v723_v2, %v724_v39 }
  0x56   : > { %2439 = vrot.lane.b32.xlu1 %v3399_v25, %s2949_s15  ;;  %2160 = vmatpush3.bf16.msra.mxu0 %v2934_v32 }
  0x57   : > { %2161 = vmatprep.subr.bf16.mxu0 %v2935_v61  ;;  %2274 = vmatpush3.bf16.msra.mxu1 %v2934_v32 }
  0x58   : > { %2434 = vrot.lane.b32.xlu0 %v3409_v11, %s2948_s19  ;;  %2267 = vmatprep.subr.bf16.mxu1 %v2935_v61  ;;  %v741_v61 = vrot.slane %v3066_v55, 3  ;;  %v743_v55 = vrot.slane %v3044_v40, 3 }
  0x5a   : > { %2449 = vrot.lane.b32.xlu1 %v2448_v44, %s2950_s23  ;;  %2162 = vmatpush3.bf16.msra.mxu0 %v2936_v16  ;;  %v2478_v44 = vpack.i.bf16 %v737_v0, %v735_v35 }
  0x5b   : > { %2163 = vmatprep.subr.bf16.mxu0 %v2937_v21  ;;  %2275 = vmatpush3.bf16.msra.mxu1 %v2936_v16  ;;  %v744_v16 = vrot.slane %v3046_v41, 3 }
  0x5c   : > { %2444 = vrot.lane.b32.xlu0 %v2443_v14, %s2949_s15  ;;  %2268 = vmatprep.subr.bf16.mxu1 %v2937_v21  ;;  %v739_v14 = vrot.slane %v3064_v54, 3  ;;  %v749_v21 = vrot.slane %v3098_v20, 3 }
  0x5e   : > { %2459 = vrot.lane.b32.xlu1 %v3057_v48, %s2951_s28  ;;  %v726_v48 = vrot.slane %v3041_v38, 3  ;;  %2164 = vmatpush3.bf16.msra.mxu0 %v2938_v62  ;;  %v742_v47 = vsel %vm717_vm2, %v739_v14, %v741_v61 }
  0x5f   : > { %2276 = vmatpush3.bf16.msra.mxu1 %v2938_v62  ;;  %v761_v62 = vrot.slane %v3141_v59, 3 }
  0x60   : > { %2454 = vrot.lane.b32.xlu0 %v2453_v18, %s2950_s23  ;;  %v727_v32 = vsel %vm717_vm2, %v724_v39, %v726_v48  ;;  %v745_v18 = vsel %vm717_vm2, %v743_v55, %v744_v16  ;;  %v759_v39 = vrot.slane %v3134_v56, 3 }
  0x61   : > { %v2483_v38 = vpack.i.bf16 %v727_v32, %v725_v5 }
  0x62   : > { %2469 = vrot.lane.b32.xlu1 %v3283_v50, %s2952_s6  ;;  %v2498_v50 = vpack.i.bf16 %v3064_v54, %v3054_v46  ;;  %v762_v59 = vsel %vm717_vm2, %v759_v39, %v761_v62 }
  0x64   : > { %2464 = vrot.lane.b32.xlu0 %v3078_v63, %s2951_s28  ;;  %v738_v63 = vrot.slane %v3054_v46, 3 }
  0x66   : > { %2479 = vrot.lane.b32.xlu1 %v2478_v44, %s2953_s7  ;;  %v740_v9 = vsel %vm717_vm2, %v738_v63, %v739_v14 }
  0x67   : > { %v2528_v43 = vpack.i.bf16 %v742_v47, %v740_v9  ;;  %v4515_v47 = vld [vmem:[#allocation2_spill] sm:$0xff] }
  0x68   : > { %2474 = vrot.lane.b32.xlu0 %v3264_v15, %s2952_s6  ;;  %v2503_v15 = vpack.i.bf16 %v2995_v4, %v2993_v3 }
  0x6a   : > { %2489 = vrot.lane.b32.xlu1 %v2478_v44, %s2949_s15  ;;  %v771_v44 = vrot.slane %v3172_v42, 3 }
  0x6c   : > { %2484 = vrot.lane.b32.xlu0 %v2483_v38, %s2953_s7 }
  0x6e   : > { %2499 = vrot.lane.b32.xlu1 %v2498_v50, %s2950_s23 }
  0x70   : > { %2494 = vrot.lane.b32.xlu0 %v2483_v38, %s2949_s15 }
  0x72   : > { %2509 = vrot.lane.b32.xlu1 %v3103_v23, %s2951_s28  ;;  %v746_v23 = vrot.slane %v3052_v45, 3  ;;  %v2568_v45 = vpack.i.bf16 %v3098_v20, %v3096_v19 }
  0x74   : > { %2504 = vrot.lane.b32.xlu0 %v2503_v15, %s2950_s23 }
  0x76   : > { %2519 = vrot.lane.b32.xlu1 %v3320_v24, %s2952_s6  ;;  %v747_v24 = vsel %vm717_vm2, %v744_v16, %v746_v23 }
  0x77   : > { %v2558_v2 = vpack.i.bf16 %v747_v24, %v745_v18  ;;  %v4518_v18 = vld [vmem:[#allocation7_spill] sm:$0xff]  ;;  %v4519_v24 = vld [vmem:[#allocation8_spill] sm:$0xff] }
  0x78   : > { %2514 = vrot.lane.b32.xlu0 %v3029_v29, %s2951_s28  ;;  %v2543_v29 = vpack.i.bf16 %v3046_v41, %v3044_v40 }
  0x7a   : > { %2529 = vrot.lane.b32.xlu1 %v2528_v43, %s2953_s7 }
  0x7c   : > { %2524 = vrot.lane.b32.xlu0 %v3288_v49, %s2952_s6  ;;  %v748_v49 = vrot.slane %v3096_v19, 3  ;;  %v251_v19 = vld [vmem:[%s2988_s17 + $0xc8] sm:$0x3] }
  0x7e   : > { %2539 = vrot.lane.b32.xlu1 %v2528_v43, %s2949_s15  ;;  %v750_v35 = vsel %vm717_vm2, %v748_v49, %v749_v21  ;;  %v4516_v43 = vld [vmem:[#allocation3_spill] sm:$0xff]  ;;  %v753_v49 = vrot.slane %v4515_v47, 3 }
  0x7f   : > { %v2603_v55 = vpack.i.bf16 %v4516_v43, %v4515_v47 }
  0x80   : > { %2534 = vrot.lane.b32.xlu0 %v3399_v25, %s2953_s7  ;;  %v751_v25 = vrot.slane %v3107_v26, 3  ;;  %v768_v26 = vrot.slane %v3163_v30, 3 }
  0x82   : > { %2549 = vrot.lane.b32.xlu1 %v3084_v8, %s2951_s28  ;;  %v758_v8 = vrot.slane %v3132_v53, 3  ;;  %v752_v0 = vsel %vm717_vm2, %v749_v21, %v751_v25  ;;  %v754_v21 = vrot.slane %v4516_v43, 3  ;;  %v4522_v25 = vld [vmem:[#allocation4_spill] sm:$0xff] }
  0x83   : > { %v2588_v32 = vpack.i.bf16 %v752_v0, %v750_v35  ;;  %v4523_v0 = vld [vmem:[#allocation15_spill] sm:$0xff] }
  0x84   : > { %2544 = vrot.lane.b32.xlu0 %v2543_v29, %s2950_s23  ;;  %v760_v38 = vsel %vm717_vm2, %v758_v8, %v759_v39  ;;  %v2613_v29 = vpack.i.bf16 %v4519_v24, %v4518_v18  ;;  %v756_v8 = vrot.slane %v4522_v25, 3  ;;  %v763_v39 = vrot.slane %v4518_v18, 3  ;;  %v4529_v25 = vld [vmem:[#allocation36_spill] sm:$0xff] }
  0x85   : > { %v3530_v42 = vpack.i.bf16 %v762_v59, %v760_v38  ;;  %v4526_v59 = vld [vmem:[#allocation22_spill] sm:$0xff] }
  0x86   : > { %2559 = vrot.lane.b32.xlu1 %v2558_v2, %s2953_s7 }
  0x88   : > { %2554 = vrot.lane.b32.xlu0 %v3303_v34, %s2952_s6  ;;  %v769_v34 = vrot.slane %v3165_v31, 3 }
  0x8a   : > { %2569 = vrot.lane.b32.xlu1 %v2568_v45, %s2950_s23  ;;  %v770_v63 = vsel %vm717_vm2, %v768_v26, %v769_v34  ;;  %v772_v14 = vsel %vm717_vm2, %v769_v34, %v771_v44  ;;  %v755_v26 = vsel %vm717_vm2, %v753_v49, %v754_v21  ;;  %v757_v34 = vsel %vm717_vm2, %v754_v21, %v756_v8 }
  0x8b   : > { %v3535_v61 = vpack.i.bf16 %v772_v14, %v770_v63  ;;  %v764_v44 = vrot.slane %v4519_v24, 3  ;;  %v773_v14 = vrot.slane %v3143_v60, 3 }
  0x8c   : > { %2564 = vrot.lane.b32.xlu0 %v2558_v2, %s2949_s15  ;;  %v4520_v2 = vld [vmem:[#allocation10_spill] sm:$0xff] }
  0x8d   : > { %v765_v49 = vsel %vm717_vm2, %v763_v39, %v764_v44 }
  0x8e   : > { %v3512_v48 = vpop.permute.xlu1 %2304  ;;  %2579 = vrot.lane.b32.xlu1 %v3345_v58, %s2952_s6  ;;  %v3519_v5 = vpop.permute.xlu0 %2294 }
  0x90   : > { %2574 = vrot.lane.b32.xlu0 %v3138_v57, %s2951_s28  ;;  %v2608_v57 = vpack.i.bf16 %v3149_v7, %v3143_v60 }
  0x92   : > { %v3525_v50 = vpop.permute.xlu1 %2309  ;;  %2589 = vrot.lane.b32.xlu1 %v2588_v32, %s2949_s15 }
  0x94   : > { %2584 = vrot.lane.b32.xlu0 %v2588_v32, %s2953_s7  ;;  %v3533_v58 = vpop.permute.xlu0 %2299  ;;  %v4525_v32 = vld [vmem:[#allocation9_spill] sm:$0xff] }
  0x95   : > { %v766_v38 = vrot.slane %v4525_v32, 3 }
  0x96   : > { %v3537_v15 = vpop.permute.xlu1 %2319  ;;  %2599 = vrot.lane.b32.xlu1 %v3530_v42, %s2949_s15 }
  0x97   : > { %v767_v21 = vsel %vm717_vm2, %v764_v44, %v766_v38  ;;  %v2678_v38 = vpack.i.bf16 %v3134_v56, %v3132_v53  ;;  %v2147_v56 = vld [vmem:[%s2988_s17 + $0xc0] sm:$0xff]  }
  0x98   : > { %2594 = vrot.lane.b32.xlu0 %v3535_v61, %s2949_s15  ;;  %v3545_v9 = vpop.permute.xlu0 %2314 }
  0x9a   : > { %2609 = vrot.lane.b32.xlu1 %v2608_v57, %s2950_s23  ;;  %v3550_v16 = vpop.permute.xlu1 %2329  ;;  %v774_v57 = vrot.slane %v3149_v7, 3 }
  0x9b   : > { %4517 = vst [vmem:[#allocation37_spill] sm:$0xff] %v3550_v16  ;;  %v4549_v16 = vld [vmem:[#allocation27_spill] sm:$0xff] }
  0x9c   : > { %2604 = vrot.lane.b32.xlu0 %v2603_v55, %s2950_s23  ;;  %v3553_v23 = vpop.permute.xlu0 %2324  ;;  %v776_v55 = vrot.slane %v3158_v22, 3  ;;  %v775_v8 = vsel %vm717_vm2, %v773_v14, %v774_v57  ;;  %v2658_v22 = vpack.i.bf16 %v767_v21, %v765_v49  ;;  %v2688_v14 = vpack.i.bf16 %v3165_v31, %v3163_v30  ;;  %v4550_v31 = vld [vmem:[#allocation29_spill] sm:$0xff] }
  0x9d   : > { %v617_v30 = vrot.slane %v4549_v16, 2  ;;  %v619_v53 = vrot.slane %v4550_v31, 2 }
  0x9e   : > { %2619 = vrot.lane.b32.xlu1 %v4520_v2, %s2951_s28  ;;  %v3559_v45 = vpop.permute.xlu1 %2339 }
  0x9f   : > { %4521 = vst [vmem:[#allocation10_spill] sm:$0xff] %v3559_v45 }
  0xa0   : > { %2614 = vrot.lane.b32.xlu0 %v2613_v29, %s2950_s23  ;;  %v3565_v35 = vpop.permute.xlu0 %2334  ;;  %v2648_v29 = vpack.i.bf16 %v757_v34, %v755_v26 }
  0xa2   : > { %2629 = vrot.lane.b32.xlu1 %v4523_v0, %s2951_s28  ;;  %v777_v0 = vsel %vm717_vm2, %v774_v57, %v776_v55  ;;  %v2683_v55 = vpack.i.bf16 %v3201_v36, %v3196_v28 }
  0xa3   : > { %v3570_v62 = vpop.permute.xlu1 %2349  ;;  %v2653_v39 = vpack.i.bf16 %v777_v0, %v775_v8  ;;  %v778_v8 = vrot.slane %v3196_v28, 3  ;;  %v779_v0 = vrot.slane %v3201_v36, 3 }
  0xa4   : > { %4524 = vst [vmem:[#allocation4_spill] sm:$0xff] %v3570_v62  ;;  %2624 = vrot.lane.b32.xlu0 %v4526_v59, %s2951_s28  ;;  %v4548_v62 = vld [vmem:[#allocation26_spill] sm:$0xff] }
  0xa5   : > { %v3578_v63 = vpop.permute.xlu0 %2344  ;;  %v616_v45 = vrot.slane %v4548_v62, 2 }
  0xa6   : > { %4527 = vst [vmem:[#allocation15_spill] sm:$0xff] %v3578_v63  ;;  %2639 = vrot.lane.b32.xlu1 %v3378_v33, %s2952_s6 }
  0xa7   : > { %v3585_v2 = vpop.permute.xlu1 %2359 }
  0xa8   : > { %4528 = vst [vmem:[#allocation9_spill] sm:$0xff] %v3585_v2  ;;  %2634 = vrot.lane.b32.xlu0 %v4529_v25, %s2952_s6  ;;  %v4535_v25 = vld [vmem:[#allocation33_spill] sm:$0xff] }
  0xa9   : > { %v3593_v32 = vpop.permute.xlu0 %2354 }
  0xaa   : > { %4530 = vst [vmem:[#allocation22_spill] sm:$0xff] %v3593_v32  ;;  %2649 = vrot.lane.b32.xlu1 %v2648_v29, %s2953_s7 }
  0xac   : > { %2644 = vrot.lane.b32.xlu0 %v3354_v17, %s2952_s6  ;;  %v3598_v33 = vpop.permute.xlu1 %2369 }
  0xad   : > { %4531 = vst [vmem:[#allocation36_spill] sm:$0xff] %v3598_v33  ;;  %v4537_v33 = vld [vmem:[#allocation20_spill] sm:$0xff] }
  0xae   : > { %v3600_v26 = vpop.permute.xlu0 %2364  ;;  %2659 = vrot.lane.b32.xlu1 %v2658_v22, %s2953_s7  ;;  %v784_v18 = vrot.slane %v4537_v33, 3 }
  0xaf   : > { %4532 = vst [vmem:[#allocation38_spill] sm:$0xff] %v3600_v26  ;;  %v607_v26 = vrot.slane %v4537_v33, 2 }
  0xb0   : > { %2654 = vrot.lane.b32.xlu0 %v2653_v39, %s2953_s7  ;;  %v3604_v34 = vpop.permute.xlu1 %2379 }
  0xb2   : > { %v3606_v44 = vpop.permute.xlu0 %2374  ;;  %2669 = vrot.lane.b32.xlu1 %v2653_v39, %s2949_s15  ;;  %v4536_v39 = vld [vmem:[#allocation18_spill] sm:$0xff] }
  0xb3   : > { %v783_v7 = vrot.slane %v4536_v39, 3 }
  0xb4   : > { %2664 = vrot.lane.b32.xlu0 %v2648_v29, %s2949_s15  ;;  %v3612_v17 = vpop.permute.xlu1 %2389 }
  0xb5   : > { %v785_v43 = vsel %vm717_vm2, %v783_v7, %v784_v18  ;;  %v796_v7 = vrot.slane %v4550_v31, 3 }
  0xb6   : > { %v3614_v59 = vpop.permute.xlu0 %2384  ;;  %2679 = vrot.lane.b32.xlu1 %v2678_v38, %s2950_s23  ;;  %v606_v38 = vrot.slane %v4536_v39, 2 }
  0xb8   : > { %2674 = vrot.lane.b32.xlu0 %v2658_v22, %s2949_s15  ;;  %v3620_v57 = vpop.permute.xlu1 %2399  ;;  %v781_v22 = vrot.slane %v3208_v51, 3  ;;  %v608_v28 = vsel %vm540_vm1, %v606_v38, %v607_v26  ;;  %v4545_v38 = vld [vmem:[#allocation31_spill] sm:$0xff] }
  0xb9   : > { %v789_v47 = vrot.slane %v4545_v38, 3 }
  0xba   : > { %v3624_v49 = vpop.permute.xlu0 %2394  ;;  %2689 = vrot.lane.b32.xlu1 %v2688_v14, %s2950_s23  ;;  %v4538_v14 = vld [vmem:[#allocation21_spill] sm:$0xff]  ;;  %v782_v51 = vsel %vm717_vm2, %v779_v0, %v781_v22 }
  0xbb   : > { %v609_v2 = vrot.slane %v4538_v14, 2 }
  0xbc   : > { %2684 = vrot.lane.b32.xlu0 %v2683_v55, %s2950_s23  ;;  %v3628_v29 = vpop.permute.xlu1 %2409  ;;  %v4539_v55 = vld [vmem:[#allocation19_spill] sm:$0xff] }
  0xbd   : > { %4533 = vst [vmem:[#allocation39_spill] sm:$0xff] %v3628_v29  ;;  %v610_v36 = vsel %vm540_vm1, %v607_v26, %v609_v2  ;;  %v612_v2 = vrot.slane %v4545_v38, 2  ;;  %v4546_v26 = vld [vmem:[#allocation32_spill] sm:$0xff] }
  0xbe   : > { %v3630_v21 = vpop.permute.xlu0 %2404  ;;  %2699 = vrot.lane.b32.xlu1 %v4535_v25, %s2951_s28  ;;  %v780_v25 = vsel %vm717_vm2, %v778_v8, %v779_v0  ;;  %v786_v8 = vrot.slane %v4538_v14, 3  ;;  %v4544_v0 = vld [vmem:[#allocation30_spill] sm:$0xff]  ;;  %v614_v24 = vrot.slane %v4546_v26, 2  ;;  %v791_v14 = vrot.slane %v4546_v26, 3 }
  0xbf   : > { %4534 = vst [vmem:[#allocation40_spill] sm:$0xff] %v3630_v21  ;;  %v611_v22 = vrot.slane %v4544_v0, 2  ;;  %v788_v29 = vrot.slane %v4544_v0, 3 }
  0xc0   : > { %2694 = vrot.lane.b32.xlu0 %v4539_v55, %s2951_s28  ;;  %v3642_v32 = vpop.permute.xlu1 %2419  ;;  %v4542_v55 = vld [vmem:[#allocation25_spill] sm:$0xff] }
  0xc1   : > { %4540 = vst [vmem:[#allocation33_spill] sm:$0xff] %v3642_v32  ;;  %v790_v26 = vsel %vm717_vm2, %v788_v29, %v789_v47  ;;  %v620_v29 = vsel %vm540_vm1, %v617_v30, %v619_v53 }
  0xc2   : > { %v3644_v60 = vpop.permute.xlu0 %2414  ;;  %2709 = vrot.lane.b32.xlu1 %v3369_v52, %s2952_s6  ;;  %v2728_v52 = vpack.i.bf16 %v782_v51, %v780_v25  ;;  %v613_v25 = vsel %vm540_vm1, %v611_v22, %v612_v2  ;;  %v615_v51 = vsel %vm540_vm1, %v612_v2, %v614_v24  ;;  %v618_v24 = vsel %vm540_vm1, %v616_v45, %v617_v30 }
  0xc3   : > { %4541 = vst [vmem:[#allocation20_spill] sm:$0xff] %v3644_v60  ;;  %v3698_v60 = vunpack.c.l.bf16 %v251_v19  ;;  %v3712_v2 = vpack.i.bf16 %v615_v51, %v613_v25  ;;  %v3719_v53 = vpack.i.bf16 %v620_v29, %v618_v24  ;;  %v2307_v25 = vunpack.i.h.bf16 %v3512_v48 }
  0xc4   : > { %2704 = vrot.lane.b32.xlu0 %v4542_v55, %s2951_s28  ;;  %v3656_v32 = vpop.permute.xlu1 %2429  ;;  %v2297_v24 = vunpack.i.h.bf16 %v3519_v5  ;;  %v2296_v29 = vunpack.i.l.bf16 %v3519_v5  ;;  %v2376_v5 = vunpack.i.l.bf16 %v3606_v44 }
  0xc5   : > { %4543 = vst [vmem:[#allocation21_spill] sm:$0xff] %v3656_v32  ;;  %v3670_v32 = vpack.i.bf16 %v610_v36, %v608_v28  ;;  %v787_v28 = vsel %vm717_vm2, %v784_v18, %v786_v8  ;;  %v793_v36 = vrot.slane %v4548_v62, 3  ;;  %v3694_v18 = vunpack.c.l.bf16 %v2147_v56 }
  0xc6   : > { %v3666_v55 = vpop.permute.xlu0 %2424  ;;  %2719 = vrot.lane.b32.xlu1 %v3390_v1, %s2952_s6  ;;  %v794_v1 = vrot.slane %v4549_v16, 3  ;;  %v3696_v8 = vunpack.c.h.bf16 %v2147_v56  ;;  %v3700_v31 = vpack.i.bf16 %v787_v28, %v785_v43  ;;  %v996_v28 = vrot.slane %v3698_v60, 1 }
  0xc7   : > { %4547 = vst [vmem:[#allocation19_spill] sm:$0xff] %v3666_v55  ;;  %v993_v30 = vrot.slane %v3694_v18, 1  ;;  %v2387_v56 = vunpack.i.h.bf16 %v3614_v59 }
  0xc8   : > { %2714 = vrot.lane.b32.xlu0 %v3409_v11, %s2952_s6  ;;  %v3681_v55 = vpop.permute.xlu1 %2439  ;;  %v792_v11 = vsel %vm717_vm2, %v789_v47, %v791_v14  ;;  %v795_v19 = vsel %vm717_vm2, %v793_v36, %v794_v1  ;;  %v797_v43 = vsel %vm717_vm2, %v794_v1, %v796_v7  ;;  %v1094_v1 = vrot.slane %v3694_v18, 2 }
  0xc9   : > { %v3714_v14 = vpack.i.bf16 %v792_v11, %v790_v26  ;;  %v3724_v36 = vpack.i.bf16 %v797_v43, %v795_v19  ;;  %v4477_v7 = vrot.slane %v3696_v8, 2  ;;  %v2442_v19 = vunpack.i.h.bf16 %v3681_v55 }
  0xca   : > { %v3690_v20 = vpop.permute.xlu0 %2434  ;;  %2729 = vrot.lane.b32.xlu1 %v2728_v52, %s2953_s7  ;;  %v2441_v43 = vunpack.i.l.bf16 %v3681_v55  ;;  %v1418_v55 = vsel %vm1416_vm3, %v3004_v10, %v2297_v24 }
  0xcb   : > { %4551 = vst [vmem:[#allocation25_spill] sm:$0xff] %v3690_v20 }
  0xcc   : > { %2724 = vrot.lane.b32.xlu0 %v3530_v42, %s2953_s7  ;;  %v2450_v47 = vpop.permute.xlu1 %2449  ;;  %v994_v42 = vrot.slane %v3696_v8, 1 }
  0xcd   : > { %v2452_v20 = vunpack.i.h.bf16 %v2450_v47 }
  0xce   : > { %v3716_v45 = vpop.permute.xlu0 %2444  ;;  %2739 = vrot.lane.b32.xlu1 %v2728_v52, %s2949_s15  ;;  %v2306_v52 = vunpack.i.l.bf16 %v3512_v48  ;;  %v2386_v48 = vunpack.i.l.bf16 %v3614_v59  ;;  %v3743_v26 = vsel %vm363_vm0, %v993_v30, %v994_v42  ;;  %v3746_v11 = vsel %vm363_vm0, %v994_v42, %v996_v28 }
  0xcf   : > { %v3754_v59 = vsel %vm540_vm1, %v1094_v1, %v4477_v7  ;;  %v2451_v42 = vunpack.i.l.bf16 %v2450_v47  ;;  %v4553_v28 = vpack.i.bf16 %v4537_v33, %v4536_v39  ;;  %v1417_v1 = vsel %vm1416_vm3, %v2999_v6, %v2296_v29 }
  0xd0   : > { %2734 = vrot.lane.b32.xlu0 %v3535_v61, %s2953_s7  ;;  %v2460_v51 = vpop.permute.xlu1 %2459  ;;  %v4552_v61 = vld [vmem:[#allocation28_spill] sm:$0xff]  ;;  %v1421_v30 = vsel %vm1416_vm3, %v2993_v3, %v2306_v52  ;;  %v1450_v39 = vsel %vm1449_vm4, %v1417_v1, %v2376_v5  ;;  %v2447_v24 = vunpack.i.h.bf16 %v3716_v45 }
  0xd1   : > { %v2462_v7 = vunpack.i.h.bf16 %v2460_v51  ;;  %v2461_v63 = vunpack.i.l.bf16 %v2460_v51  ;;  %v1454_v3 = vsel %vm1449_vm4, %v1421_v30, %v2386_v48 }
  0xd2   : > { %v2455_v22 = vpop.permute.xlu0 %2454  ;;  %2749 = vrot.lane.b32.xlu1 %v4552_v61, %s2951_s28  ;;  %v1422_v61 = vsel %vm1416_vm3, %v2995_v4, %v2307_v25  ;;  %v1487_v10 = vsel %vm1482_vm5, %v1454_v3, %v2441_v43 }
  0xd3   : > { %v1455_v4 = vsel %vm1449_vm4, %v1422_v61, %v2387_v56  ;;  %v1520_v51 = vsel %vm1515_vm6, %v1487_v10, %v2451_v42  ;;  %v2457_v61 = vunpack.i.h.bf16 %v2455_v22  ;;  %v4554_v10 = vrot.slane %v3698_v60, 2 }
  0xd4   : > { %2744 = vrot.lane.b32.xlu0 %v4553_v28, %s2950_s23  ;;  %v2470_v21 = vpop.permute.xlu1 %2469  ;;  %v2377_v28 = vunpack.i.h.bf16 %v3606_v44  ;;  %v1488_v6 = vsel %vm1482_vm5, %v1455_v4, %v2442_v19  ;;  %v1553_v44 = vsel %vm1548_vm7, %v1520_v51, %v2461_v63  ;;  %v2456_v19 = vunpack.i.l.bf16 %v2455_v22 }
  0xd5   : > { %v2472_v25 = vunpack.i.h.bf16 %v2470_v21  ;;  %v2471_v47 = vunpack.i.l.bf16 %v2470_v21  ;;  %v1521_v56 = vsel %vm1515_vm6, %v1488_v6, %v2452_v20  ;;  %v2446_v21 = vunpack.i.l.bf16 %v3716_v45 }
  0xd6   : > { %v2465_v52 = vpop.permute.xlu0 %2464  ;;  %2759 = vrot.lane.b32.xlu1 %v3700_v31, %s2953_s7  ;;  %v1554_v48 = vsel %vm1548_vm7, %v1521_v56, %v2462_v7  ;;  %v1451_v7 = vsel %vm1449_vm4, %v1418_v55, %v2377_v28  ;;  %v4555_v6 = vrot.slane %v3696_v8, 2  ;;  %v4556_v28 = vrot.slane %v3696_v8, 3  ;;  %v252_v56 = vld [vmem:[%s2988_s17 + $0xcc] sm:$0xff]  }
  0xd7   : > { %v1586_v20 = vsel %vm1581_vm8, %v1553_v44, %v2471_v47  ;;  %v1587_v45 = vsel %vm1581_vm8, %v1554_v48, %v2472_v25  ;;  %v2467_v42 = vunpack.i.h.bf16 %v2465_v52  ;;  %v2466_v1 = vunpack.i.l.bf16 %v2465_v52 }
  0xd8   : > { %2754 = vrot.lane.b32.xlu0 %v3670_v32, %s2952_s6  ;;  %v2480_v29 = vpop.permute.xlu1 %2479  ;;  %v1483_v25 = vsel %vm1482_vm5, %v1450_v39, %v2446_v21  ;;  %v1484_v52 = vsel %vm1482_vm5, %v1451_v7, %v2447_v24  ;;  %v1098_v55 = vsel %vm540_vm1, %v4555_v6, %v4554_v10  ;;  %v4557_v51 = vrot.slane %v3694_v18, 3  ;;  %v4558_v24 = vld [vmem:[#allocation35_spill] sm:$0xff] }
  0xd9   : > { %v2482_v5 = vunpack.i.h.bf16 %v2480_v29  ;;  %v2481_v43 = vunpack.i.l.bf16 %v2480_v29  ;;  %v1516_v29 = vsel %vm1515_vm6, %v1483_v25, %v2456_v19  ;;  %v1517_v44 = vsel %vm1515_vm6, %v1484_v52, %v2457_v61 }
  0xda   : > { %v2475_v30 = vpop.permute.xlu0 %2474  ;;  %2769 = vrot.lane.b32.xlu1 %v3700_v31, %s2949_s15  ;;  %v4559_v21 = vrot.slane %v3698_v60, 3  ;;  %v4560_v48 = vmov %v4556_v28  ;;  %v3829_v7 = vunpack.c.l.bf16 %v252_v56  ;;  %v3831_v25 = vunpack.c.h.bf16 %v252_v56 }
  0xdb   : > { %v1619_v4 = vsel %vm1614_vm9, %v1586_v20, %v2481_v43  ;;  %v1620_v63 = vsel %vm1614_vm9, %v1587_v45, %v2482_v5  ;;  %v2477_v3 = vunpack.i.h.bf16 %v2475_v30  ;;  %v2476_v22 = vunpack.i.l.bf16 %v2475_v30  ;;  %v254_v43 = vld [vmem:[%s2988_s17 + $0xd4] sm:$0x3] }
  0xdc   : > { %2764 = vrot.lane.b32.xlu0 %v3670_v32, %s2948_s19  ;;  %v3793_v31 = vpop.permute.xlu1 %2489  ;;  %v3795_v47 = vpack.c.bf16 %v1620_v63, %v1619_v4  ;;  %v1197_v32 = vsel %vm717_vm2, %v4557_v51, %v4556_v28  ;;  %v1199_v5 = vsel %vm717_vm2, %v4560_v48, %v4559_v21  ;;  %v1549_v30 = vsel %vm1548_vm7, %v1516_v29, %v2466_v1 }
  0xdd   : > { %v1550_v20 = vsel %vm1548_vm7, %v1517_v44, %v2467_v42  ;;  %v1582_v61 = vsel %vm1581_vm8, %v1549_v30, %v2476_v22  ;;  %v4561_v63 = vpack.i.bf16 %v4545_v38, %v4544_v0  ;;  %v3835_v52 = vunpack.c.l.bf16 %v254_v43 }
  0xde   : > { %v2485_v39 = vpop.permute.xlu0 %2484  ;;  %1827 = vmatprep.mubr.bf16.mxu0 %v3795_v47  ;;  %2779 = vrot.lane.b32.xlu1 %v4558_v24, %s2951_s28  ;;  %v1583_v4 = vsel %vm1581_vm8, %v1550_v20, %v2477_v3  ;;  %v2833_v3 = vpack.i.bf16 %v3696_v8, %v3694_v18  ;;  %v3845_v6 = vpack.i.bf16 %v3746_v11, %v3743_v26  ;;  %v2312_v56 = vunpack.i.h.bf16 %v3525_v50 }
  0xdf   : > { %v2487_v19 = vunpack.i.h.bf16 %v2485_v39  ;;  %v2486_v45 = vunpack.i.l.bf16 %v2485_v39  ;;  %v3848_v28 = vpack.i.bf16 %v1098_v55, %v3754_v59  ;;  %v3850_v51 = vpack.i.bf16 %v1199_v5, %v1197_v32 }
  0xe0   : > { %2774 = vrot.lane.b32.xlu0 %v4561_v63, %s2950_s23  ;;  %v2500_v60 = vpop.permute.xlu1 %2499  ;;  %v2311_v29 = vunpack.i.l.bf16 %v3525_v50  ;;  %v2868_v39 = vpack.i.bf16 %v3831_v25, %v3829_v7  ;;  %v1299_v26 = vrot.slane %v3829_v7, 1  ;;  %v2302_v11 = vunpack.i.h.bf16 %v3533_v58 }
  0xe1   : > { %v1615_v1 = vsel %vm1614_vm9, %v1582_v61, %v2486_v45  ;;  %v1616_v42 = vsel %vm1614_vm9, %v1583_v4, %v2487_v19  ;;  %v2301_v59 = vunpack.i.l.bf16 %v3533_v58  ;;  %v1300_v55 = vrot.slane %v3831_v25, 1 }
  0xe2   : > { %v3837_v10 = vpop.permute.xlu0 %2494  ;;  %v1675_v22 = vpack.c.bf16 %v1616_v42, %v1615_v1  ;;  %2789 = vrot.lane.b32.xlu1 %v3714_v14, %s2953_s7  ;;  %v1302_v32 = vrot.slane %v3835_v52, 1  ;;  %v2392_v50 = vunpack.i.h.bf16 %v3612_v17  ;;  %v2391_v24 = vunpack.i.l.bf16 %v3612_v17 }
  0xe3   : > { %v1316_v48 = vrot.slane %v3829_v7, 2  ;;  %v1317_v5 = vrot.slane %v3831_v25, 2  ;;  %v2381_v43 = vunpack.i.l.bf16 %v3604_v34  ;;  %v2492_v58 = vunpack.i.h.bf16 %v3793_v31 }
  0xe4   : > { %2784 = vrot.lane.b32.xlu0 %v3712_v2, %s2952_s6  ;;  %1828 = vmatmul.mubr.bf16.vlgmr.msra.gmra.mrb[0].mxu0 %v1675_v22  ;;  %v2510_v44 = vpop.permute.xlu1 %2509  ;;  %v2491_v30 = vunpack.i.l.bf16 %v3793_v31  ;;  %v1319_v20 = vrot.slane %v3835_v52, 2  ;;  %v1424_v17 = vsel %vm1416_vm3, %v3010_v13, %v2312_v56  ;;  %v1423_v19 = vsel %vm1416_vm3, %v3008_v12, %v2311_v29 }
  0xe5   : > { %v2502_v45 = vunpack.i.h.bf16 %v2500_v60  ;;  %v1420_v4 = vsel %vm1416_vm3, %v3037_v37, %v2302_v11  ;;  %v1419_v31 = vsel %vm1416_vm3, %v3026_v27, %v2301_v59  ;;  %v2512_v63 = vunpack.i.h.bf16 %v2510_v44 }
  0xe6   : > { %v3865_v21 = vpop.permute.xlu0 %2504  ;;  %2799 = vrot.lane.b32.xlu1 %v3714_v14, %s2949_s15  ;;  %v2501_v14 = vunpack.i.l.bf16 %v2500_v60  ;;  %v2511_v1 = vunpack.i.l.bf16 %v2510_v44  ;;  %v1457_v42 = vsel %vm1449_vm4, %v1424_v17, %v2392_v50  ;;  %v1456_v13 = vsel %vm1449_vm4, %v1423_v19, %v2391_v24  ;;  %v4562_v60 = vld [vmem:[#allocation34_spill] sm:$0xff] }
  0xe7   : > { %v1452_v29 = vsel %vm1449_vm4, %v1419_v31, %v2381_v43  ;;  %v1489_v37 = vsel %vm1482_vm5, %v1456_v13, %v2491_v30  ;;  %v1490_v27 = vsel %vm1482_vm5, %v1457_v42, %v2492_v58  ;;  %v2497_v59 = vunpack.i.h.bf16 %v3837_v10 }
  0xe8   : > { %2794 = vrot.lane.b32.xlu0 %v3712_v2, %s2948_s19  ;;  %v2520_v61 = vpop.permute.xlu1 %2519  ;;  %v2382_v2 = vunpack.i.h.bf16 %v3604_v34  ;;  %v1522_v44 = vsel %vm1515_vm6, %v1489_v37, %v2501_v14  ;;  %v1523_v11 = vsel %vm1515_vm6, %v1490_v27, %v2502_v45  ;;  %v2496_v50 = vunpack.i.l.bf16 %v3837_v10 }
  0xe9   : > { %v2522_v22 = vunpack.i.h.bf16 %v2520_v61  ;;  %v2521_v12 = vunpack.i.l.bf16 %v2520_v61  ;;  %v4563_v24 = vpack.i.bf16 %v4549_v16, %v4548_v62  ;;  %v1555_v43 = vsel %vm1548_vm7, %v1522_v44, %v2511_v1 }
  0xea   : > { %v2515_v56 = vpop.permute.xlu0 %2514  ;;  %2809 = vrot.lane.b32.xlu1 %v4562_v60, %s2951_s28  ;;  %v1556_v30 = vsel %vm1548_vm7, %v1523_v11, %v2512_v63  ;;  %v2507_v19 = vunpack.i.h.bf16 %v3865_v21  ;;  %v2506_v45 = vunpack.i.l.bf16 %v3865_v21  ;;  %v1453_v13 = vsel %vm1449_vm4, %v1420_v4, %v2382_v2 }
  0xeb   : > { %v1588_v14 = vsel %vm1581_vm8, %v1555_v43, %v2521_v12  ;;  %v1589_v10 = vsel %vm1581_vm8, %v1556_v30, %v2522_v22  ;;  %v2517_v31 = vunpack.i.h.bf16 %v2515_v56  ;;  %v2516_v42 = vunpack.i.l.bf16 %v2515_v56 }
  0xec   : > { %2804 = vrot.lane.b32.xlu0 %v4563_v24, %s2950_s23  ;;  %v2530_v34 = vpop.permute.xlu1 %2529  ;;  %v2317_v22 = vunpack.i.h.bf16 %v3545_v9  ;;  %v2316_v27 = vunpack.i.l.bf16 %v3545_v9  ;;  %v1485_v56 = vsel %vm1482_vm5, %v1452_v29, %v2496_v50  ;;  %v1486_v44 = vsel %vm1482_vm5, %v1453_v13, %v2497_v59 }
  0xed   : > { %v2532_v17 = vunpack.i.h.bf16 %v2530_v34  ;;  %v2531_v58 = vunpack.i.l.bf16 %v2530_v34  ;;  %v2397_v11 = vunpack.i.h.bf16 %v3624_v49  ;;  %v2396_v4 = vunpack.i.l.bf16 %v3624_v49 }
  0xee   : > { %v2525_v61 = vpop.permute.xlu0 %2524  ;;  %2819 = vrot.lane.b32.xlu1 %v3724_v36, %s2953_s7  ;;  %v1518_v2 = vsel %vm1515_vm6, %v1485_v56, %v2506_v45  ;;  %v1519_v24 = vsel %vm1515_vm6, %v1486_v44, %v2507_v19  ;;  %v3940_v45 = vsel %vm363_vm0, %v1299_v26, %v1300_v55  ;;  %v1318_v26 = vsel %vm540_vm1, %v1316_v48, %v1317_v5 }
  0xef   : > { %v1621_v1 = vsel %vm1614_vm9, %v1588_v14, %v2531_v58  ;;  %v1622_v63 = vsel %vm1614_vm9, %v1589_v10, %v2532_v17  ;;  %v2527_v60 = vunpack.i.h.bf16 %v2525_v61  ;;  %v2526_v37 = vunpack.i.l.bf16 %v2525_v61 }
  0xf0   : > { %2814 = vrot.lane.b32.xlu0 %v3719_v53, %s2952_s6  ;;  %v2540_v21 = vpop.permute.xlu1 %2539  ;;  %v3914_v12 = vpack.c.bf16 %v1622_v63, %v1621_v1  ;;  %v1551_v9 = vsel %vm1548_vm7, %v1518_v2, %v2516_v42  ;;  %v1552_v29 = vsel %vm1548_vm7, %v1519_v24, %v2517_v31  ;;  %v3947_v14 = vsel %vm363_vm0, %v1300_v55, %v1302_v32 }
  0xf1   : > { %v1584_v43 = vsel %vm1581_vm8, %v1551_v9, %v2526_v37  ;;  %v1585_v49 = vsel %vm1581_vm8, %v1552_v29, %v2527_v60  ;;  %v2542_v30 = vunpack.i.h.bf16 %v2540_v21  ;;  %v2541_v17 = vunpack.i.l.bf16 %v2540_v21 }
  0xf2   : > { %v2535_v34 = vpop.permute.xlu0 %2534  ;;  %1835 = vmatprep.mubr.bf16.mxu0 %v3914_v12  ;;  %2829 = vrot.lane.b32.xlu1 %v3724_v36, %s2949_s15  ;;  %v1425_v10 = vsel %vm1416_vm3, %v3054_v46, %v2316_v27  ;;  %v1320_v21 = vsel %vm540_vm1, %v1317_v5, %v1319_v20  ;;  %v2322_v27 = vunpack.i.h.bf16 %v3537_v15  ;;  %v2321_v2 = vunpack.i.l.bf16 %v3537_v15  ;;  %v257_v5 = vld [vmem:[%s2988_s17 + $0xe0] sm:$0x3] }
  0xf3   : > { %v2537_v50 = vunpack.i.h.bf16 %v2535_v34  ;;  %v2536_v59 = vunpack.i.l.bf16 %v2535_v34  ;;  %v1458_v55 = vsel %vm1449_vm4, %v1425_v10, %v2396_v4  ;;  %v2148_v4 = vld [vmem:[%s2988_s17 + $0xd8] sm:$0xff]   ;;  %v1336_v9 = vrot.slane %v3835_v52, 3 }
  0xf4   : > { %2824 = vrot.lane.b32.xlu0 %v3719_v53, %s2948_s19  ;;  %v2550_v58 = vpop.permute.xlu1 %2549  ;;  %v1426_v53 = vsel %vm1416_vm3, %v3064_v54, %v2317_v22  ;;  %v1491_v1 = vsel %vm1482_vm5, %v1458_v55, %v2541_v17  ;;  %v1333_v22 = vrot.slane %v3829_v7, 3  ;;  %v2402_v20 = vunpack.i.h.bf16 %v3620_v57 }
  0xf5   : > { %v1617_v19 = vsel %vm1614_vm9, %v1584_v43, %v2536_v59  ;;  %v1618_v36 = vsel %vm1614_vm9, %v1585_v49, %v2537_v50  ;;  %v1459_v32 = vsel %vm1449_vm4, %v1426_v53, %v2397_v11  ;;  %v2552_v63 = vunpack.i.h.bf16 %v2550_v58 }
  0xf6   : > { %v2545_v61 = vpop.permute.xlu0 %2544  ;;  %v1677_v31 = vpack.c.bf16 %v1618_v36, %v1617_v19  ;;  %2839 = vrot.lane.b32.xlu1 %v3845_v6, %s2951_s28  ;;  %v1492_v46 = vsel %vm1482_vm5, %v1459_v32, %v2542_v30  ;;  %v2551_v13 = vunpack.i.l.bf16 %v2550_v58  ;;  %v1334_v11 = vrot.slane %v3831_v25, 3 }
  0xf7   : > { %v2547_v42 = vunpack.i.h.bf16 %v2545_v61  ;;  %v2546_v54 = vunpack.i.l.bf16 %v2545_v61  ;;  %v2401_v29 = vunpack.i.l.bf16 %v3620_v57  ;;  %v3992_v30 = vunpack.c.l.bf16 %v2148_v4 }
  0xf8   : > { %2834 = vrot.lane.b32.xlu0 %v2833_v3, %s2950_s23  ;;  %1836 = vmatmul.mubr.bf16.gmra.mrb[4].mxu0 %v1677_v31  ;;  %v2560_v48 = vpop.permute.xlu1 %2559  ;;  %v3994_v52 = vunpack.c.h.bf16 %v2148_v4  ;;  %v1428_v17 = vsel %vm1416_vm3, %v3046_v41, %v2322_v27  ;;  %v4002_v36 = vunpack.c.l.bf16 %v257_v5  ;;  %v1427_v53 = vsel %vm1416_vm3, %v3044_v40, %v2321_v2 }
  0xf9   : > { %v1524_v60 = vsel %vm1515_vm6, %v1491_v1, %v2546_v54  ;;  %v1525_v37 = vsel %vm1515_vm6, %v1492_v46, %v2547_v42  ;;  %v2562_v56 = vunpack.i.h.bf16 %v2560_v48  ;;  %v2561_v44 = vunpack.i.l.bf16 %v2560_v48 }
  0xfa   : > { %v2555_v3 = vpop.permute.xlu0 %2554  ;;  %2849 = vrot.lane.b32.xlu1 %v3850_v51, %s2953_s7  ;;  %v1557_v50 = vsel %vm1548_vm7, %v1524_v60, %v2551_v13  ;;  %v1558_v59 = vsel %vm1548_vm7, %v1525_v37, %v2552_v63  ;;  %v1461_v55 = vsel %vm1449_vm4, %v1428_v17, %v2402_v20  ;;  %v1460_v41 = vsel %vm1449_vm4, %v1427_v53, %v2401_v29 }
  0xfb   : > { %v2557_v24 = vunpack.i.h.bf16 %v2555_v3  ;;  %v2556_v34 = vunpack.i.l.bf16 %v2555_v3  ;;  %v2873_v40 = vpack.i.bf16 %v3947_v14, %v3940_v45  ;;  %v2878_v63 = vpack.i.bf16 %v1320_v21, %v1318_v26 }
  0xfc   : > { %2844 = vrot.lane.b32.xlu0 %v3848_v28, %s2952_s6  ;;  %v2570_v43 = vpop.permute.xlu1 %2569  ;;  %v1365_v13 = vrot.slane %v3992_v30, 1  ;;  %v1366_v48 = vrot.slane %v3994_v52, 1  ;;  %v1337_v27 = vsel %vm717_vm2, %v1334_v11, %v1336_v9  ;;  %v1368_v45 = vrot.slane %v4002_v36, 1 }
  0xfd   : > { %v1590_v49 = vsel %vm1581_vm8, %v1557_v50, %v2556_v34  ;;  %v1591_v15 = vsel %vm1581_vm8, %v1558_v59, %v2557_v24  ;;  %v2572_v32 = vunpack.i.h.bf16 %v2570_v43  ;;  %v2571_v42 = vunpack.i.l.bf16 %v2570_v43 }
  0xfe   : > { %v2565_v57 = vpop.permute.xlu0 %2564  ;;  %2859 = vrot.lane.b32.xlu1 %v3848_v28, %s2948_s19  ;;  %v1623_v58 = vsel %vm1614_vm9, %v1590_v49, %v2561_v44  ;;  %v1624_v19 = vsel %vm1614_vm9, %v1591_v15, %v2562_v56  ;;  %v1382_v4 = vrot.slane %v3992_v30, 2  ;;  %v1383_v34 = vrot.slane %v3994_v52, 2 }
  0xff   : > { %v2567_v10 = vunpack.i.h.bf16 %v2565_v57  ;;  %v2566_v61 = vunpack.i.l.bf16 %v2565_v57  ;;  %v4006_v31 = vpack.c.bf16 %v1624_v19, %v1623_v58  ;;  %v1369_v29 = vsel %vm363_vm0, %v1366_v48, %v1368_v45 }
 0x100   : > { %2854 = vrot.lane.b32.xlu0 %v3845_v6, %s2947_s18  ;;  %v2580_v28 = vpop.permute.xlu1 %2579  ;;  %v1335_v6 = vsel %vm717_vm2, %v1333_v22, %v1334_v11  ;;  %v1367_v11 = vsel %vm363_vm0, %v1365_v13, %v1366_v48  ;;  %v1399_v50 = vrot.slane %v3992_v30, 3  ;;  %v1400_v49 = vrot.slane %v3994_v52, 3  ;;  %v4566_v13 = vld [vmem:[#allocation20_spill] sm:$0xff] }
 0x101   : > { %v1494_v54 = vsel %vm1482_vm5, %v1461_v55, %v2567_v10  ;;  %v1493_v1 = vsel %vm1482_vm5, %v1460_v41, %v2566_v61  ;;  %1843 = vmatprep.mubr.bf16.mxu0 %v4006_v31  ;;  %v2582_v14 = vunpack.i.h.bf16 %v2580_v28  ;;  %v2883_v3 = vpack.i.bf16 %v1337_v27, %v1335_v6  ;;  %v4567_v27 = vld [vmem:[#allocation6_spill] sm:$0xff] }
 0x102   : > { %v2575_v46 = vpop.permute.xlu0 %2574  ;;  %1844 = vmatmul.mubr.bf16.gmra.mrb[8].mxu0 %v3795_v47  ;;  %2869 = vrot.lane.b32.xlu1 %v2868_v39, %s2950_s23  ;;  %v2581_v47 = vunpack.i.l.bf16 %v2580_v28  ;;  %v1526_v56 = vsel %vm1515_vm6, %v1493_v1, %v2571_v42  ;;  %v1527_v44 = vsel %vm1515_vm6, %v1494_v54, %v2572_v32  ;;  %v1402_v15 = vrot.slane %v4002_v36, 3 }
 0x103   : > { %v2577_v60 = vunpack.i.h.bf16 %v2575_v46  ;;  %v2576_v37 = vunpack.i.l.bf16 %v2575_v46  ;;  %v2908_v19 = vpack.i.bf16 %v1369_v29, %v1367_v11  ;;  %v1384_v53 = vsel %vm540_vm1, %v1382_v4, %v1383_v34  ;;  %v4573_v4 = vld [vmem:[#allocation19_spill] sm:$0xff] }
 0x104   : > { %2864 = vrot.lane.b32.xlu0 %v3850_v51, %s2949_s15  ;;  %v4031_v39 = vpop.permute.xlu1 %2589  ;;  %v1385_v51 = vrot.slane %v4002_v36, 2  ;;  %v1401_v36 = vsel %vm717_vm2, %v1399_v50, %v1400_v49  ;;  %v1403_v61 = vsel %vm717_vm2, %v1400_v49, %v1402_v15  ;;  %v2327_v55 = vunpack.i.h.bf16 %v3553_v23 }
 0x105   : > { %v1559_v26 = vsel %vm1548_vm7, %v1526_v56, %v2576_v37  ;;  %v1560_v21 = vsel %vm1548_vm7, %v1527_v44, %v2577_v60  ;;  %v2326_v41 = vunpack.i.l.bf16 %v3553_v23  ;;  %v2337_v32 = vunpack.i.h.bf16 %v3565_v35  ;;  %v4569_v56 = vld [vmem:[#allocation12_spill] sm:$0xff] }
 0x106   : > { %v2585_v22 = vpop.permute.xlu0 %2584  ;;  %2879 = vrot.lane.b32.xlu1 %v2878_v63, %s2952_s6  ;;  %v1592_v5 = vsel %vm1581_vm8, %v1559_v26, %v2581_v47  ;;  %v1593_v20 = vsel %vm1581_vm8, %v1560_v21, %v2582_v14  ;;  %v1386_v10 = vsel %vm540_vm1, %v1383_v34, %v1385_v51  ;;  %v2336_v42 = vunpack.i.l.bf16 %v3565_v35  ;;  %v4568_v14 = vld [vmem:[#allocation5_spill] sm:$0xff]  ;;  %v4570_v26 = vld [vmem:[#allocation11_spill] sm:$0xff] }
 0x107   : > { %v2587_v2 = vunpack.i.h.bf16 %v2585_v22  ;;  %v2586_v24 = vunpack.i.l.bf16 %v2585_v22  ;;  %v2416_v48 = vunpack.i.l.bf16 %v4566_v13  ;;  %v2903_v60 = vpack.i.bf16 %v3994_v52, %v3992_v30  ;;  %v4572_v52 = vld [vmem:[#allocation16_spill] sm:$0xff] }
 0x108   : > { %2874 = vrot.lane.b32.xlu0 %v2873_v40, %s2951_s28  ;;  %v4041_v9 = vpop.permute.xlu1 %2599  ;;  %v2913_v35 = vpack.i.bf16 %v1386_v10, %v1384_v53  ;;  %v2918_v37 = vpack.i.bf16 %v1403_v61, %v1401_v36  ;;  %v1430_v45 = vsel %vm1416_vm3, %v4567_v27, %v2327_v55  ;;  %v1429_v47 = vsel %vm1416_vm3, %v4568_v14, %v2326_v41 }
 0x109   : > { %v1625_v59 = vsel %vm1614_vm9, %v1592_v5, %v2586_v24  ;;  %v1626_v43 = vsel %vm1614_vm9, %v1593_v20, %v2587_v2  ;;  %v1434_v44 = vsel %vm1416_vm3, %v4569_v56, %v2337_v32  ;;  %v1433_v21 = vsel %vm1416_vm3, %v4570_v26, %v2336_v42 }
 0x10a   : > { %v4051_v17 = vpop.permute.xlu0 %2594  ;;  %v4053_v57 = vpack.c.bf16 %v1626_v43, %v1625_v59  ;;  %2889 = vrot.lane.b32.xlu1 %v2873_v40, %s2947_s18  ;;  %v4565_v40 = vld [vmem:[#allocation40_spill] sm:$0xff]  ;;  %v2417_v11 = vunpack.i.h.bf16 %v4566_v13  ;;  %v2426_v2 = vunpack.i.l.bf16 %v4573_v4  ;;  %v1466_v51 = vsel %vm1449_vm4, %v1433_v21, %v2416_v48 }
 0x10b   : > { %v2407_v46 = vunpack.i.h.bf16 %v4565_v40  ;;  %v2406_v6 = vunpack.i.l.bf16 %v4565_v40  ;;  %v2427_v5 = vunpack.i.h.bf16 %v4573_v4  ;;  %v2592_v29 = vunpack.i.h.bf16 %v4031_v39 }
 0x10c   : > { %2884 = vrot.lane.b32.xlu0 %v2883_v3, %s2953_s7  ;;  %1851 = vmatprep.mubr.bf16.mxu0 %v4053_v57  ;;  %v4058_v58 = vpop.permute.xlu1 %2609  ;;  %v2591_v50 = vunpack.i.l.bf16 %v4031_v39  ;;  %v2597_v59 = vunpack.i.h.bf16 %v4051_v17  ;;  %v2596_v43 = vunpack.i.l.bf16 %v4051_v17  ;;  %v2602_v49 = vunpack.i.h.bf16 %v4041_v9 }
 0x10d   : > { %1852 = vmatmul.mubr.bf16.gmra.mrb[12].mxu0 %v3914_v12  ;;  %v4564_v12 = vld [vmem:[#allocation15_spill] sm:$0xff]  ;;  %v1462_v24 = vsel %vm1449_vm4, %v1429_v47, %v2406_v6  ;;  %v1463_v34 = vsel %vm1449_vm4, %v1430_v45, %v2407_v46  ;;  %v2601_v15 = vunpack.i.l.bf16 %v4041_v9  ;;  %v2611_v53 = vunpack.i.l.bf16 %v4058_v58 }
 0x10e   : > { %v2605_v28 = vpop.permute.xlu0 %2604  ;;  %2899 = vrot.lane.b32.xlu1 %v2883_v3, %s2949_s15  ;;  %v2347_v54 = vunpack.i.h.bf16 %v4564_v12  ;;  %v2346_v1 = vunpack.i.l.bf16 %v4564_v12  ;;  %v1467_v36 = vsel %vm1449_vm4, %v1434_v44, %v2417_v11  ;;  %v1496_v12 = vsel %vm1482_vm5, %v1463_v34, %v2592_v29 }
 0x10f   : > { %v2607_v39 = vunpack.i.h.bf16 %v2605_v28  ;;  %v2606_v55 = vunpack.i.l.bf16 %v2605_v28  ;;  %v1499_v40 = vsel %vm1482_vm5, %v1466_v51, %v2601_v15  ;;  %v1500_v28 = vsel %vm1482_vm5, %v1467_v36, %v2602_v49 }
 0x110   : > { %2894 = vrot.lane.b32.xlu0 %v2878_v63, %s2948_s19  ;;  %v2620_v23 = vpop.permute.xlu1 %2619  ;;  %v4571_v63 = vld [vmem:[#allocation17_spill] sm:$0xff]  ;;  %v1437_v3 = vsel %vm1416_vm3, %v4572_v52, %v2346_v1 }
 0x111   : > { %v1438_v30 = vsel %vm1416_vm3, %v4571_v63, %v2347_v54  ;;  %v1470_v61 = vsel %vm1449_vm4, %v1437_v3, %v2426_v2  ;;  %v2622_v17 = vunpack.i.h.bf16 %v2620_v23  ;;  %v2621_v32 = vunpack.i.l.bf16 %v2620_v23 }
 0x112   : > { %v4086_v22 = vpop.permute.xlu0 %2614  ;;  %2909 = vrot.lane.b32.xlu1 %v2908_v19, %s2951_s28  ;;  %v2612_v19 = vunpack.i.h.bf16 %v4058_v58  ;;  %v1471_v41 = vsel %vm1449_vm4, %v1438_v30, %v2427_v5  ;;  %v1495_v58 = vsel %vm1482_vm5, %v1462_v24, %v2591_v50  ;;  %v1503_v54 = vsel %vm1482_vm5, %v1470_v61, %v2596_v43 }
 0x113   : > { %v2616_v42 = vunpack.i.l.bf16 %v4086_v22  ;;  %v1504_v1 = vsel %vm1482_vm5, %v1471_v41, %v2597_v59  ;;  %v1536_v46 = vsel %vm1515_vm6, %v1503_v54, %v2611_v53  ;;  %v1528_v48 = vsel %vm1515_vm6, %v1495_v58, %v2606_v55 }
 0x114   : > { %2904 = vrot.lane.b32.xlu0 %v2903_v60, %s2950_s23  ;;  %v2630_v20 = vpop.permute.xlu1 %2629  ;;  %v1537_v6 = vsel %vm1515_vm6, %v1504_v1, %v2612_v19  ;;  %v1529_v23 = vsel %vm1515_vm6, %v1496_v12, %v2607_v39  ;;  %v2617_v45 = vunpack.i.h.bf16 %v4086_v22 }
 0x115   : > { %v1562_v27 = vsel %vm1548_vm7, %v1529_v23, %v2622_v17  ;;  %v1532_v14 = vsel %vm1515_vm6, %v1499_v40, %v2616_v42  ;;  %v2632_v56 = vunpack.i.h.bf16 %v2630_v20  ;;  %v2631_v44 = vunpack.i.l.bf16 %v2630_v20 }
 0x116   : > { %v2625_v10 = vpop.permute.xlu0 %2624  ;;  %2919 = vrot.lane.b32.xlu1 %v2918_v37, %s2953_s7  ;;  %v1561_v37 = vsel %vm1548_vm7, %v1528_v48, %v2621_v32  ;;  %v1533_v34 = vsel %vm1515_vm6, %v1500_v28, %v2617_v45  ;;  %v4574_v28 = vld [vmem:[#allocation37_spill] sm:$0xff]  ;;  %v4575_v48 = vld [vmem:[#allocation10_spill] sm:$0xff] }
 0x117   : > { %v2627_v63 = vunpack.i.h.bf16 %v2625_v10  ;;  %v2626_v30 = vunpack.i.l.bf16 %v2625_v10  ;;  %v1565_v50 = vsel %vm1548_vm7, %v1532_v14, %v2631_v44  ;;  %v1566_v59 = vsel %vm1548_vm7, %v1533_v34, %v2632_v56  ;;  %v4577_v14 = vld [vmem:[#allocation3_spill] sm:$0xff]  ;;  %v4578_v56 = vld [vmem:[#allocation2_spill] sm:$0xff] }
 0x118   : > { %2914 = vrot.lane.b32.xlu0 %v2913_v35, %s2952_s6  ;;  %v2640_v9 = vpop.permute.xlu1 %2639  ;;  %v2342_v23 = vunpack.i.h.bf16 %v4575_v48 }
 0x119   : > { %v2642_v51 = vunpack.i.h.bf16 %v2640_v9  ;;  %v2641_v5 = vunpack.i.l.bf16 %v2640_v9  ;;  %v1569_v15 = vsel %vm1548_vm7, %v1536_v46, %v2626_v30  ;;  %v1570_v19 = vsel %vm1548_vm7, %v1537_v6, %v2627_v63 }
 0x11a   : > { %v2635_v13 = vpop.permute.xlu0 %2634  ;;  %v2332_v46 = vunpack.i.h.bf16 %v4574_v28  ;;  %v2331_v6 = vunpack.i.l.bf16 %v4574_v28 }
 0x11b   : > { %v2637_v60 = vunpack.i.h.bf16 %v2635_v13  ;;  %v2636_v35 = vunpack.i.l.bf16 %v2635_v13  ;;  %v1602_v32 = vsel %vm1581_vm8, %v1569_v15, %v2641_v5  ;;  %v1603_v42 = vsel %vm1581_vm8, %v1570_v19, %v2642_v51  ;;  %v4584_v51 = vld [vmem:[#allocation14_spill] sm:$0xff] }
 0x11c   : > { %v2650_v47 = vpop.permute.xlu1 %2649  ;;  %v1431_v44 = vsel %vm1416_vm3, %v4578_v56, %v2331_v6  ;;  %v4586_v19 = vld [vmem:[#allocation22_spill] sm:$0xff] }
 0x11d   : > { %v2652_v26 = vunpack.i.h.bf16 %v2650_v47  ;;  %v2651_v21 = vunpack.i.l.bf16 %v2650_v47  ;;  %v1594_v52 = vsel %vm1581_vm8, %v1561_v37, %v2636_v35  ;;  %v1595_v3 = vsel %vm1581_vm8, %v1562_v27, %v2637_v60  ;;  %v4576_v35 = vld [vmem:[#allocation4_spill] sm:$0xff] }
 0x11e   : > { %v2645_v11 = vpop.permute.xlu0 %2644  ;;  %v2341_v60 = vunpack.i.l.bf16 %v4575_v48  ;;  %v2352_v37 = vunpack.i.h.bf16 %v4576_v35  ;;  %v2351_v45 = vunpack.i.l.bf16 %v4576_v35  ;;  %v1432_v47 = vsel %vm1416_vm3, %v4577_v14, %v2332_v46 }
 0x11f   : > { %v2647_v4 = vunpack.i.h.bf16 %v2645_v11  ;;  %v2646_v2 = vunpack.i.l.bf16 %v2645_v11  ;;  %v1627_v24 = vsel %vm1614_vm9, %v1594_v52, %v2651_v21  ;;  %v1628_v22 = vsel %vm1614_vm9, %v1595_v3, %v2652_v26  ;;  %v4579_v26 = vld [vmem:[#allocation39_spill] sm:$0xff]  ;;  %v4580_v52 = vld [vmem:[#allocation8_spill] sm:$0xff] }
 0x120   : > { %v2660_v20 = vpop.permute.xlu1 %2659  ;;  %v4133_v29 = vpack.c.bf16 %v1628_v22, %v1627_v24  ;;  %v2412_v21 = vunpack.i.h.bf16 %v4579_v26  ;;  %v2411_v63 = vunpack.i.l.bf16 %v4579_v26  ;;  %v1436_v3 = vsel %vm1416_vm3, %v4580_v52, %v2342_v23  ;;  %v4581_v11 = vld [vmem:[#allocation7_spill] sm:$0xff]  ;;  %v4583_v22 = vld [vmem:[#allocation21_spill] sm:$0xff] }
 0x121   : > { %v2662_v43 = vunpack.i.h.bf16 %v2660_v20  ;;  %v2661_v49 = vunpack.i.l.bf16 %v2660_v20  ;;  %v1598_v53 = vsel %vm1581_vm8, %v1565_v50, %v2646_v2  ;;  %v1599_v10 = vsel %vm1581_vm8, %v1566_v59, %v2647_v4  ;;  %v4582_v2 = vld [vmem:[#allocation33_spill] sm:$0xff] }
 0x122   : > { %v2655_v36 = vpop.permute.xlu0 %2654  ;;  %1859 = vmatprep.mubr.bf16.mxu0 %v4133_v29  ;;  %v1435_v4 = vsel %vm1416_vm3, %v4581_v11, %v2341_v60  ;;  %v2422_v24 = vunpack.i.h.bf16 %v4582_v2  ;;  %v2431_v34 = vunpack.i.l.bf16 %v4583_v22  ;;  %v1440_v5 = vsel %vm1416_vm3, %v4584_v51, %v2352_v37 }
 0x123   : > { %v2657_v61 = vunpack.i.h.bf16 %v2655_v36  ;;  %v2656_v39 = vunpack.i.l.bf16 %v2655_v36  ;;  %1860 = vmatmul.mubr.bf16.gmra.mrb[16].mxu0 %v4006_v31  ;;  %v1631_v55 = vsel %vm1614_vm9, %v1598_v53, %v2661_v49  ;;  %v1632_v41 = vsel %vm1614_vm9, %v1599_v10, %v2662_v43  ;;  %v4585_v49 = vld [vmem:[#allocation13_spill] sm:$0xff] }
 0x124   : > { %v2670_v17 = vpop.permute.xlu1 %2669  ;;  %v4149_v12 = vpack.c.bf16 %v1632_v41, %v1631_v55  ;;  %v2421_v20 = vunpack.i.l.bf16 %v4582_v2  ;;  %v2432_v50 = vunpack.i.h.bf16 %v4583_v22  ;;  %v1439_v15 = vsel %vm1416_vm3, %v4585_v49, %v2351_v45 }
 0x125   : > { %v1635_v9 = vsel %vm1614_vm9, %v1602_v32, %v2656_v39  ;;  %v1636_v58 = vsel %vm1614_vm9, %v1603_v42, %v2657_v61  ;;  %v2671_v59 = vunpack.i.l.bf16 %v2670_v17  ;;  %v2357_v53 = vunpack.i.h.bf16 %v4586_v19 }
 0x126   : > { %v2665_v54 = vpop.permute.xlu0 %2664  ;;  %v4151_v1 = vpack.c.bf16 %v1636_v58, %v1635_v9  ;;  %v2672_v10 = vunpack.i.h.bf16 %v2670_v17  ;;  %v2356_v61 = vunpack.i.l.bf16 %v4586_v19  ;;  %v1465_v39 = vsel %vm1449_vm4, %v1432_v47, %v2412_v21  ;;  %v4587_v17 = vld [vmem:[#allocation25_spill] sm:$0xff] }
 0x127   : > { %v2667_v36 = vunpack.i.h.bf16 %v2665_v54  ;;  %v1464_v55 = vsel %vm1449_vm4, %v1431_v44, %v2411_v63  ;;  %v2666_v41 = vunpack.i.l.bf16 %v2665_v54  ;;  %v1469_v42 = vsel %vm1449_vm4, %v1436_v3, %v2422_v24 }
 0x128   : > { %1891 = vmatprep.mubr.bf16.mxu1 %v4151_v1  ;;  %v2680_v31 = vpop.permute.xlu1 %2679  ;;  %v1472_v9 = vsel %vm1449_vm4, %v1439_v15, %v2431_v34  ;;  %v1468_v46 = vsel %vm1449_vm4, %v1435_v4, %v2421_v20  ;;  %v1473_v6 = vsel %vm1449_vm4, %v1440_v5, %v2432_v50  ;;  %v2437_v48 = vunpack.i.h.bf16 %v4587_v17 }
 0x129   : > { %1892 = vmatmul.mubr.bf16.vlgmr.msra.gmra.mrb[0].mxu1 %v4149_v12  ;;  %v2682_v58 = vunpack.i.h.bf16 %v2680_v31  ;;  %v2681_v28 = vunpack.i.l.bf16 %v2680_v31  ;;  %v1505_v23 = vsel %vm1482_vm5, %v1472_v9, %v2671_v59  ;;  %v1506_v35 = vsel %vm1482_vm5, %v1473_v6, %v2672_v10 }
 0x12a   : > { %v4155_v40 = vpop.permute.xlu0 %2674  ;;  %v1498_v54 = vsel %vm1482_vm5, %v1465_v39, %v2667_v36  ;;  %v1497_v14 = vsel %vm1482_vm5, %v1464_v55, %v2666_v41 }
 0x12b   : > { %v1530_v26 = vsel %vm1515_vm6, %v1497_v14, %v2681_v28  ;;  %v1531_v21 = vsel %vm1515_vm6, %v1498_v54, %v2682_v58  ;;  %v2677_v3 = vunpack.i.h.bf16 %v4155_v40  ;;  %v2676_v11 = vunpack.i.l.bf16 %v4155_v40 }
 0x12c   : > { %v4159_v13 = vpop.permute.xlu1 %2689 }
 0x12d   : > { %v2692_v4 = vunpack.i.h.bf16 %v4159_v13 }
 0x12e   : > { %v2685_v27 = vpop.permute.xlu0 %2684 }
 0x12f   : > { %v2687_v37 = vunpack.i.h.bf16 %v2685_v27  ;;  %v2686_v45 = vunpack.i.l.bf16 %v2685_v27  ;;  %v2691_v27 = vunpack.i.l.bf16 %v4159_v13 }
 0x130   : > { %v2700_v30 = vpop.permute.xlu1 %2699 }
 0x131   : > { %v2702_v47 = vunpack.i.h.bf16 %v2700_v30  ;;  %v2701_v56 = vunpack.i.l.bf16 %v2700_v30  ;;  %v1539_v24 = vsel %vm1515_vm6, %v1506_v35, %v2687_v37  ;;  %v1538_v30 = vsel %vm1515_vm6, %v1505_v23, %v2686_v45 }
 0x132   : > { %v2695_v43 = vpop.permute.xlu0 %2694  ;;  %v1501_v37 = vsel %vm1482_vm5, %v1468_v46, %v2676_v11 }
 0x133   : > { %v2696_v31 = vunpack.i.l.bf16 %v2695_v43  ;;  %v2697_v63 = vunpack.i.h.bf16 %v2695_v43  ;;  %v1571_v51 = vsel %vm1548_vm7, %v1538_v30, %v2701_v56  ;;  %v1572_v5 = vsel %vm1548_vm7, %v1539_v24, %v2702_v47  ;;  %v4588_v30 = vld [vmem:[#allocation24_spill] sm:$0xff] }
 0x134   : > { %v2710_v32 = vpop.permute.xlu1 %2709  ;;  %v2436_v47 = vunpack.i.l.bf16 %v4587_v17  ;;  %v1534_v56 = vsel %vm1515_vm6, %v1501_v37, %v2691_v27 }
 0x135   : > { %v2711_v52 = vunpack.i.l.bf16 %v2710_v32  ;;  %v1563_v20 = vsel %vm1548_vm7, %v1530_v26, %v2696_v31  ;;  %v2712_v50 = vunpack.i.h.bf16 %v2710_v32  ;;  %v1564_v40 = vsel %vm1548_vm7, %v1531_v21, %v2697_v63 }
 0x136   : > { %v2705_v60 = vpop.permute.xlu0 %2704 }
 0x137   : > { %v1596_v43 = vsel %vm1581_vm8, %v1563_v20, %v2711_v52  ;;  %v2707_v15 = vunpack.i.h.bf16 %v2705_v60  ;;  %v2706_v10 = vunpack.i.l.bf16 %v2705_v60  ;;  %v1597_v28 = vsel %vm1581_vm8, %v1564_v40, %v2712_v50 }
 0x138   : > { %v2720_v44 = vpop.permute.xlu1 %2719  ;;  %v1502_v60 = vsel %vm1482_vm5, %v1469_v42, %v2677_v3 }
 0x139   : > { %v2722_v6 = vunpack.i.h.bf16 %v2720_v44  ;;  %v2721_v23 = vunpack.i.l.bf16 %v2720_v44  ;;  %v1535_v31 = vsel %vm1515_vm6, %v1502_v60, %v2692_v4  ;;  %v1567_v44 = vsel %vm1548_vm7, %v1534_v56, %v2706_v10  ;;  %v4591_v56 = vld [vmem:[#allocation18_spill] sm:$0xff] }
 0x13a   : > { %v2715_v2 = vpop.permute.xlu0 %2714  ;;  %v1568_v42 = vsel %vm1548_vm7, %v1535_v31, %v2707_v15 }
 0x13b   : > { %v2717_v22 = vunpack.i.h.bf16 %v2715_v2  ;;  %v2716_v34 = vunpack.i.l.bf16 %v2715_v2  ;;  %v1600_v52 = vsel %vm1581_vm8, %v1567_v44, %v2721_v23  ;;  %v1601_v3 = vsel %vm1581_vm8, %v1568_v42, %v2722_v6 }
 0x13c   : > { %v2730_v59 = vpop.permute.xlu1 %2729 }
 0x13d   : > { %v2732_v13 = vunpack.i.h.bf16 %v2730_v59  ;;  %v2731_v49 = vunpack.i.l.bf16 %v2730_v59  ;;  %v1604_v36 = vsel %vm1581_vm8, %v1571_v51, %v2716_v34  ;;  %v1605_v39 = vsel %vm1581_vm8, %v1572_v5, %v2717_v22  ;;  %v4589_v34 = vld [vmem:[#allocation23_spill] sm:$0xff] }
 0x13e   : > { %v2725_v55 = vpop.permute.xlu0 %2724  ;;  %v1442_v22 = vsel %vm1416_vm3, %v4588_v30, %v2357_v53  ;;  %v1441_v51 = vsel %vm1416_vm3, %v4589_v34, %v2356_v61 }
 0x13f   : > { %v2727_v41 = vunpack.i.h.bf16 %v2725_v55  ;;  %v2726_v9 = vunpack.i.l.bf16 %v2725_v55  ;;  %v1637_v58 = vsel %vm1614_vm9, %v1604_v36, %v2731_v49  ;;  %v1638_v32 = vsel %vm1614_vm9, %v1605_v39, %v2732_v13 }
 0x140   : > { %v2740_v35 = vpop.permute.xlu1 %2739  ;;  %v4214_v54 = vpack.c.bf16 %v1638_v32, %v1637_v58  ;;  %v1475_v50 = vsel %vm1449_vm4, %v1442_v22, %v2437_v48  ;;  %v4590_v48 = vld [vmem:[#allocation9_spill] sm:$0xff] }
 0x141   : > { %v1629_v45 = vsel %vm1614_vm9, %v1596_v43, %v2726_v9  ;;  %v1630_v14 = vsel %vm1614_vm9, %v1597_v28, %v2727_v41  ;;  %v2742_v11 = vunpack.i.h.bf16 %v2740_v35  ;;  %v2741_v2 = vunpack.i.l.bf16 %v2740_v35 }
 0x142   : > { %v2735_v26 = vpop.permute.xlu0 %2734  ;;  %v4223_v21 = vpack.c.bf16 %v1630_v14, %v1629_v45  ;;  %1899 = vmatprep.mubr.bf16.mxu1 %v4214_v54  ;;  %v2362_v55 = vunpack.i.h.bf16 %v4590_v48  ;;  %v2361_v41 = vunpack.i.l.bf16 %v4590_v48 }
 0x143   : > { %v2737_v46 = vunpack.i.h.bf16 %v2735_v26  ;;  %v2736_v63 = vunpack.i.l.bf16 %v2735_v26  ;;  %v1508_v53 = vsel %vm1482_vm5, %v1475_v50, %v2742_v11 }
 0x144   : > { %1867 = vmatprep.mubr.bf16.mxu0 %v4223_v21  ;;  %v2750_v4 = vpop.permute.xlu1 %2749  ;;  %v1443_v31 = vsel %vm1416_vm3, %v4591_v56, %v2361_v41 }
 0x145   : > { %1868 = vmatmul.mubr.bf16.gmra.mrb[20].mxu0 %v4053_v57  ;;  %v1633_v27 = vsel %vm1614_vm9, %v1600_v52, %v2736_v63  ;;  %v1634_v24 = vsel %vm1614_vm9, %v1601_v3, %v2737_v46  ;;  %v1474_v57 = vsel %vm1449_vm4, %v1441_v51, %v2436_v47  ;;  %v2752_v19 = vunpack.i.h.bf16 %v2750_v4 }
 0x146   : > { %v2745_v5 = vpop.permute.xlu0 %2744  ;;  %1875 = vmatprep.mubr.bf16.mxu0 %v4149_v12  ;;  %v1684_v20 = vpack.c.bf16 %v1634_v24, %v1633_v27  ;;  %v1507_v43 = vsel %vm1482_vm5, %v1474_v57, %v2741_v2  ;;  %v2751_v13 = vunpack.i.l.bf16 %v2750_v4  ;;  %v1444_v47 = vsel %vm1416_vm3, %v4537_v33, %v2362_v55 }
 0x147   : > { %v2747_v59 = vunpack.i.h.bf16 %v2745_v5  ;;  %v2746_v40 = vunpack.i.l.bf16 %v2745_v5 }
 0x148   : > { %1900 = vmatmul.mubr.bf16.gmra.mrb[4].mxu1 %v1684_v20  ;;  %v2760_v61 = vpop.permute.xlu1 %2759 }
 0x149   : > { %v1540_v49 = vsel %vm1515_vm6, %v1507_v43, %v2746_v40  ;;  %v1541_v12 = vsel %vm1515_vm6, %v1508_v53, %v2747_v59  ;;  %v2762_v10 = vunpack.i.h.bf16 %v2760_v61  ;;  %v2761_v36 = vunpack.i.l.bf16 %v2760_v61 }
 0x14a   : > { %v2755_v15 = vpop.permute.xlu0 %2754  ;;  %v1573_v9 = vsel %vm1548_vm7, %v1540_v49, %v2751_v13  ;;  %v1574_v58 = vsel %vm1548_vm7, %v1541_v12, %v2752_v19 }
 0x14b   : > { %v2757_v17 = vunpack.i.h.bf16 %v2755_v15  ;;  %v2756_v39 = vunpack.i.l.bf16 %v2755_v15 }
 0x14c   : > { %v2770_v32 = vpop.permute.xlu1 %2769 }
 0x14d   : > { %v1606_v28 = vsel %vm1581_vm8, %v1573_v9, %v2756_v39  ;;  %v1607_v6 = vsel %vm1581_vm8, %v1574_v58, %v2757_v17  ;;  %1876 = vmatmul.mubr.bf16.gmra.mrb[24].mxu0 %v4133_v29  ;;  %v2772_v26 = vunpack.i.h.bf16 %v2770_v32  ;;  %v2771_v44 = vunpack.i.l.bf16 %v2770_v32 }
 0x14e   : > { %v2765_v23 = vpop.permute.xlu0 %2764  ;;  %1883 = vmatprep.mubr.bf16.mxu0 %v1684_v20  ;;  %v1639_v35 = vsel %vm1614_vm9, %v1606_v28, %v2761_v36  ;;  %v1640_v60 = vsel %vm1614_vm9, %v1607_v6, %v2762_v10  ;;  %v4592_v20 = vld [vmem:[#allocation38_spill] sm:$0xff] }
 0x14f   : > { %v2767_v37 = vunpack.i.h.bf16 %v2765_v23  ;;  %v2766_v45 = vunpack.i.l.bf16 %v2765_v23  ;;  %v4260_v14 = vpack.c.bf16 %v1640_v60, %v1639_v35  ;;  %v2367_v57 = vunpack.i.h.bf16 %v4592_v20 }
 0x150   : > { %v2780_v42 = vpop.permute.xlu1 %2779  ;;  %v2366_v50 = vunpack.i.l.bf16 %v4592_v20 }
 0x151   : > { %v1477_v29 = vsel %vm1449_vm4, %v1444_v47, %v2767_v37  ;;  %v1476_v46 = vsel %vm1449_vm4, %v1443_v31, %v2766_v45  ;;  %1907 = vmatprep.mubr.bf16.mxu1 %v4260_v14  ;;  %v2782_v2 = vunpack.i.h.bf16 %v2780_v42  ;;  %v2781_v4 = vunpack.i.l.bf16 %v2780_v42 }
 0x152   : > { %v2775_v63 = vpop.permute.xlu0 %2774  ;;  %1908 = vmatmul.mubr.bf16.gmra.mrb[8].mxu1 %v4151_v1  ;;  %v1509_v11 = vsel %vm1482_vm5, %v1476_v46, %v2771_v44  ;;  %v1510_v33 = vsel %vm1482_vm5, %v1477_v29, %v2772_v26  ;;  %v1446_v10 = vsel %vm1416_vm3, %v4545_v38, %v2367_v57  ;;  %v1445_v36 = vsel %vm1416_vm3, %v4544_v0, %v2366_v50  ;;  %v4593_v26 = vld [vmem:[#allocation36_spill] sm:$0xff] }
 0x153   : > { %v2777_v52 = vunpack.i.h.bf16 %v2775_v63  ;;  %v2776_v3 = vunpack.i.l.bf16 %v2775_v63  ;;  %v2371_v44 = vunpack.i.l.bf16 %v4593_v26 }
 0x154   : > { %v2790_v27 = vpop.permute.xlu1 %2789 }
 0x155   : > { %v1542_v24 = vsel %vm1515_vm6, %v1509_v11, %v2776_v3  ;;  %v1543_v30 = vsel %vm1515_vm6, %v1510_v33, %v2777_v52  ;;  %1884 = vmatmul.mubr.bf16.gmra.mrb[28].mxu0 %v4223_v21  ;;  %v2792_v34 = vunpack.i.h.bf16 %v2790_v27  ;;  %v2791_v51 = vunpack.i.l.bf16 %v2790_v27 }
 0x156   : > { %v2785_v22 = vpop.permute.xlu0 %2784  ;;  %v1575_v59 = vsel %vm1548_vm7, %v1542_v24, %v2781_v4  ;;  %v1576_v40 = vsel %vm1548_vm7, %v1543_v30, %v2782_v2  ;;  %v1447_v30 = vsel %vm1416_vm3, %v4548_v62, %v2371_v44 }
 0x157   : > { %v2787_v5 = vunpack.i.h.bf16 %v2785_v22  ;;  %v2786_v1 = vunpack.i.l.bf16 %v2785_v22 }
 0x158   : > { %v2800_v43 = vpop.permute.xlu1 %2799 }
 0x159   : > { %v1608_v53 = vsel %vm1581_vm8, %v1575_v59, %v2786_v1  ;;  %v1609_v19 = vsel %vm1581_vm8, %v1576_v40, %v2787_v5  ;;  %v2802_v17 = vunpack.i.h.bf16 %v2800_v43  ;;  %v2801_v39 = vunpack.i.l.bf16 %v2800_v43 }
 0x15a   : > { %v2795_v13 = vpop.permute.xlu0 %2794  ;;  %v1641_v21 = vsel %vm1614_vm9, %v1608_v53, %v2791_v51  ;;  %v1642_v61 = vsel %vm1614_vm9, %v1609_v19, %v2792_v34 }
 0x15b   : > { %v2797_v49 = vunpack.i.h.bf16 %v2795_v13  ;;  %v2796_v12 = vunpack.i.l.bf16 %v2795_v13  ;;  %v4283_v15 = vpack.c.bf16 %v1642_v61, %v1641_v21 }
 0x15c   : > { %v2810_v48 = vpop.permute.xlu1 %2809 }
 0x15d   : > { %v1478_v55 = vsel %vm1449_vm4, %v1445_v36, %v2796_v12  ;;  %v1479_v41 = vsel %vm1449_vm4, %v1446_v10, %v2797_v49  ;;  %1915 = vmatprep.mubr.bf16.mxu1 %v4283_v15  ;;  %v2812_v6 = vunpack.i.h.bf16 %v2810_v48  ;;  %v2811_v0 = vunpack.i.l.bf16 %v2810_v48 }
 0x15e   : > { %v2805_v9 = vpop.permute.xlu0 %2804  ;;  %1916 = vmatmul.mubr.bf16.gmra.mrb[12].mxu1 %v4214_v54  ;;  %v1511_v28 = vsel %vm1482_vm5, %v1478_v55, %v2801_v39  ;;  %v1512_v38 = vsel %vm1482_vm5, %v1479_v41, %v2802_v17  ;;  %v2372_v54 = vunpack.i.h.bf16 %v4593_v26 }
 0x15f   : > { %v2807_v58 = vunpack.i.h.bf16 %v2805_v9  ;;  %v2806_v32 = vunpack.i.l.bf16 %v2805_v9 }
 0x160   : > { %v2820_v23 = vpop.permute.xlu1 %2819  ;;  %v1448_v24 = vsel %vm1416_vm3, %v4549_v16, %v2372_v54 }
 0x161   : > { %v1544_v35 = vsel %vm1515_vm6, %v1511_v28, %v2806_v32  ;;  %v1545_v60 = vsel %vm1515_vm6, %v1512_v38, %v2807_v58  ;;  %v2822_v45 = vunpack.i.h.bf16 %v2820_v23  ;;  %v2821_v47 = vunpack.i.l.bf16 %v2820_v23 }
 0x162   : > { %v2815_v37 = vpop.permute.xlu0 %2814  ;;  %v1577_v42 = vsel %vm1548_vm7, %v1544_v35, %v2811_v0  ;;  %v1578_v29 = vsel %vm1548_vm7, %v1545_v60, %v2812_v6 }
 0x163   : > { %v2817_v56 = vunpack.i.h.bf16 %v2815_v37  ;;  %v2816_v31 = vunpack.i.l.bf16 %v2815_v37 }
 0x164   : > { %v2830_v46 = vpop.permute.xlu1 %2829 }
 0x165   : > { %v1610_v63 = vsel %vm1581_vm8, %v1577_v42, %v2816_v31  ;;  %v1611_v52 = vsel %vm1581_vm8, %v1578_v29, %v2817_v56  ;;  %v2832_v22 = vunpack.i.h.bf16 %v2830_v46  ;;  %v2831_v34 = vunpack.i.l.bf16 %v2830_v46 }
 0x166   : > { %v2825_v3 = vpop.permute.xlu0 %2824  ;;  %v1643_v11 = vsel %vm1614_vm9, %v1610_v63, %v2821_v47  ;;  %v1644_v33 = vsel %vm1614_vm9, %v1611_v52, %v2822_v45 }
 0x167   : > { %v2827_v2 = vunpack.i.h.bf16 %v2825_v3  ;;  %v2826_v4 = vunpack.i.l.bf16 %v2825_v3  ;;  %v4305_v27 = vpack.c.bf16 %v1644_v33, %v1643_v11 }
 0x168   : > { %v2840_v51 = vpop.permute.xlu1 %2839 }
 0x169   : > { %v1481_v5 = vsel %vm1449_vm4, %v1448_v24, %v2827_v2  ;;  %v1480_v1 = vsel %vm1449_vm4, %v1447_v30, %v2826_v4  ;;  %1923 = vmatprep.mubr.bf16.mxu1 %v4305_v27  ;;  %v2842_v40 = vunpack.i.h.bf16 %v2840_v51  ;;  %v2841_v62 = vunpack.i.l.bf16 %v2840_v51 }
 0x16a   : > { %v2835_v20 = vpop.permute.xlu0 %2834  ;;  %1924 = vmatmul.mubr.bf16.gmra.mrb[16].mxu1 %v4260_v14  ;;  %v1513_v59 = vsel %vm1482_vm5, %v1480_v1, %v2831_v34  ;;  %v1514_v16 = vsel %vm1482_vm5, %v1481_v5, %v2832_v22 }
 0x16b   : > { %v2837_v57 = vunpack.i.h.bf16 %v2835_v20  ;;  %v2836_v50 = vunpack.i.l.bf16 %v2835_v20 }
 0x16c   : > { %v2850_v43 = vpop.permute.xlu1 %2849 }
 0x16d   : > { %v1546_v53 = vsel %vm1515_vm6, %v1513_v59, %v2836_v50  ;;  %v1547_v19 = vsel %vm1515_vm6, %v1514_v16, %v2837_v57  ;;  %v2852_v21 = vunpack.i.h.bf16 %v2850_v43  ;;  %v2851_v61 = vunpack.i.l.bf16 %v2850_v43 }
 0x16e   : > { %v2845_v13 = vpop.permute.xlu0 %2844  ;;  %v1579_v14 = vsel %vm1548_vm7, %v1546_v53, %v2841_v62  ;;  %v1580_v10 = vsel %vm1548_vm7, %v1547_v19, %v2842_v40 }
 0x16f   : > { %v2847_v49 = vunpack.i.h.bf16 %v2845_v13  ;;  %v2846_v12 = vunpack.i.l.bf16 %v2845_v13 }
 0x170   : > { %v2860_v36 = vpop.permute.xlu1 %2859 }
 0x171   : > { %v1612_v17 = vsel %vm1581_vm8, %v1579_v14, %v2846_v12  ;;  %v1613_v39 = vsel %vm1581_vm8, %v1580_v10, %v2847_v49  ;;  %v2862_v28 = vunpack.i.h.bf16 %v2860_v36  ;;  %v2861_v38 = vunpack.i.l.bf16 %v2860_v36 }
 0x172   : > { %v2855_v48 = vpop.permute.xlu0 %2854  ;;  %v1645_v55 = vsel %vm1614_vm9, %v1612_v17, %v2851_v61  ;;  %v1646_v41 = vsel %vm1614_vm9, %v1613_v39, %v2852_v21 }
 0x173   : > { %v2857_v9 = vunpack.i.h.bf16 %v2855_v48  ;;  %v2856_v58 = vunpack.i.l.bf16 %v2855_v48  ;;  %v4325_v32 = vpack.c.bf16 %v1646_v41, %v1645_v55 }
 0x174   : > { %v2870_v6 = vpop.permute.xlu1 %2869 }
 0x175   : > { %v1648_v0 = vsel %vm1416_vm3, %v3696_v8, %v2857_v9  ;;  %v1647_v23 = vsel %vm1416_vm3, %v3694_v18, %v2856_v58  ;;  %1931 = vmatprep.mubr.bf16.mxu1 %v4325_v32  ;;  %v2872_v56 = vunpack.i.h.bf16 %v2870_v6  ;;  %v2871_v31 = vunpack.i.l.bf16 %v2870_v6 }
 0x176   : > { %v2865_v35 = vpop.permute.xlu0 %2864  ;;  %1932 = vmatmul.mubr.bf16.gmra.mrb[20].mxu1 %v4283_v15  ;;  %v1651_v45 = vsel %vm1449_vm4, %v1647_v23, %v2861_v38  ;;  %v1652_v47 = vsel %vm1449_vm4, %v1648_v0, %v2862_v28 }
 0x177   : > { %v2867_v60 = vunpack.i.h.bf16 %v2865_v35  ;;  %v2866_v37 = vunpack.i.l.bf16 %v2865_v35 }
 0x178   : > { %v2880_v26 = vpop.permute.xlu1 %2879 }
 0x179   : > { %v1655_v54 = vsel %vm1482_vm5, %v1651_v45, %v2866_v37  ;;  %v1656_v8 = vsel %vm1482_vm5, %v1652_v47, %v2867_v60  ;;  %v2882_v46 = vunpack.i.h.bf16 %v2880_v26  ;;  %v2881_v63 = vunpack.i.l.bf16 %v2880_v26  ;;  %v4366_v60 = vld [vmem:[%s4409_s2] ss:$0 sm:$0xff] }
 0x17a   : > { %v2875_v44 = vpop.permute.xlu0 %2874  ;;  %v1659_v29 = vsel %vm1515_vm6, %v1655_v54, %v2871_v31  ;;  %v1660_v15 = vsel %vm1515_vm6, %v1656_v8, %v2872_v56 }
 0x17b   : > { %v2877_v18 = vunpack.i.h.bf16 %v2875_v44  ;;  %v2876_v42 = vunpack.i.l.bf16 %v2875_v44 }
 0x17c   : > { %v2890_v52 = vpop.permute.xlu1 %2889 }
 0x17d   : > { %v1663_v3 = vsel %vm1548_vm7, %v1659_v29, %v2876_v42  ;;  %v1664_v11 = vsel %vm1548_vm7, %v1660_v15, %v2877_v18  ;;  %v2892_v22 = vunpack.i.h.bf16 %v2890_v52  ;;  %v2891_v34 = vunpack.i.l.bf16 %v2890_v52 }
 0x17e   : > { %v2885_v33 = vpop.permute.xlu0 %2884  ;;  %v1667_v24 = vsel %vm1581_vm8, %v1663_v3, %v2881_v63  ;;  %v1668_v30 = vsel %vm1581_vm8, %v1664_v11, %v2882_v46 }
 0x17f   : > { %v2887_v2 = vunpack.i.h.bf16 %v2885_v33  ;;  %v2886_v4 = vunpack.i.l.bf16 %v2885_v33  ;;  %v1650_v16 = vsel %vm1416_vm3, %v3831_v25, %v2892_v22  ;;  %v1649_v40 = vsel %vm1416_vm3, %v3829_v7, %v2891_v34 }
 0x180   : > { %v2900_v51 = vpop.permute.xlu1 %2899 }
 0x181   : > { %v1671_v5 = vsel %vm1614_vm9, %v1667_v24, %v2886_v4  ;;  %v1672_v1 = vsel %vm1614_vm9, %v1668_v30, %v2887_v2  ;;  %v2902_v62 = vunpack.i.h.bf16 %v2900_v51  ;;  %v2901_v43 = vunpack.i.l.bf16 %v2900_v51 }
 0x182   : > { %v2895_v20 = vpop.permute.xlu0 %2894  ;;  %v1691_v57 = vpack.c.bf16 %v1672_v1, %v1671_v5 }
 0x183   : > { %v2897_v50 = vunpack.i.h.bf16 %v2895_v20  ;;  %v2896_v59 = vunpack.i.l.bf16 %v2895_v20 }
 0x184   : > { %1939 = vmatprep.mubr.bf16.mxu1 %v1691_v57  ;;  %v2910_v53 = vpop.permute.xlu1 %2909 }
 0x185   : > { %v1654_v19 = vsel %vm1449_vm4, %v1650_v16, %v2897_v50  ;;  %v1653_v13 = vsel %vm1449_vm4, %v1649_v40, %v2896_v59  ;;  %1940 = vmatmul.mubr.bf16.gmra.mrb[24].mxu1 %v4305_v27  ;;  %v2912_v14 = vunpack.i.h.bf16 %v2910_v53  ;;  %v2911_v10 = vunpack.i.l.bf16 %v2910_v53 }
 0x186   : > { %v2905_v21 = vpop.permute.xlu0 %2904  ;;  %v1657_v12 = vsel %vm1482_vm5, %v1653_v13, %v2901_v43  ;;  %v1658_v25 = vsel %vm1482_vm5, %v1654_v19, %v2902_v62 }
 0x187   : > { %v2907_v61 = vunpack.i.h.bf16 %v2905_v21  ;;  %v2906_v49 = vunpack.i.l.bf16 %v2905_v21 }
 0x188   : > { %v2920_v7 = vpop.permute.xlu1 %2919 }
 0x189   : > { %v1661_v36 = vsel %vm1515_vm6, %v1657_v12, %v2906_v49  ;;  %v1662_v17 = vsel %vm1515_vm6, %v1658_v25, %v2907_v61  ;;  %v2922_v48 = vunpack.i.h.bf16 %v2920_v7  ;;  %v2921_v55 = vunpack.i.l.bf16 %v2920_v7 }
 0x18a   : > { %v2915_v39 = vpop.permute.xlu0 %2914  ;;  %v1665_v27 = vsel %vm1548_vm7, %v1661_v36, %v2911_v10  ;;  %v1666_v58 = vsel %vm1548_vm7, %v1662_v17, %v2912_v14 }
 0x18b   : > { %v2917_v41 = vunpack.i.h.bf16 %v2915_v39  ;;  %v2916_v9 = vunpack.i.l.bf16 %v2915_v39 }
 0x18d   : > { %v1669_v28 = vsel %vm1581_vm8, %v1665_v27, %v2916_v9  ;;  %v1670_v38 = vsel %vm1581_vm8, %v1666_v58, %v2917_v41 }
 0x18e   : > { %v1673_v6 = vsel %vm1614_vm9, %v1669_v28, %v2921_v55  ;;  %v1674_v0 = vsel %vm1614_vm9, %v1670_v38, %v2922_v48 }
 0x18f   : > { %v1692_v23 = vpack.c.bf16 %v1674_v0, %v1673_v6 }
 0x191   : > { %1947 = vmatprep.mubr.bf16.mxu1 %v1692_v23 }
 0x192   : > { %1948 = vmatmul.mubr.bf16.gmra.mrb[28].mxu1 %v4325_v32 }
 0x1b7   : > { %v2165_v35 = vpop.f32.mrb[0].mxu0 }
 0x1b8   : > { %v2166_v37 = vpop.f32.mrb[1].mxu0 }
 0x1b9   : > { %v2167_v45 = vadd.f32 %v2166_v37, %v2165_v35  ;;  %v2168_v47 = vpop.f32.mrb[2].mxu0 }
 0x1ba   : > { %v2169_v56 = vpop.f32.mrb[3].mxu0 }
 0x1bb   : > { %v1830_v31 = vadd.f32 %v2167_v45, %v4366_v60  ;;  %v2170_v26 = vadd.f32 %v2169_v56, %v2168_v47 }
 0x1bd   : > { %v1833_v54 = vadd.f32 %v2170_v26, %v4366_v60  ;;  %v1956_v8 = vmax.f32 %v1830_v31, 0.0 }
 0x1bf   : > { %v1957_v44 = vmax.f32 %v1833_v54, 0.0 }
 0x1c1   : > { %v1988_v18 = vadd.f32 %v1957_v44, %v1956_v8 }
 0x1cb   : > { %v2171_v42 = vpop.f32.mrb[4].mxu0 }
 0x1cc   : > { %v2172_v32 = vpop.f32.mrb[5].mxu0 }
 0x1cd   : > { %v2173_v29 = vadd.f32 %v2172_v32, %v2171_v42  ;;  %v2174_v15 = vpop.f32.mrb[6].mxu0 }
 0x1ce   : > { %v2175_v46 = vpop.f32.mrb[7].mxu0 }
 0x1cf   : > { %v1838_v63 = vadd.f32 %v2173_v29, %v4366_v60  ;;  %v2176_v52 = vadd.f32 %v2175_v46, %v2174_v15 }
 0x1d1   : > { %v1958_v3 = vmax.f32 %v1838_v63, 0.0  ;;  %v1841_v11 = vadd.f32 %v2176_v52, %v4366_v60 }
 0x1d3   : > { %v1989_v33 = vadd.f32 %v1988_v18, %v1958_v3  ;;  %v1959_v2 = vmax.f32 %v1841_v11, 0.0 }
 0x1d5   : > { %v1990_v4 = vadd.f32 %v1989_v33, %v1959_v2  ;;  %v2177_v24 = vpop.f32.mrb[8].mxu0 }
 0x1d6   : > { %v2178_v30 = vpop.f32.mrb[9].mxu0 }
 0x1d7   : > { %v2179_v22 = vadd.f32 %v2178_v30, %v2177_v24  ;;  %v2180_v34 = vpop.f32.mrb[10].mxu0 }
 0x1d8   : > { %v2181_v51 = vpop.f32.mrb[11].mxu0 }
 0x1d9   : > { %v1846_v5 = vadd.f32 %v2179_v22, %v4366_v60  ;;  %v2182_v1 = vadd.f32 %v2181_v51, %v2180_v34 }
 0x1db   : > { %v1960_v20 = vmax.f32 %v1846_v5, 0.0  ;;  %v1849_v57 = vadd.f32 %v2182_v1, %v4366_v60 }
 0x1dd   : > { %v1991_v50 = vadd.f32 %v1990_v4, %v1960_v20  ;;  %v1961_v59 = vmax.f32 %v1849_v57, 0.0 }
 0x1df   : > { %v1992_v16 = vadd.f32 %v1991_v50, %v1961_v59 }
 0x1e0   : > { %v2183_v40 = vpop.f32.mrb[12].mxu0 }
 0x1e1   : > { %v2184_v62 = vpop.f32.mrb[13].mxu0 }
 0x1e2   : > { %v2185_v43 = vadd.f32 %v2184_v62, %v2183_v40  ;;  %v2186_v53 = vpop.f32.mrb[14].mxu0 }
 0x1e3   : > { %v2187_v19 = vpop.f32.mrb[15].mxu0 }
 0x1e4   : > { %v1854_v13 = vadd.f32 %v2185_v43, %v4366_v60  ;;  %v2188_v21 = vadd.f32 %v2187_v19, %v2186_v53 }
 0x1e6   : > { %v1962_v61 = vmax.f32 %v1854_v13, 0.0  ;;  %v1857_v49 = vadd.f32 %v2188_v21, %v4366_v60 }
 0x1e8   : > { %v1993_v12 = vadd.f32 %v1992_v16, %v1962_v61  ;;  %v1963_v25 = vmax.f32 %v1857_v49, 0.0 }
 0x1ea   : > { %v1994_v14 = vadd.f32 %v1993_v12, %v1963_v25 }
 0x1f6   : > { %v2189_v10 = vpop.f32.mrb[16].mxu0 }
 0x1f7   : > { %v2190_v7 = vpop.f32.mrb[17].mxu0 }
 0x1f8   : > { %v2191_v36 = vadd.f32 %v2190_v7, %v2189_v10  ;;  %v2192_v17 = vpop.f32.mrb[18].mxu0 }
 0x1f9   : > { %v2193_v39 = vpop.f32.mrb[19].mxu0 }
 0x1fa   : > { %v1862_v48 = vadd.f32 %v2191_v36, %v4366_v60  ;;  %v2194_v55 = vadd.f32 %v2193_v39, %v2192_v17 }
 0x1fc   : > { %v1964_v41 = vmax.f32 %v1862_v48, 0.0  ;;  %v1865_v9 = vadd.f32 %v2194_v55, %v4366_v60  ;;  %v2213_v27 = vpop.f32.mrb[0].mxu1 }
 0x1fd   : > { %v2214_v58 = vpop.f32.mrb[1].mxu1 }
 0x1fe   : > { %v1995_v28 = vadd.f32 %v1994_v14, %v1964_v41  ;;  %v1965_v38 = vmax.f32 %v1865_v9, 0.0  ;;  %v2215_v6 = vadd.f32 %v2214_v58, %v2213_v27  ;;  %v2216_v0 = vpop.f32.mrb[2].mxu1 }
 0x1ff   : > { %v2217_v23 = vpop.f32.mrb[3].mxu1 }
 0x200   : > { %v1996_v35 = vadd.f32 %v1995_v28, %v1965_v38  ;;  %v2218_v37 = vadd.f32 %v2217_v23, %v2216_v0  ;;  %v1894_v25 = vadd.f32 %v2215_v6, %v4366_v60 }
 0x202   : > { %v1897_v7 = vadd.f32 %v2218_v37, %v4366_v60  ;;  %v1972_v48 = vmax.f32 %v1894_v25, 0.0 }
 0x204   : > { %v1973_v28 = vmax.f32 %v1897_v7, 0.0 }
 0x218   : > { %v2195_v45 = vpop.f32.mrb[20].mxu0 }
 0x219   : > { %v2196_v47 = vpop.f32.mrb[21].mxu0 }
 0x21a   : > { %v2197_v56 = vadd.f32 %v2196_v47, %v2195_v45  ;;  %v2198_v31 = vpop.f32.mrb[22].mxu0 }
 0x21b   : > { %v2199_v26 = vpop.f32.mrb[23].mxu0  ;;  %v2219_v54 = vpop.f32.mrb[4].mxu1 }
 0x21c   : > { %v1870_v8 = vadd.f32 %v2197_v56, %v4366_v60  ;;  %v2200_v44 = vadd.f32 %v2199_v26, %v2198_v31  ;;  %v2220_v18 = vpop.f32.mrb[5].mxu1 }
 0x21d   : > { %v2221_v42 = vadd.f32 %v2220_v18, %v2219_v54  ;;  %v2222_v32 = vpop.f32.mrb[6].mxu1 }
 0x21e   : > { %v1966_v29 = vmax.f32 %v1870_v8, 0.0  ;;  %v1873_v15 = vadd.f32 %v2200_v44, %v4366_v60  ;;  %v2223_v46 = vpop.f32.mrb[7].mxu1 }
 0x21f   : > { %v2224_v63 = vadd.f32 %v2223_v46, %v2222_v32  ;;  %v1902_v55 = vadd.f32 %v2221_v42, %v4366_v60 }
 0x220   : > { %v1997_v52 = vadd.f32 %v1996_v35, %v1966_v29  ;;  %v1967_v3 = vmax.f32 %v1873_v15, 0.0  ;;  %v2201_v11 = vpop.f32.mrb[24].mxu0 }
 0x221   : > { %v2202_v33 = vpop.f32.mrb[25].mxu0  ;;  %v1905_v38 = vadd.f32 %v2224_v63, %v4366_v60  ;;  %v1974_v35 = vmax.f32 %v1902_v55, 0.0 }
 0x222   : > { %v1998_v2 = vadd.f32 %v1997_v52, %v1967_v3  ;;  %v2203_v4 = vadd.f32 %v2202_v33, %v2201_v11  ;;  %v2204_v24 = vpop.f32.mrb[26].mxu0 }
 0x223   : > { %v2205_v30 = vpop.f32.mrb[27].mxu0  ;;  %v1975_v47 = vmax.f32 %v1905_v38, 0.0 }
 0x224   : > { %v1878_v22 = vadd.f32 %v2203_v4, %v4366_v60  ;;  %v2206_v34 = vadd.f32 %v2205_v30, %v2204_v24 }
 0x225   : > { %v2225_v51 = vpop.f32.mrb[8].mxu1 }
 0x226   : > { %v1968_v5 = vmax.f32 %v1878_v22, 0.0  ;;  %v1881_v1 = vadd.f32 %v2206_v34, %v4366_v60  ;;  %v2226_v20 = vpop.f32.mrb[9].mxu1 }
 0x227   : > { %v2227_v57 = vadd.f32 %v2226_v20, %v2225_v51  ;;  %v2228_v50 = vpop.f32.mrb[10].mxu1 }
 0x228   : > { %v1999_v59 = vadd.f32 %v1998_v2, %v1968_v5  ;;  %v1969_v16 = vmax.f32 %v1881_v1, 0.0  ;;  %v2207_v40 = vpop.f32.mrb[28].mxu0  ;;  %v2229_v62 = vpop.f32.mrb[11].mxu1 }
 0x229   : > { %v2230_v43 = vadd.f32 %v2229_v62, %v2228_v50  ;;  %v2208_v53 = vpop.f32.mrb[29].mxu0  ;;  %v1910_v45 = vadd.f32 %v2227_v57, %v4366_v60 }
 0x22a   : > { %v2000_v19 = vadd.f32 %v1999_v59, %v1969_v16  ;;  %v2209_v13 = vadd.f32 %v2208_v53, %v2207_v40  ;;  %v2210_v21 = vpop.f32.mrb[30].mxu0 }
 0x22b   : > { %v2211_v61 = vpop.f32.mrb[31].mxu0  ;;  %v1913_v56 = vadd.f32 %v2230_v43, %v4366_v60  ;;  %v1976_v26 = vmax.f32 %v1910_v45, 0.0 }
 0x22c   : > { %v1886_v49 = vadd.f32 %v2209_v13, %v4366_v60  ;;  %v2212_v12 = vadd.f32 %v2211_v61, %v2210_v21 }
 0x22d   : > { %v1977_v44 = vmax.f32 %v1913_v56, 0.0 }
 0x22e   : > { %v1970_v14 = vmax.f32 %v1886_v49, 0.0  ;;  %v1889_v10 = vadd.f32 %v2212_v12, %v4366_v60 }
 0x230   : > { %v2001_v36 = vadd.f32 %v2000_v19, %v1970_v14  ;;  %v1971_v17 = vmax.f32 %v1889_v10, 0.0 }
 0x231   : > { %v2231_v39 = vpop.f32.mrb[12].mxu1 }
 0x232   : > { %v2002_v41 = vadd.f32 %v2001_v36, %v1971_v17  ;;  %v2232_v9 = vpop.f32.mrb[13].mxu1 }
 0x233   : > { %v2233_v27 = vadd.f32 %v2232_v9, %v2231_v39  ;;  %v2234_v58 = vpop.f32.mrb[14].mxu1 }
 0x234   : > { %v2003_v0 = vadd.f32 %v2002_v41, %v1972_v48  ;;  %v2235_v6 = vpop.f32.mrb[15].mxu1 }
 0x235   : > { %v2236_v23 = vadd.f32 %v2235_v6, %v2234_v58  ;;  %v1918_v54 = vadd.f32 %v2233_v27, %v4366_v60 }
 0x236   : > { %v2004_v37 = vadd.f32 %v2003_v0, %v1973_v28 }
 0x237   : > { %v1921_v42 = vadd.f32 %v2236_v23, %v4366_v60  ;;  %v1978_v29 = vmax.f32 %v1918_v54, 0.0 }
 0x238   : > { %v2005_v31 = vadd.f32 %v2004_v37, %v1974_v35 }
 0x239   : > { %v1979_v11 = vmax.f32 %v1921_v42, 0.0 }
 0x23a   : > { %v2006_v8 = vadd.f32 %v2005_v31, %v1975_v47 }
 0x23c   : > { %v2007_v18 = vadd.f32 %v2006_v8, %v1976_v26 }
 0x23d   : > { %v2237_v32 = vpop.f32.mrb[16].mxu1 }
 0x23e   : > { %v2008_v15 = vadd.f32 %v2007_v18, %v1977_v44  ;;  %v2238_v46 = vpop.f32.mrb[17].mxu1 }
 0x23f   : > { %v2239_v63 = vadd.f32 %v2238_v46, %v2237_v32  ;;  %v2240_v52 = vpop.f32.mrb[18].mxu1 }
 0x240   : > { %v2009_v3 = vadd.f32 %v2008_v15, %v1978_v29  ;;  %v2241_v33 = vpop.f32.mrb[19].mxu1 }
 0x241   : > { %v1926_v2 = vadd.f32 %v2239_v63, %v4366_v60  ;;  %v2242_v4 = vadd.f32 %v2241_v33, %v2240_v52 }
 0x242   : > { %v2010_v24 = vadd.f32 %v2009_v3, %v1979_v11 }
 0x243   : > { %v1980_v30 = vmax.f32 %v1926_v2, 0.0  ;;  %v1929_v22 = vadd.f32 %v2242_v4, %v4366_v60 }
 0x245   : > { %v2011_v34 = vadd.f32 %v2010_v24, %v1980_v30  ;;  %v1981_v51 = vmax.f32 %v1929_v22, 0.0 }
 0x247   : > { %v2012_v5 = vadd.f32 %v2011_v34, %v1981_v51 }
 0x249   : > { %v2243_v1 = vpop.f32.mrb[20].mxu1 }
 0x24a   : > { %v2244_v20 = vpop.f32.mrb[21].mxu1 }
 0x24b   : > { %v2245_v57 = vadd.f32 %v2244_v20, %v2243_v1  ;;  %v2246_v50 = vpop.f32.mrb[22].mxu1 }
 0x24c   : > { %v2247_v59 = vpop.f32.mrb[23].mxu1 }
 0x24d   : > { %v1934_v16 = vadd.f32 %v2245_v57, %v4366_v60  ;;  %v2248_v40 = vadd.f32 %v2247_v59, %v2246_v50 }
 0x24f   : > { %v1982_v62 = vmax.f32 %v1934_v16, 0.0  ;;  %v1937_v43 = vadd.f32 %v2248_v40, %v4366_v60 }
 0x251   : > { %v2013_v53 = vadd.f32 %v2012_v5, %v1982_v62  ;;  %v1983_v19 = vmax.f32 %v1937_v43, 0.0 }
 0x253   : > { %v2014_v13 = vadd.f32 %v2013_v53, %v1983_v19 }
 0x258   : > { %v2249_v21 = vpop.f32.mrb[24].mxu1 }
 0x259   : > { %v2250_v61 = vpop.f32.mrb[25].mxu1 }
 0x25a   : > { %v2251_v49 = vadd.f32 %v2250_v61, %v2249_v21  ;;  %v2252_v12 = vpop.f32.mrb[26].mxu1 }
 0x25b   : > { %v2253_v25 = vpop.f32.mrb[27].mxu1 }
 0x25c   : > { %v1942_v14 = vadd.f32 %v2251_v49, %v4366_v60  ;;  %v2254_v10 = vadd.f32 %v2253_v25, %v2252_v12 }
 0x25e   : > { %v1984_v7 = vmax.f32 %v1942_v14, 0.0  ;;  %v1945_v36 = vadd.f32 %v2254_v10, %v4366_v60 }
 0x260   : > { %v2015_v17 = vadd.f32 %v2014_v13, %v1984_v7  ;;  %v1985_v39 = vmax.f32 %v1945_v36, 0.0 }
 0x262   : > { %v2016_v48 = vadd.f32 %v2015_v17, %v1985_v39 }
 0x265   : > { %v2255_v55 = vpop.f32.mrb[28].mxu1 }
 0x266   : > { %v2256_v41 = vpop.f32.mrb[29].mxu1 }
 0x267   : > { %v2257_v9 = vadd.f32 %v2256_v41, %v2255_v55  ;;  %v2258_v27 = vpop.f32.mrb[30].mxu1 }
 0x268   : > { %v2259_v58 = vpop.f32.mrb[31].mxu1 }
 0x269   : > { %v1950_v28 = vadd.f32 %v2257_v9, %v4366_v60  ;;  %v2260_v38 = vadd.f32 %v2259_v58, %v2258_v27 }
 0x26b   : > { %v1986_v0 = vmax.f32 %v1950_v28, 0.0  ;;  %v1953_v6 = vadd.f32 %v2260_v38, %v4366_v60 }
 0x26d   : > { %v2017_v23 = vadd.f32 %v2016_v48, %v1986_v0  ;;  %v1987_v35 = vmax.f32 %v1953_v6, 0.0 }
 0x26f   : > { %v2018_v45 = vadd.f32 %v2017_v23, %v1987_v35 }
 0x271   : > { %v2019_v37 = vrot.slane %v2018_v45, 4 }
 0x273   : > { %v2020_v47 = vadd.f32 %v2019_v37, %v2018_v45 }
 0x275   : > { %v2021_v56 = vrot.slane %v2020_v47, 2 }
 0x277   : > { %v2022_v31 = vadd.f32 %v2021_v56, %v2020_v47 }
 0x279   : > { %v2023_v26 = vrot.slane %v2022_v31, 1 }
 0x27b   : > { %v2024_v54 = vadd.f32 %v2023_v26, %v2022_v31 }
 0x27d   : > { %v2026_v8 = vmul.f32 0.00390625, %v2024_v54 }
 0x27f   : > { %2027 = vst [vmem:[%s166_s9] sm:$0x1] %v2026_v8 }
 0x280 PF: > { %s13_s12 = sadd.s32 1, %s2945_s12  }
 0x281   : > { %p10_p4 = scmp.ge.s32.totalorder %s13_s12, 4  }
 0x283   :  { %12 = sbr.rel (!%p10_p4) target bundleno = 1 (0x1), region = 62 }

// kernel: ensemble_forward.3
= control target key start
LH: loop header
LB: loop body
LE: loop exit
PB: predicated region body
PF: predicated region fallthrough
CT: control target
= control target key end

     0   :  { %v6972_v6 = vmov 0   ;;  %vm199_vm0 = vcmask 1041409   ;;  %vm201_vm1 = vcmask 1043459   ;;  %vm203_vm2 = vcmask 1045509   ;;  %s9206_s0 = inlined_call_operand.vmem [shape: f32[2,128], index: 0, kind: input, shape index: {}]   ;;  %s9207_s1 = inlined_call_operand.vmem [shape: bf16[2,8,768], index: 1, kind: input, shape index: {}]   ;;  %s9208_s2 = inlined_call_operand.vmem [shape: bf16[128,2048], index: 2, kind: input, shape index: {}]   ;;  %s9209_s3 = inlined_call_operand.vmem [shape: f32[1,2048], index: 3, kind: input, shape index: {}]   ;;  %s9210_s4 = inlined_call_operand.vmem [shape: bf16[768,768], index: 4, kind: input, shape index: {}]   ;;  %s9211_s5 = inlined_call_operand.vmem [shape: f32[1,768], index: 5, kind: input, shape index: {}]   ;;  %s9212_s6 = inlined_call_operand.vmem [shape: bf16[2048,128], index: 6, kind: input, shape index: {}]   ;;  %s9213_s7 = inlined_call_operand.vmem [shape: bf16[768,128], index: 7, kind: input, shape index: {}]   ;;  %s9214_s8 = inlined_call_operand.vmem [shape: f32[1,128], index: 8, kind: input, shape index: {}]   ;;  %s9215_s9 = inlined_call_operand.hbm [shape: f32[2,128], index: 9, kind: output, shape index: {}]  }
   0x1   :  { %v225_v0 = vld [vmem:[%s9208_s2] sm:$0xff]  ;;  %1109 = vmatprep.mubr.bf16.mxu0 %v6972_v6  ;;  %1150 = vmatprep.mubr.bf16.mxu1 %v6972_v6  ;;  %v226_v12 = vld [vmem:[%s9208_s2 + $0x8] sm:$0xff]  ;;  %v227_v58 = vld [vmem:[%s9208_s2 + $0x10] sm:$0xff]  ;;  %vm205_vm3 = vcmask 1047559  }
   0x2   :  { %v233_v1 = vld [vmem:[%s9208_s2 + $0x40] sm:$0xff]  ;;  %v234_v13 = vld [vmem:[%s9208_s2 + $0x48] sm:$0xff]  ;;  %v235_v59 = vld [vmem:[%s9208_s2 + $0x50] sm:$0xff] }
   0x3   :  { %v241_v2 = vld [vmem:[%s9208_s2 + $0x80] sm:$0xff]  ;;  %v5471_v3 = vcombine.high %v225_v0, %v233_v1  ;;  %v5470_v4 = vcombine.low %v225_v0, %v233_v1  ;;  %v5473_v16 = vcombine.high %v226_v12, %v234_v13  ;;  %v5472_v17 = vcombine.low %v226_v12, %v234_v13  ;;  %v242_v18 = vld [vmem:[%s9208_s2 + $0x88] sm:$0xff]  ;;  %v259_v13 = vld [vmem:[%s9208_s2 + $0x110] sm:$0xff] }
   0x4   :  { %v249_v5 = vld [vmem:[%s9208_s2 + $0xc0] sm:$0xff]  ;;  %v250_v19 = vld [vmem:[%s9208_s2 + $0xc8] sm:$0xff]  ;;  %v5475_v1 = vcombine.high %v227_v58, %v235_v59 }
   0x5   :  { %v5487_v7 = vcombine.high %v241_v2, %v249_v5  ;;  %v257_v8 = vld [vmem:[%s9208_s2 + $0x100] sm:$0xff]  ;;  %1077 = vmatprep.subr.bf16.mxu0 %v5471_v3  ;;  %v5486_v10 = vcombine.low %v241_v2, %v249_v5  ;;  %1118 = vmatprep.subr.bf16.mxu1 %v5473_v16  ;;  %v5489_v21 = vcombine.high %v242_v18, %v250_v19  ;;  %v258_v22 = vld [vmem:[%s9208_s2 + $0x108] sm:$0xff]  ;;  %v243_v3 = vld [vmem:[%s9208_s2 + $0x90] sm:$0xff] }
   0x6   :  { %v265_v9 = vld [vmem:[%s9208_s2 + $0x140] sm:$0xff]  ;;  %1078 = vmatpush1.bf16.msra.mxu0 %v5470_v4  ;;  %v266_v23 = vld [vmem:[%s9208_s2 + $0x148] sm:$0xff]  ;;  %1119 = vmatpush1.bf16.msra.mxu1 %v5472_v17  ;;  %v5488_v25 = vcombine.low %v242_v18, %v250_v19  ;;  %v251_v4 = vld [vmem:[%s9208_s2 + $0xd0] sm:$0xff] }
   0x7   :  { %1079 = vmatprep.subr.bf16.mxu0 %v5487_v7  ;;  %v5503_v11 = vcombine.high %v257_v8, %v265_v9  ;;  %v273_v14 = vld [vmem:[%s9208_s2 + $0x180] sm:$0xff]  ;;  %v5502_v20 = vcombine.low %v257_v8, %v265_v9  ;;  %1120 = vmatprep.subr.bf16.mxu1 %v5489_v21  ;;  %v5505_v28 = vcombine.high %v258_v22, %v266_v23  ;;  %v274_v29 = vld [vmem:[%s9208_s2 + $0x188] sm:$0xff]  ;;  %v228_v8 = vld [vmem:[%s9208_s2 + $0x18] sm:$0xff] }
   0x8   :  { %v281_v15 = vld [vmem:[%s9208_s2 + $0x1c0] sm:$0xff]  ;;  %v282_v30 = vld [vmem:[%s9208_s2 + $0x1c8] sm:$0xff]  ;;  %v5504_v33 = vcombine.low %v258_v22, %v266_v23  ;;  %v236_v9 = vld [vmem:[%s9208_s2 + $0x58] sm:$0xff]  ;;  %v5490_v18 = vcombine.low %v243_v3, %v251_v4 }
   0x9   :  { %v5519_v24 = vcombine.high %v273_v14, %v281_v15  ;;  %v289_v26 = vld [vmem:[%s9208_s2 + $0x200] sm:$0xff]  ;;  %v5518_v31 = vcombine.low %v273_v14, %v281_v15  ;;  %v5521_v36 = vcombine.high %v274_v29, %v282_v30  ;;  %v290_v37 = vld [vmem:[%s9208_s2 + $0x208] sm:$0xff]  ;;  %v5520_v41 = vcombine.low %v274_v29, %v282_v30  ;;  %v267_v14 = vld [vmem:[%s9208_s2 + $0x150] sm:$0xff] }
   0xa   :  { %1080 = vmatpush1.bf16.msra.mxu0 %v5486_v10  ;;  %v297_v27 = vld [vmem:[%s9208_s2 + $0x240] sm:$0xff]  ;;  %1121 = vmatpush1.bf16.msra.mxu1 %v5488_v25  ;;  %v298_v38 = vld [vmem:[%s9208_s2 + $0x248] sm:$0xff]  ;;  %v5474_v10 = vcombine.low %v227_v58, %v235_v59  ;;  %v5477_v15 = vcombine.high %v228_v8, %v236_v9  ;;  %v244_v16 = vld [vmem:[%s9208_s2 + $0x98] sm:$0xff]  ;;  %v5507_v19 = vcombine.high %v259_v13, %v267_v14 }
   0xb   :  { %1081 = vmatprep.subr.bf16.mxu0 %v5503_v11  ;;  %v5535_v32 = vcombine.high %v289_v26, %v297_v27  ;;  %v305_v34 = vld [vmem:[%s9208_s2 + $0x280] sm:$0xff]  ;;  %1122 = vmatprep.subr.bf16.mxu1 %v5505_v28  ;;  %v5534_v39 = vcombine.low %v289_v26, %v297_v27  ;;  %v5537_v44 = vcombine.high %v290_v37, %v298_v38  ;;  %v306_v45 = vld [vmem:[%s9208_s2 + $0x288] sm:$0xff]  ;;  %v252_v17 = vld [vmem:[%s9208_s2 + $0xd8] sm:$0xff] }
   0xc   :  { %v313_v35 = vld [vmem:[%s9208_s2 + $0x2c0] sm:$0xff]  ;;  %v314_v46 = vld [vmem:[%s9208_s2 + $0x2c8] sm:$0xff]  ;;  %v5536_v49 = vcombine.low %v290_v37, %v298_v38  ;;  %v5491_v11 = vcombine.high %v243_v3, %v251_v4  ;;  %v5476_v21 = vcombine.low %v228_v8, %v236_v9  ;;  %v283_v22 = vld [vmem:[%s9208_s2 + $0x1d0] sm:$0xff]  ;;  %v5493_v23 = vcombine.high %v244_v16, %v252_v17 }
   0xd   :  { %v5551_v40 = vcombine.high %v305_v34, %v313_v35  ;;  %v321_v42 = vld [vmem:[%s9208_s2 + $0x300] sm:$0xff]  ;;  %v5550_v47 = vcombine.low %v305_v34, %v313_v35  ;;  %v5553_v52 = vcombine.high %v306_v45, %v314_v46  ;;  %v322_v53 = vld [vmem:[%s9208_s2 + $0x308] sm:$0xff]  ;;  %v5552_v57 = vcombine.low %v306_v45, %v314_v46  ;;  %v268_v25 = vld [vmem:[%s9208_s2 + $0x158] sm:$0xff] }
   0xe   :  { %1082 = vmatpush1.bf16.msra.mxu0 %v5502_v20  ;;  %1123 = vmatpush1.bf16.msra.mxu1 %v5504_v33  ;;  %v329_v43 = vld [vmem:[%s9208_s2 + $0x340] sm:$0xff]  ;;  %v330_v54 = vld [vmem:[%s9208_s2 + $0x348] sm:$0xff]  ;;  %v275_v20 = vld [vmem:[%s9208_s2 + $0x190] sm:$0xff]  ;;  %v5506_v26 = vcombine.low %v259_v13, %v267_v14  ;;  %v5492_v29 = vcombine.low %v244_v16, %v252_v17 }
   0xf   :  { %1083 = vmatprep.subr.bf16.mxu0 %v5519_v24  ;;  %1124 = vmatprep.subr.bf16.mxu1 %v5521_v36  ;;  %v5567_v48 = vcombine.high %v321_v42, %v329_v43  ;;  %v337_v50 = vld [vmem:[%s9208_s2 + $0x380] sm:$0xff]  ;;  %v5566_v55 = vcombine.low %v321_v42, %v329_v43  ;;  %v5569_v60 = vcombine.high %v322_v53, %v330_v54  ;;  %v338_v61 = vld [vmem:[%s9208_s2 + $0x388] sm:$0xff]  ;;  %v260_v24 = vld [vmem:[%s9208_s2 + $0x118] sm:$0xff] }
  0x10   :  { %v345_v51 = vld [vmem:[%s9208_s2 + $0x3c0] sm:$0xff]  ;;  %v346_v62 = vld [vmem:[%s9208_s2 + $0x3c8] sm:$0xff]  ;;  %v5568_v2 = vcombine.low %v322_v53, %v330_v54  ;;  %v5523_v27 = vcombine.high %v275_v20, %v283_v22  ;;  %v291_v28 = vld [vmem:[%s9208_s2 + $0x210] sm:$0xff]  ;;  %v5522_v34 = vcombine.low %v275_v20, %v283_v22  ;;  %v5508_v37 = vcombine.low %v260_v24, %v268_v25 }
  0x11   :  { %v5583_v56 = vcombine.high %v337_v50, %v345_v51  ;;  %v5582_v63 = vcombine.low %v337_v50, %v345_v51  ;;  %v223_v0 = vld [vmem:[%s9206_s0] sm:$0x3]  ;;  %v5585_v5 = vcombine.high %v338_v61, %v346_v62  ;;  %v5584_v12 = vcombine.low %v338_v61, %v346_v62  ;;  %v299_v30 = vld [vmem:[%s9208_s2 + $0x250] sm:$0xff]  ;;  %v284_v33 = vld [vmem:[%s9208_s2 + $0x1d8] sm:$0xff] }
  0x12   :  { %1084 = vmatpush1.bf16.msra.mxu0 %v5518_v31  ;;  %1125 = vmatpush1.bf16.msra.mxu1 %v5520_v41  ;;  %v7139_v7 = vpack.c.bf16 %v223_v0, %v223_v0  ;;  %v5509_v31 = vcombine.high %v260_v24, %v268_v25  ;;  %v5539_v35 = vcombine.high %v291_v28, %v299_v30  ;;  %v307_v36 = vld [vmem:[%s9208_s2 + $0x290] sm:$0xff]  ;;  %v300_v41 = vld [vmem:[%s9208_s2 + $0x258] sm:$0xff]  ;;  %v6973_v62 = vmov 0.0   ;;  %v253_v9 = vld [vmem:[%s9208_s2 + $0xe0] sm:$0xff] }
  0x13   :  { %1085 = vmatprep.subr.bf16.mxu0 %v5535_v32  ;;  %1126 = vmatprep.subr.bf16.mxu1 %v5537_v44  ;;  %v276_v32 = vld [vmem:[%s9208_s2 + $0x198] sm:$0xff]  ;;  %v315_v38 = vld [vmem:[%s9208_s2 + $0x2d0] sm:$0xff]  ;;  %v5538_v42 = vcombine.low %v291_v28, %v299_v30  ;;  %39 = vst [vmem:[#allocation2 + $0x8] sm:$0xf] %v6973_v62  ;;  %v7255_v16 = vld [vmem:[%s9208_s2 + $0x160] sm:$0xff] }
  0x14   :  { %v5555_v43 = vcombine.high %v307_v36, %v315_v38  ;;  %v323_v44 = vld [vmem:[%s9208_s2 + $0x310] sm:$0xff]  ;;  %v5524_v45 = vcombine.low %v276_v32, %v284_v33  ;;  %v5554_v50 = vcombine.low %v307_v36, %v315_v38  ;;  %v7270_v20 = vld [vmem:[%s9208_s2 + $0x220] sm:$0xff]  ;;  %v6974_v30 = vmov 1983009808   ;;  %v7327_v38 = vld [vmem:[%s9208_s2 + $0x168] sm:$0xff] }
  0x15   :  { %v331_v46 = vld [vmem:[%s9208_s2 + $0x350] sm:$0xff]  ;;  %v7286_v24 = vld [vmem:[%s9208_s2 + $0x2a0] sm:$0xff] }
  0x16   :  { %1086 = vmatpush1.bf16.msra.mxu0 %v5534_v39  ;;  %1127 = vmatpush1.bf16.msra.mxu1 %v5536_v49  ;;  %v5525_v39 = vcombine.high %v276_v32, %v284_v33  ;;  %v316_v49 = vld [vmem:[%s9208_s2 + $0x2d8] sm:$0xff]  ;;  %v5571_v51 = vcombine.high %v323_v44, %v331_v46  ;;  %v347_v54 = vld [vmem:[%s9208_s2 + $0x3d0] sm:$0xff]  ;;  %v5570_v58 = vcombine.low %v323_v44, %v331_v46  ;;  %v7291_v25 = vld [vmem:[%s9208_s2 + $0x2e0] sm:$0xff]  ;;  %v149_v32 = vlaneseq }
  0x17   :  { %1087 = vmatprep.subr.bf16.mxu0 %v5551_v40  ;;  %1128 = vmatprep.subr.bf16.mxu1 %v5553_v52  ;;  %v292_v40 = vld [vmem:[%s9208_s2 + $0x218] sm:$0xff]  ;;  %v339_v52 = vld [vmem:[%s9208_s2 + $0x390] sm:$0xff]  ;;  %v7299_v28 = vld [vmem:[%s9208_s2 + $0x320] sm:$0xff] }
  0x18   :  { %v5540_v53 = vcombine.low %v292_v40, %v300_v41  ;;  %v5587_v59 = vcombine.high %v339_v52, %v347_v54  ;;  %v5586_v3 = vcombine.low %v339_v52, %v347_v54  ;;  %v7350_v44 = vld [vmem:[%s9208_s2 + $0x268] sm:$0xff]  ;;  %v7375_v54 = vshrl.u32 %v149_v32, 7 }
  0x19   :  { %v7373_v52 = vld [vmem:[%s9208_s2 + $0x2e8] sm:$0xff] }
  0x1a   :  { %1088 = vmatpush1.bf16.msra.mxu0 %v5550_v47  ;;  %1129 = vmatpush1.bf16.msra.mxu1 %v5552_v57  ;;  %v5541_v47 = vcombine.high %v292_v40, %v300_v41  ;;  %v332_v57 = vld [vmem:[%s9208_s2 + $0x358] sm:$0xff]  ;;  %v7335_v41 = vld [vmem:[%s9208_s2 + $0x1a8] sm:$0xff] }
  0x1b   :  { %1089 = vmatprep.subr.bf16.mxu0 %v5567_v48  ;;  %1130 = vmatprep.subr.bf16.mxu1 %v5569_v60  ;;  %v308_v48 = vld [vmem:[%s9208_s2 + $0x298] sm:$0xff]  ;;  %v229_v60 = vld [vmem:[%s9208_s2 + $0x20] sm:$0xff] }
  0x1c   :  { %v5556_v61 = vcombine.low %v308_v48, %v316_v49 }
  0x1e   :  { %1090 = vmatpush1.bf16.msra.mxu0 %v5566_v55  ;;  %1131 = vmatpush1.bf16.msra.mxu1 %v5568_v2  ;;  %v5557_v55 = vcombine.high %v308_v48, %v316_v49  ;;  %v348_v2 = vld [vmem:[%s9208_s2 + $0x3d8] sm:$0xff]  ;;  %v7363_v49 = vld [vmem:[%s9208_s2 + $0x2a8] sm:$0xff] }
  0x1f   :  { %1091 = vmatprep.subr.bf16.mxu0 %v5583_v56  ;;  %1132 = vmatprep.subr.bf16.mxu1 %v5585_v5  ;;  %v324_v56 = vld [vmem:[%s9208_s2 + $0x318] sm:$0xff]  ;;  %v245_v5 = vld [vmem:[%s9208_s2 + $0xa0] sm:$0xff] }
  0x20   :  { %v5573_v0 = vcombine.high %v324_v56, %v332_v57  ;;  %v5572_v8 = vcombine.low %v324_v56, %v332_v57  ;;  %v5495_v14 = vcombine.high %v245_v5, %v253_v9 }
  0x22   :  { %1092 = vmatpush1.bf16.msra.mxu0 %v5582_v63  ;;  %1133 = vmatpush1.bf16.msra.mxu1 %v5584_v12  ;;  %v237_v63 = vld [vmem:[%s9208_s2 + $0x60] sm:$0xff]  ;;  %v238_v12 = vld [vmem:[%s9208_s2 + $0x68] sm:$0xff] }
  0x23   :  { %1159 = vmatprep.subr.bf16.mxu0 %v5475_v1  ;;  %1200 = vmatprep.subr.bf16.mxu1 %v5477_v15  ;;  %v340_v1 = vld [vmem:[%s9208_s2 + $0x398] sm:$0xff]  ;;  %v5479_v4 = vcombine.high %v229_v60, %v237_v63  ;;  %v5478_v13 = vcombine.low %v229_v60, %v237_v63  ;;  %v7250_v15 = vld [vmem:[%s9208_s2 + $0x120] sm:$0xff] }
  0x24   :  { %v5588_v17 = vcombine.low %v340_v1, %v348_v2  ;;  %v5511_v33 = vcombine.high %v7250_v15, %v7255_v16 }
  0x25   :  { %1110 = vmatmul.mubr.bf16.vlgmr.msra.gmra.mrb[0].mxu0 %v7139_v7  ;;  %1151 = vmatmul.mubr.bf16.vlgmr.msra.gmra.mrb[0].mxu1 %v7139_v7 }
  0x26   :  { %1160 = vmatpush1.bf16.msra.mxu0 %v5474_v10  ;;  %1191 = vmatprep.mubr.bf16.mxu0 %v6972_v6  ;;  %v5589_v10 = vcombine.high %v340_v1, %v348_v2 }
  0x27   :  { %1161 = vmatprep.subr.bf16.mxu0 %v5491_v11  ;;  %1201 = vmatpush1.bf16.msra.mxu1 %v5476_v21  ;;  %v230_v11 = vld [vmem:[%s9208_s2 + $0x28] sm:$0xff]  ;;  %v7275_v21 = vld [vmem:[%s9208_s2 + $0x260] sm:$0xff] }
  0x28   :  { %1202 = vmatprep.subr.bf16.mxu1 %v5493_v23  ;;  %1232 = vmatprep.mubr.bf16.mxu1 %v6972_v6  ;;  %v5481_v22 = vcombine.high %v230_v11, %v238_v12  ;;  %v7280_v23 = vld [vmem:[%s9208_s2 + $0xa8] sm:$0xff]  ;;  %v5480_v36 = vcombine.low %v230_v11, %v238_v12  ;;  %v5543_v48 = vcombine.high %v7270_v20, %v7275_v21  ;;  %v45_v11 = vld [vmem:[%s9207_s1 + $0x18] sm:$0xff]  ;;  %v46_v12 = vld [vmem:[%s9207_s1 + $0x20] sm:$0xff] }
  0x2a   :  { %1162 = vmatpush1.bf16.msra.mxu0 %v5490_v18  ;;  %v7260_v18 = vld [vmem:[%s9208_s2 + $0x1a0] sm:$0xff] }
  0x2b   :  { %1163 = vmatprep.subr.bf16.mxu0 %v5507_v19  ;;  %1203 = vmatpush1.bf16.msra.mxu1 %v5492_v29  ;;  %v7265_v19 = vld [vmem:[%s9208_s2 + $0x1e0] sm:$0xff] }
  0x2c   :  { %1204 = vmatprep.subr.bf16.mxu1 %v5509_v31  ;;  %v7304_v29 = vld [vmem:[%s9208_s2 + $0x360] sm:$0xff]  ;;  %v147_v31 = vunpack.c.l.s4 %v6974_v30  ;;  %v5527_v46 = vcombine.high %v7260_v18, %v7265_v19 }
  0x2d   :  { %v5575_v56 = vcombine.high %v7299_v28, %v7304_v29 }
  0x2e   :  { %1164 = vmatpush1.bf16.msra.mxu0 %v5506_v26  ;;  %v254_v26 = vld [vmem:[%s9208_s2 + $0xe8] sm:$0xff] }
  0x2f   :  { %1165 = vmatprep.subr.bf16.mxu0 %v5523_v27  ;;  %1205 = vmatpush1.bf16.msra.mxu1 %v5508_v37  ;;  %v5494_v27 = vcombine.low %v245_v5, %v253_v9  ;;  %v7322_v37 = vld [vmem:[%s9208_s2 + $0x128] sm:$0xff]  ;;  %v5497_v40 = vcombine.high %v7280_v23, %v254_v26  ;;  %v5496_v57 = vcombine.low %v7280_v23, %v254_v26 }
  0x30   :  { %1206 = vmatprep.subr.bf16.mxu1 %v5525_v39  ;;  %v5510_v39 = vcombine.low %v7250_v15, %v7255_v16  ;;  %v5513_v62 = vcombine.high %v7322_v37, %v7327_v38  ;;  %v43_v9 = vld [vmem:[%s9207_s1 + $0x8] sm:$0xff] }
  0x31   :  { %v50_v15 = vunpack.c.l.bf16 %v43_v9  ;;  %v51_v16 = vunpack.c.h.bf16 %v43_v9 }
  0x32   :  { %1166 = vmatpush1.bf16.msra.mxu0 %v5522_v34  ;;  %v7312_v34 = vld [vmem:[%s9208_s2 + $0x3a0] sm:$0xff] }
  0x33   :  { %1167 = vmatprep.subr.bf16.mxu0 %v5539_v35  ;;  %1207 = vmatpush1.bf16.msra.mxu1 %v5524_v45  ;;  %v7317_v35 = vld [vmem:[%s9208_s2 + $0x3e0] sm:$0xff]  ;;  %v5526_v45 = vcombine.low %v7260_v18, %v7265_v19  ;;  %v55_v18 = vunpack.c.h.bf16 %v45_v11  ;;  %v56_v19 = vunpack.c.l.bf16 %v46_v12  ;;  %v78_v30 = vrot.slane %v51_v16, 4 }
  0x34   :  { %1208 = vmatprep.subr.bf16.mxu1 %v5541_v47  ;;  %v5542_v47 = vcombine.low %v7270_v20, %v7275_v21  ;;  %v5591_v60 = vcombine.high %v7312_v34, %v7317_v35 }
  0x35   :  { %v102_v32 = vrot.slane %v55_v18, 4 }
  0x36   :  { %1168 = vmatpush1.bf16.msra.mxu0 %v5538_v42  ;;  %v7340_v42 = vld [vmem:[%s9208_s2 + $0x1e8] sm:$0xff] }
  0x37   :  { %1169 = vmatprep.subr.bf16.mxu0 %v5555_v43  ;;  %1209 = vmatpush1.bf16.msra.mxu1 %v5540_v53  ;;  %v7345_v43 = vld [vmem:[%s9208_s2 + $0x228] sm:$0xff]  ;;  %v148_v53 = vunpack.c.0.s8 %v147_v31  ;;  %v5528_v63 = vcombine.low %v7335_v41, %v7340_v42 }
  0x38   :  { %1210 = vmatprep.subr.bf16.mxu1 %v5557_v55  ;;  %v5574_v55 = vcombine.low %v7299_v28, %v7304_v29  ;;  %v5544_v1 = vcombine.low %v7345_v43, %v7350_v44  ;;  %v5545_v2 = vcombine.high %v7345_v43, %v7350_v44  ;;  %v350_v43 = vld [vmem:[%s9208_s2 + $0x3e8] sm:$0xff] }
  0x3a   :  { %1170 = vmatpush1.bf16.msra.mxu0 %v5554_v50  ;;  %v5558_v50 = vcombine.low %v7286_v24, %v7291_v25 }
  0x3b   :  { %1171 = vmatprep.subr.bf16.mxu0 %v5571_v51  ;;  %1211 = vmatpush1.bf16.msra.mxu1 %v5556_v61  ;;  %v5559_v51 = vcombine.high %v7286_v24, %v7291_v25  ;;  %v5512_v61 = vcombine.low %v7322_v37, %v7327_v38 }
  0x3c   :  { %1212 = vmatprep.subr.bf16.mxu1 %v5573_v0  ;;  %v5529_v0 = vcombine.high %v7335_v41, %v7340_v42  ;;  %v103_v42 = vadd.f32 %v102_v32, %v55_v18 }
  0x3e   :  { %1172 = vmatpush1.bf16.msra.mxu0 %v5570_v58  ;;  %v7385_v58 = vld [vmem:[%s9208_s2 + $0x328] sm:$0xff] }
  0x3f   :  { %1173 = vmatprep.subr.bf16.mxu0 %v5587_v59  ;;  %1213 = vmatpush1.bf16.msra.mxu1 %v5572_v8  ;;  %v7390_v59 = vld [vmem:[%s9208_s2 + $0x368] sm:$0xff]  ;;  %v42_v8 = vld [vmem:[%s9207_s1] sm:$0xff] }
  0x40   :  { %1214 = vmatprep.subr.bf16.mxu1 %v5589_v10  ;;  %v5577_v5 = vcombine.high %v7385_v58, %v7390_v59  ;;  %v7420_v10 = vsub.s32 %v148_v53, %v7375_v54  ;;  %v5576_v28 = vcombine.low %v7385_v58, %v7390_v59  ;;  %v263_v58 = vld [vmem:[%s9208_s2 + $0x130] sm:$0xff] }
  0x41   :  { %v271_v59 = vld [vmem:[%s9208_s2 + $0x170] sm:$0xff] }
  0x42   :  { %1174 = vmatpush1.bf16.msra.mxu0 %v5586_v3  ;;  %v5560_v3 = vcombine.low %v7363_v49, %v7373_v52 }
  0x43   :  { %1241 = vmatprep.subr.bf16.mxu0 %v5479_v4  ;;  %1215 = vmatpush1.bf16.msra.mxu1 %v5588_v17  ;;  %v5561_v4 = vcombine.high %v7363_v49, %v7373_v52  ;;  %v54_v17 = vunpack.c.l.bf16 %v45_v11  ;;  %v240_v52 = vld [vmem:[%s9208_s2 + $0x78] sm:$0xff] }
  0x44   :  { %1282 = vmatprep.subr.bf16.mxu1 %v5481_v22  ;;  %v57_v22 = vunpack.c.h.bf16 %v46_v12 }
  0x45   :  { %1192 = vmatmul.mubr.bf16.vlgmr.msra.gmra.mrb[4].mxu0 %v7139_v7  ;;  %v96_v31 = vrot.slane %v54_v17, 4 }
  0x46   :  { %1242 = vmatpush1.bf16.msra.mxu0 %v5478_v13  ;;  %1273 = vmatprep.mubr.bf16.mxu0 %v6972_v6  ;;  %v48_v13 = vunpack.c.l.bf16 %v42_v8 }
  0x47   :  { %1243 = vmatprep.subr.bf16.mxu0 %v5495_v14  ;;  %1233 = vmatmul.mubr.bf16.vlgmr.msra.gmra.mrb[4].mxu1 %v7139_v7  ;;  %v49_v14 = vunpack.c.h.bf16 %v42_v8  ;;  %v97_v41 = vadd.f32 %v96_v31, %v54_v17 }
  0x48   :  { %1283 = vmatpush1.bf16.msra.mxu1 %v5480_v36  ;;  %1314 = vmatprep.mubr.bf16.mxu1 %v6972_v6  ;;  %v60_v23 = vrot.slane %v48_v13, 4  ;;  %v114_v36 = vrot.slane %v57_v22, 4 }
  0x49   :  { %1284 = vmatprep.subr.bf16.mxu1 %v5497_v40  ;;  %v66_v26 = vrot.slane %v49_v14, 4  ;;  %v79_v40 = vadd.f32 %v78_v30, %v51_v16  ;;  %v98_v9 = vrot.slane %v97_v41, 2 }
  0x4a   :  { %1244 = vmatpush1.bf16.msra.mxu0 %v5494_v27  ;;  %v72_v27 = vrot.slane %v50_v15, 4  ;;  %v61_v37 = vadd.f32 %v60_v23, %v48_v13  ;;  %v115_v8 = vadd.f32 %v114_v36, %v57_v22  ;;  %v239_v23 = vld [vmem:[%s9208_s2 + $0x70] sm:$0xff] }
  0x4b   :  { %1245 = vmatprep.subr.bf16.mxu0 %v5511_v33  ;;  %v108_v33 = vrot.slane %v56_v19, 4  ;;  %v67_v38 = vadd.f32 %v66_v26, %v49_v14 }
  0x4c   :  { %1285 = vmatpush1.bf16.msra.mxu1 %v5496_v57  ;;  %v62_v53 = vrot.slane %v61_v37, 2  ;;  %v116_v13 = vrot.slane %v115_v8, 2 }
  0x4d   :  { %1286 = vmatprep.subr.bf16.mxu1 %v5513_v62  ;;  %v68_v57 = vrot.slane %v67_v38, 2 }
  0x4e   :  { %1246 = vmatpush1.bf16.msra.mxu0 %v5510_v39  ;;  %v73_v39 = vadd.f32 %v72_v27, %v50_v15  ;;  %v99_v15 = vadd.f32 %v98_v9, %v97_v41  ;;  %v117_v18 = vadd.f32 %v116_v13, %v115_v8  ;;  %v5515_v9 = vcombine.high %v263_v58, %v271_v59  ;;  %v264_v13 = vld [vmem:[%s9208_s2 + $0x138] sm:$0xff] }
  0x4f   :  { %1247 = vmatprep.subr.bf16.mxu0 %v5527_v46  ;;  %v109_v46 = vadd.f32 %v108_v33, %v56_v19  ;;  %v69_v11 = vadd.f32 %v68_v57, %v67_v38  ;;  %v247_v38 = vld [vmem:[%s9208_s2 + $0xb0] sm:$0xff]  ;;  %v248_v57 = vld [vmem:[%s9208_s2 + $0xb8] sm:$0xff] }
  0x50   :  { %1287 = vmatpush1.bf16.msra.mxu1 %v5512_v61  ;;  %v74_v62 = vrot.slane %v73_v39, 2  ;;  %v118_v26 = vrot.slane %v117_v18, 1 }
  0x51   :  { %1288 = vmatprep.subr.bf16.mxu1 %v5529_v0  ;;  %v110_v61 = vrot.slane %v109_v46, 2  ;;  %v63_v0 = vadd.f32 %v62_v53, %v61_v37  ;;  %v70_v21 = vrot.slane %v69_v11, 1 }
  0x52   :  { %1248 = vmatpush1.bf16.msra.mxu0 %v5526_v45  ;;  %v80_v45 = vrot.slane %v79_v40, 2  ;;  %v75_v12 = vadd.f32 %v74_v62, %v73_v39  ;;  %v119_v44 = vadd.f32 %v118_v26, %v117_v18  ;;  %v255_v39 = vld [vmem:[%s9208_s2 + $0xf0] sm:$0xff]  ;;  %v256_v62 = vld [vmem:[%s9208_s2 + $0xf8] sm:$0xff] }
  0x53   :  { %1249 = vmatprep.subr.bf16.mxu0 %v5543_v48  ;;  %v104_v48 = vrot.slane %v103_v42, 2  ;;  %v111_v17 = vadd.f32 %v110_v61, %v109_v46  ;;  %v64_v20 = vrot.slane %v63_v0, 1  ;;  %v71_v25 = vadd.f32 %v70_v21, %v69_v11  ;;  %v287_v61 = vld [vmem:[%s9208_s2 + $0x1f0] sm:$0xff]  ;;  %v296_v26 = vld [vmem:[%s9208_s2 + $0x238] sm:$0xff] }
  0x54   :  { %1289 = vmatpush1.bf16.msra.mxu1 %v5528_v63  ;;  %v81_v14 = vadd.f32 %v80_v45, %v79_v40  ;;  %v5499_v41 = vcombine.high %v247_v38, %v255_v39  ;;  %v5498_v45 = vcombine.low %v247_v38, %v255_v39  ;;  %v303_v18 = vld [vmem:[%s9208_s2 + $0x270] sm:$0xff] }
  0x55   :  { %1290 = vmatprep.subr.bf16.mxu1 %v5545_v2  ;;  %v105_v16 = vadd.f32 %v104_v48, %v103_v42  ;;  %v112_v22 = vrot.slane %v111_v17, 1  ;;  %v231_v2 = vld [vmem:[%s9208_s2 + $0x30] sm:$0xff]  ;;  %v65_v24 = vadd.f32 %v64_v20, %v63_v0 }
  0x56   :  { %1250 = vmatpush1.bf16.msra.mxu0 %v5542_v47  ;;  %v76_v47 = vrot.slane %v75_v12, 1  ;;  %v82_v19 = vrot.slane %v81_v14, 1  ;;  %v5483_v33 = vcombine.high %v231_v2, %v239_v23  ;;  %v5482_v40 = vcombine.low %v231_v2, %v239_v23  ;;  %v279_v48 = vld [vmem:[%s9208_s2 + $0x1b0] sm:$0xff] }
  0x57   :  { %1251 = vmatprep.subr.bf16.mxu0 %v5559_v51  ;;  %v100_v51 = vrot.slane %v99_v15, 1  ;;  %v106_v63 = vrot.slane %v105_v16, 1  ;;  %v113_v32 = vadd.f32 %v112_v22, %v111_v17  ;;  %v5514_v17 = vcombine.low %v263_v58, %v271_v59  ;;  %v288_v22 = vld [vmem:[%s9208_s2 + $0x1f8] sm:$0xff]  ;;  %v351_v39 = vld [vmem:[%s9208_s2 + $0x3f0] sm:$0xff] }
  0x58   :  { %1291 = vmatpush1.bf16.msra.mxu1 %v5544_v1  ;;  %v83_v27 = vadd.f32 %v82_v19, %v81_v14  ;;  %v144_v1 = vcombine.low %v65_v24, %v71_v25  ;;  %v5531_v21 = vcombine.high %v279_v48, %v287_v61  ;;  %v5500_v19 = vcombine.low %v248_v57, %v256_v62  ;;  %v311_v24 = vld [vmem:[%s9208_s2 + $0x2b0] sm:$0xff]  ;;  %v6341_v59 = vld [vmem:[%s9210_s4 + $0x4] ss:$24 sps:$4 sm:$0xff]  }
  0x59   :  { %1292 = vmatprep.subr.bf16.mxu1 %v5561_v4  ;;  %v101_v30 = vadd.f32 %v100_v51, %v99_v15  ;;  %v107_v31 = vadd.f32 %v106_v63, %v105_v16  ;;  %v5590_v4 = vcombine.low %v7312_v34, %v7317_v35  ;;  %v232_v35 = vld [vmem:[%s9208_s2 + $0x38] sm:$0xff]  ;;  %v5530_v2 = vcombine.low %v279_v48, %v287_v61  ;;  %v319_v25 = vld [vmem:[%s9208_s2 + $0x2f0] sm:$0xff]  ;;  %v6363_v61 = vld [vmem:[%s9210_s4 + $0x8] ss:$24 sps:$4 sm:$0xff]  }
  0x5a   :  { %1252 = vmatpush1.bf16.msra.mxu0 %v5558_v50  ;;  %v77_v50 = vadd.f32 %v76_v47, %v75_v12  ;;  %v152_v29 = vrot.slane %v144_v1, %v7420_v10  ;;  %v5485_v53 = vcombine.high %v232_v35, %v240_v52  ;;  %v5484_v0 = vcombine.low %v232_v35, %v240_v52  ;;  %v272_v15 = vld [vmem:[%s9208_s2 + $0x178] sm:$0xff]  ;;  %v295_v47 = vld [vmem:[%s9208_s2 + $0x230] sm:$0xff] }
  0x5b   :  { %1253 = vmatprep.subr.bf16.mxu0 %v5575_v56  ;;  %v342_v56 = vld [vmem:[%s9208_s2 + $0x3a8] sm:$0xff]  ;;  %v169_v37 = vcombine.low %v101_v30, %v107_v31  ;;  %v5501_v12 = vcombine.high %v248_v57, %v256_v62  ;;  %v5517_v51 = vcombine.high %v264_v13, %v272_v15  ;;  %v280_v63 = vld [vmem:[%s9208_s2 + $0x1b8] sm:$0xff]  ;;  %v5547_v23 = vcombine.high %v295_v47, %v303_v18  ;;  %v327_v30 = vld [vmem:[%s9208_s2 + $0x330] sm:$0xff] }
  0x5c   :  { %v145_v36 = vcombine.low %v77_v50, %v83_v27  ;;  %1293 = vmatpush1.bf16.msra.mxu1 %v5560_v3  ;;  %v5593_v34 = vcombine.high %v342_v56, %v350_v43  ;;  %v5516_v50 = vcombine.low %v264_v13, %v272_v15  ;;  %v5546_v27 = vcombine.low %v295_v47, %v303_v18  ;;  %v6344_v57 = vld [vmem:[%s9210_s4 + $0x34] ss:$24 sps:$4 sm:$0xff]   ;;  %v6347_v48 = vld [vmem:[%s9210_s4 + $0x64] ss:$24 sps:$4 sm:$0xff]   ;;  %v6369_v13 = vld [vmem:[%s9210_s4 + $0x38] ss:$24 sps:$4 sm:$0xff]  }
  0x5d   :  { %1294 = vmatprep.subr.bf16.mxu1 %v5577_v5  ;;  %v177_v49 = vrot.slane %v169_v37, %v7420_v10  ;;  %v5592_v5 = vcombine.low %v342_v56, %v350_v43  ;;  %v304_v56 = vld [vmem:[%s9208_s2 + $0x278] sm:$0xff]  ;;  %v5563_v31 = vcombine.high %v311_v24, %v319_v25  ;;  %v5532_v43 = vcombine.low %v280_v63, %v288_v22  ;;  %v6365_v62 = vld [vmem:[%s9210_s4 + $0xc] ss:$24 sps:$4 sm:$0xff]   ;;  %v6348_v15 = vld [vmem:[%s9210_s4 + $0x90] ss:$24 sps:$4 sm:$0xff]  }
  0x5e   :  { %1254 = vmatpush1.bf16.msra.mxu0 %v5574_v55  ;;  %v170_v55 = vcombine.low %v113_v32, %v119_v44  ;;  %v335_v32 = vld [vmem:[%s9208_s2 + $0x370] sm:$0xff]  ;;  %v312_v44 = vld [vmem:[%s9208_s2 + $0x2b8] sm:$0xff]  ;;  %v5549_v1 = vcombine.high %v296_v26, %v304_v56  ;;  %v6389_v18 = vld [vmem:[%s9210_s4 + $0xcc] ss:$24 sps:$4 sm:$0xff]  }
  0x5f   :  { %1255 = vmatprep.subr.bf16.mxu0 %v5591_v60  ;;  %v159_v60 = vrot.slane %v145_v36, %v7420_v10  ;;  %v343_v36 = vld [vmem:[%s9208_s2 + $0x3b0] sm:$0xff]  ;;  %v5579_v38 = vcombine.high %v327_v30, %v335_v32  ;;  %v5578_v35 = vcombine.low %v327_v30, %v335_v32  ;;  %v6368_v32 = vld [vmem:[%s9210_s4 + $0x184] ss:$24 sps:$4 sm:$0xff]  }
  0x60   :  { %v184_v3 = vrot.slane %v170_v55, %v7420_v10  ;;  %1295 = vmatpush1.bf16.msra.mxu1 %v5576_v28  ;;  %v5548_v28 = vcombine.low %v296_v26, %v304_v56  ;;  %v328_v55 = vld [vmem:[%s9208_s2 + $0x338] sm:$0xff]  ;;  %v5594_v58 = vcombine.low %v343_v36, %v351_v39 }
  0x61   :  { %v160_v42 = vcombine.low %v152_v29, %v159_v60  ;;  %1296 = vmatprep.subr.bf16.mxu1 %v5593_v34  ;;  %v336_v34 = vld [vmem:[%s9208_s2 + $0x378] sm:$0xff] }
  0x62   :  { %1256 = vmatpush1.bf16.msra.mxu0 %v5590_v4  ;;  %v185_v46 = vcombine.low %v177_v49, %v184_v3  ;;  %v320_v4 = vld [vmem:[%s9208_s2 + $0x2f8] sm:$0xff]  ;;  %v5595_v49 = vcombine.high %v343_v36, %v351_v39  ;;  %v5581_v3 = vcombine.high %v328_v55, %v336_v34 }
  0x63   :  { %1323 = vmatprep.subr.bf16.mxu0 %v5483_v33  ;;  %v5562_v33 = vcombine.low %v311_v24, %v319_v25  ;;  %v5565_v29 = vcombine.high %v312_v44, %v320_v4  ;;  %v5564_v52 = vcombine.low %v312_v44, %v320_v4  ;;  %v6381_v47 = vld [vmem:[%s9210_s4 + $0x98] ss:$24 sps:$4 sm:$0xff]   ;;  %v6407_v44 = vld [vmem:[%s9210_s4 + $0x15c] ss:$24 sps:$4 sm:$0xff]  }
  0x64   :  { %v198_v8 = vrot.slane %v185_v46, 7  ;;  %1297 = vmatpush1.bf16.msra.mxu1 %v5592_v5  ;;  %v6393_v24 = vld [vmem:[%s9210_s4 + $0xf8] ss:$24 sps:$4 sm:$0xff]  }
  0x65   :  { %1274 = vmatmul.mubr.bf16.vlgmr.msra.gmra.mrb[8].mxu0 %v7139_v7  ;;  %1364 = vmatprep.subr.bf16.mxu1 %v5485_v53  ;;  %v6339_v53 = vld [vmem:[%s9210_s4] ss:$24 sps:$4 sm:$0xff]   ;;  %v44_v25 = vld [vmem:[%s9207_s1 + $0x10] sm:$0xff] }
  0x66   :  { %1324 = vmatpush1.bf16.msra.mxu0 %v5482_v40  ;;  %1355 = vmatprep.mubr.bf16.mxu0 %v6972_v6  ;;  %v200_v11 = vsel %vm199_vm0, %v198_v8, %v160_v42  ;;  %v344_v40 = vld [vmem:[%s9208_s2 + $0x3b8] sm:$0xff]  ;;  %v5580_v42 = vcombine.low %v328_v55, %v336_v34  ;;  %v52_v26 = vunpack.c.l.bf16 %v44_v25  ;;  %v53_v56 = vunpack.c.h.bf16 %v44_v25  ;;  %v6374_v34 = vld [vmem:[%s9210_s4 + $0x1b4] ss:$24 sps:$4 sm:$0xff]  }
  0x67   :  { %1325 = vmatprep.subr.bf16.mxu0 %v5499_v41  ;;  %v202_v14 = vsel %vm201_vm1, %v198_v8, %v200_v11  ;;  %1315 = vmatmul.mubr.bf16.vlgmr.msra.gmra.mrb[8].mxu1 %v7139_v7  ;;  %v352_v41 = vld [vmem:[%s9208_s2 + $0x3f8] sm:$0xff] }
  0x68   :  { %v204_v16 = vsel %vm203_vm2, %v198_v8, %v202_v14  ;;  %1365 = vmatpush1.bf16.msra.mxu1 %v5484_v0  ;;  %1396 = vmatprep.mubr.bf16.mxu1 %v6972_v6  ;;  %v5533_v6 = vcombine.high %v280_v63, %v288_v22  ;;  %v5597_v46 = vcombine.high %v344_v40, %v352_v41  ;;  %v6371_v0 = vld [vmem:[%s9210_s4 + $0x3c] ss:$24 sps:$4 sm:$0xff]   ;;  %v6345_v11 = vld [vmem:[%s9210_s4 + $0x60] ss:$24 sps:$4 sm:$0xff]   ;;  %v6377_v14 = vld [vmem:[%s9210_s4 + $0x6c] ss:$24 sps:$4 sm:$0xff]  }
  0x69   :  { %v206_v20 = vsel %vm205_vm3, %v198_v8, %v204_v16  ;;  %1366 = vmatprep.subr.bf16.mxu1 %v5501_v12  ;;  %v6350_v12 = vld [vmem:[%s9210_s4 + $0x94] ss:$24 sps:$4 sm:$0xff]   ;;  %v6375_v16 = vld [vmem:[%s9210_s4 + $0x68] ss:$24 sps:$4 sm:$0xff]   ;;  %v90_v4 = vrot.slane %v53_v56, 4 }
  0x6a   :  { %1326 = vmatpush1.bf16.msra.mxu0 %v5498_v45  ;;  %v7561_v37 = vmul.f32 0.25, %v206_v20  ;;  %v5596_v45 = vcombine.low %v344_v40, %v352_v41  ;;  %v6351_v20 = vld [vmem:[%s9210_s4 + $0xc0] ss:$24 sps:$4 sm:$0xff]   ;;  %v6395_v22 = vld [vmem:[%s9210_s4 + $0xfc] ss:$24 sps:$4 sm:$0xff]  }
  0x6b   :  { %1327 = vmatprep.subr.bf16.mxu0 %v5515_v9  ;;  %v6342_v9 = vld [vmem:[%s9210_s4 + $0x30] ss:$24 sps:$4 sm:$0xff]  }
  0x6c   :  { %1367 = vmatpush1.bf16.msra.mxu1 %v5500_v19  ;;  %v7574_v60 = vrot.slane %v7561_v37, %v7420_v10  ;;  %v6354_v19 = vld [vmem:[%s9210_s4 + $0xf0] ss:$24 sps:$4 sm:$0xff]  }
  0x6d   :  { %1368 = vmatprep.subr.bf16.mxu1 %v5517_v51  ;;  %v6359_v51 = vld [vmem:[%s9210_s4 + $0x124] ss:$24 sps:$4 sm:$0xff]   ;;  %v6387_v63 = vld [vmem:[%s9210_s4 + $0xc8] ss:$24 sps:$4 sm:$0xff]   ;;  %v6429_v25 = vld [vmem:[%s9210_s4 + $0x218] ss:$24 sps:$4 sm:$0xff]  }
  0x6e   :  { %1328 = vmatpush1.bf16.msra.mxu0 %v5514_v17  ;;  %v1426_v5 = vcombine.high %v7574_v60, %v7574_v60  ;;  %v6383_v17 = vld [vmem:[%s9210_s4 + $0x9c] ss:$24 sps:$4 sm:$0xff]  }
  0x6f   :  { %1329 = vmatprep.subr.bf16.mxu0 %v5531_v21  ;;  %v6356_v21 = vld [vmem:[%s9210_s4 + $0xf4] ss:$24 sps:$4 sm:$0xff]  }
  0x70   :  { %1369 = vmatpush1.bf16.msra.mxu1 %v5516_v50  ;;  %v7596_v8 = vpack.c.bf16 %v1426_v5, %v1426_v5  ;;  %v47_v50 = vld [vmem:[%s9207_s1 + $0x28] sm:$0xff] }
  0x71   :  { %1370 = vmatprep.subr.bf16.mxu1 %v5533_v6  ;;  %v6401_v6 = vld [vmem:[%s9210_s4 + $0x12c] ss:$24 sps:$4 sm:$0xff]   ;;  %v59_v30 = vunpack.c.h.bf16 %v47_v50 }
  0x72   :  { %1330 = vmatpush1.bf16.msra.mxu0 %v5530_v2  ;;  %v6357_v2 = vld [vmem:[%s9210_s4 + $0x120] ss:$24 sps:$4 sm:$0xff]  }
  0x73   :  { %1331 = vmatprep.subr.bf16.mxu0 %v5547_v23  ;;  %v6362_v23 = vld [vmem:[%s9210_s4 + $0x154] ss:$24 sps:$4 sm:$0xff]   ;;  %v126_v36 = vrot.slane %v59_v30, 4 }
  0x74   :  { %1371 = vmatpush1.bf16.msra.mxu1 %v5532_v43  ;;  %v6399_v43 = vld [vmem:[%s9210_s4 + $0x128] ss:$24 sps:$4 sm:$0xff]  }
  0x75   :  { %1372 = vmatprep.subr.bf16.mxu1 %v5549_v1  ;;  %v84_v1 = vrot.slane %v52_v26, 4  ;;  %v127_v55 = vadd.f32 %v126_v36, %v59_v30  ;;  %v6441_v36 = vld [vmem:[%s9210_s4 + $0x278] ss:$24 sps:$4 sm:$0xff]  }
  0x76   :  { %1332 = vmatpush1.bf16.msra.mxu0 %v5546_v27  ;;  %v58_v27 = vunpack.c.l.bf16 %v47_v50  ;;  %v6437_v50 = vld [vmem:[%s9210_s4 + $0x24c] ss:$24 sps:$4 sm:$0xff]  }
  0x77   :  { %1333 = vmatprep.subr.bf16.mxu0 %v5563_v31  ;;  %v6360_v31 = vld [vmem:[%s9210_s4 + $0x150] ss:$24 sps:$4 sm:$0xff]   ;;  %v85_v39 = vadd.f32 %v84_v1, %v52_v26  ;;  %v128_v41 = vrot.slane %v127_v55, 2  ;;  %v6443_v1 = vld [vmem:[%s9210_s4 + $0x27c] ss:$24 sps:$4 sm:$0xff]  }
  0x78   :  { %1373 = vmatpush1.bf16.msra.mxu1 %v5548_v28  ;;  %v91_v28 = vadd.f32 %v90_v4, %v53_v56  ;;  %v6402_v4 = vld [vmem:[%s9210_s4 + $0x2a0] ss:$24 sps:$4 sm:$0xff]  }
  0x79   :  { %1374 = vmatprep.subr.bf16.mxu1 %v5565_v29 }
  0x7a   :  { %1334 = vmatpush1.bf16.msra.mxu0 %v5562_v33  ;;  %v120_v33 = vrot.slane %v58_v27, 4 }
  0x7b   :  { %1335 = vmatprep.subr.bf16.mxu0 %v5579_v38  ;;  %v6366_v38 = vld [vmem:[%s9210_s4 + $0x180] ss:$24 sps:$4 sm:$0xff]  }
  0x7c   :  { %1375 = vmatpush1.bf16.msra.mxu1 %v5564_v52  ;;  %v121_v29 = vadd.f32 %v120_v33, %v58_v27  ;;  %v86_v52 = vrot.slane %v85_v39, 2 }
  0x7d   :  { %1376 = vmatprep.subr.bf16.mxu1 %v5581_v3  ;;  %v92_v3 = vrot.slane %v91_v28, 2 }
  0x7e   :  { %1336 = vmatpush1.bf16.msra.mxu0 %v5578_v35  ;;  %v6405_v35 = vld [vmem:[%s9210_s4 + $0x158] ss:$24 sps:$4 sm:$0xff]   ;;  %v122_v40 = vrot.slane %v121_v29, 2 }
  0x7f   :  { %1337 = vmatprep.subr.bf16.mxu0 %v5595_v49  ;;  %v6413_v49 = vld [vmem:[%s9210_s4 + $0x18c] ss:$24 sps:$4 sm:$0xff]   ;;  %v93_v5 = vadd.f32 %v92_v3, %v91_v28 }
  0x80   :  { %1377 = vmatpush1.bf16.msra.mxu1 %v5580_v42  ;;  %v123_v42 = vadd.f32 %v122_v40, %v121_v29  ;;  %v6416_v28 = vld [vmem:[%s9210_s4 + $0x304] ss:$24 sps:$4 sm:$0xff]   ;;  %v6447_v29 = vld [vmem:[%s9210_s4 + $0x2a8] ss:$24 sps:$4 sm:$0xff]   ;;  %v6453_v40 = vld [vmem:[%s9210_s4 + $0x2d8] ss:$24 sps:$4 sm:$0xff]  }
  0x81   :  { %1378 = vmatprep.subr.bf16.mxu1 %v5597_v46  ;;  %v129_v46 = vadd.f32 %v128_v41, %v127_v55  ;;  %v6461_v41 = vld [vmem:[%s9210_s4 + $0x30c] ss:$24 sps:$4 sm:$0xff]  }
  0x82   :  { %1338 = vmatpush1.bf16.msra.mxu0 %v5594_v58  ;;  %v6372_v58 = vld [vmem:[%s9210_s4 + $0x1b0] ss:$24 sps:$4 sm:$0xff]  }
  0x83   :  { %3208 = vmatprep.subr.bf16.mxu0 %v6341_v59  ;;  %v87_v59 = vadd.f32 %v86_v52, %v85_v39  ;;  %v6408_v39 = vld [vmem:[%s9210_s4 + $0x2d0] ss:$24 sps:$4 sm:$0xff]   ;;  %v6422_v52 = vld [vmem:[%s9210_s4 + $0x334] ss:$24 sps:$4 sm:$0xff]  }
  0x84   :  { %1379 = vmatpush1.bf16.msra.mxu1 %v5596_v45 }
  0x85   :  { %1356 = vmatmul.mubr.bf16.vlgmr.msra.gmra.mrb[12].mxu0 %v7139_v7  ;;  %3331 = vmatprep.subr.bf16.mxu1 %v6365_v62  ;;  %v6419_v62 = vld [vmem:[%s9210_s4 + $0x1bc] ss:$24 sps:$4 sm:$0xff]   ;;  %v88_v45 = vrot.slane %v87_v59, 1 }
  0x86   :  { %3209 = vmatpush1.bf16.msra.mxu0 %v6339_v53  ;;  %3240 = vmatprep.mubr.bf16.mxu0 %v7596_v8  ;;  %v6380_v53 = vld [vmem:[%s9210_s4 + $0x1e4] ss:$24 sps:$4 sm:$0xff]  }
  0x87   :  { %3210 = vmatprep.subr.bf16.mxu0 %v6344_v57  ;;  %1397 = vmatmul.mubr.bf16.vlgmr.msra.gmra.mrb[12].mxu1 %v7139_v7  ;;  %v6353_v7 = vld [vmem:[%s9210_s4 + $0xc4] ss:$24 sps:$4 sm:$0xff]   ;;  %v6411_v57 = vld [vmem:[%s9210_s4 + $0x188] ss:$24 sps:$4 sm:$0xff]  }
  0x88   :  { %3332 = vmatpush1.bf16.msra.mxu1 %v6363_v61  ;;  %3363 = vmatprep.mubr.bf16.mxu1 %v7596_v8  ;;  %v130_v61 = vrot.slane %v129_v46, 1 }
  0x89   :  { %3333 = vmatprep.subr.bf16.mxu1 %v6371_v0  ;;  %v6378_v0 = vld [vmem:[%s9210_s4 + $0x1e0] ss:$24 sps:$4 sm:$0xff]  }
  0x8a   :  { %3211 = vmatpush1.bf16.msra.mxu0 %v6342_v9  ;;  %v94_v9 = vrot.slane %v93_v5, 1 }
  0x8b   :  { %3212 = vmatprep.subr.bf16.mxu0 %v6347_v48  ;;  %v124_v48 = vrot.slane %v123_v42, 1 }
  0x8c   :  { %3334 = vmatpush1.bf16.msra.mxu1 %v6369_v13 }
  0x8d   :  { %3335 = vmatprep.subr.bf16.mxu1 %v6377_v14  ;;  %v125_v13 = vadd.f32 %v124_v48, %v123_v42  ;;  %v131_v14 = vadd.f32 %v130_v61, %v129_v46  ;;  %v6426_v42 = vld [vmem:[%s9210_s4 + $0x360] ss:$24 sps:$4 sm:$0xff]   ;;  %v6434_v46 = vld [vmem:[%s9210_s4 + $0x394] ss:$24 sps:$4 sm:$0xff]  }
  0x8e   :  { %3213 = vmatpush1.bf16.msra.mxu0 %v6345_v11  ;;  %v89_v11 = vadd.f32 %v88_v45, %v87_v59  ;;  %v6459_v59 = vld [vmem:[%s9210_s4 + $0x308] ss:$24 sps:$4 sm:$0xff]   ;;  %v6440_v45 = vld [vmem:[%s9210_s4 + $0x3c4] ss:$24 sps:$4 sm:$0xff]  }
  0x8f   :  { %3214 = vmatprep.subr.bf16.mxu0 %v6350_v12  ;;  %v95_v12 = vadd.f32 %v94_v9, %v93_v5  ;;  %v6467_v5 = vld [vmem:[%s9210_s4 + $0x33c] ss:$24 sps:$4 sm:$0xff]   ;;  %v6471_v9 = vld [vmem:[%s9210_s4 + $0x368] ss:$24 sps:$4 sm:$0xff]  }
  0x90   :  { %3336 = vmatpush1.bf16.msra.mxu1 %v6375_v16  ;;  %v6425_v16 = vld [vmem:[%s9210_s4 + $0x1ec] ss:$24 sps:$4 sm:$0xff]   ;;  %v6479_v48 = vld [vmem:[%s9210_s4 + $0x39c] ss:$24 sps:$4 sm:$0xff]   ;;  %v6438_v61 = vld [vmem:[%s9210_s4 + $0x3c0] ss:$24 sps:$4 sm:$0xff]  }
  0x91   :  { %3337 = vmatprep.subr.bf16.mxu1 %v6383_v17  ;;  %v161_v17 = vcombine.low %v89_v11, %v95_v12  ;;  %v6477_v11 = vld [vmem:[%s9210_s4 + $0x398] ss:$24 sps:$4 sm:$0xff]   ;;  %v6485_v12 = vld [vmem:[%s9210_s4 + $0x3cc] ss:$24 sps:$4 sm:$0xff]  }
  0x92   :  { %3215 = vmatpush1.bf16.msra.mxu0 %v6348_v15  ;;  %v6386_v15 = vld [vmem:[%s9210_s4 + $0x214] ss:$24 sps:$4 sm:$0xff]  }
  0x93   :  { %3216 = vmatprep.subr.bf16.mxu0 %v6353_v7  ;;  %v6417_v7 = vld [vmem:[%s9210_s4 + $0x1b8] ss:$24 sps:$4 sm:$0xff]  }
  0x94   :  { %3338 = vmatpush1.bf16.msra.mxu1 %v6381_v47  ;;  %v168_v47 = vrot.slane %v161_v17, %v7420_v10  ;;  %v6458_v17 = vld [vmem:[%s9210_s4 + $0x454] ss:$24 sps:$4 sm:$0xff]  }
  0x95   :  { %3339 = vmatprep.subr.bf16.mxu1 %v6389_v18 }
  0x96   :  { %3217 = vmatpush1.bf16.msra.mxu0 %v6351_v20  ;;  %v186_v20 = vcombine.low %v125_v13, %v131_v14  ;;  %v6444_v13 = vld [vmem:[%s9210_s4 + $0x3f0] ss:$24 sps:$4 sm:$0xff]   ;;  %v6452_v14 = vld [vmem:[%s9210_s4 + $0x424] ss:$24 sps:$4 sm:$0xff]  }
  0x97   :  { %3218 = vmatprep.subr.bf16.mxu0 %v6356_v21  ;;  %v6384_v21 = vld [vmem:[%s9210_s4 + $0x210] ss:$24 sps:$4 sm:$0xff]  }
  0x98   :  { %3340 = vmatpush1.bf16.msra.mxu1 %v6387_v63  ;;  %v193_v18 = vrot.slane %v186_v20, %v7420_v10  ;;  %v6431_v63 = vld [vmem:[%s9210_s4 + $0x21c] ss:$24 sps:$4 sm:$0xff]   ;;  %v6489_v20 = vld [vmem:[%s9210_s4 + $0x3f8] ss:$24 sps:$4 sm:$0xff]  }
  0x99   :  { %3341 = vmatprep.subr.bf16.mxu1 %v6395_v22 }
  0x9a   :  { %3219 = vmatpush1.bf16.msra.mxu0 %v6354_v19  ;;  %v6392_v19 = vld [vmem:[%s9210_s4 + $0x244] ss:$24 sps:$4 sm:$0xff]   ;;  %v209_v22 = vrot.slane %v193_v18, 7 }
  0x9b   :  { %3220 = vmatprep.subr.bf16.mxu0 %v6359_v51  ;;  %v6423_v51 = vld [vmem:[%s9210_s4 + $0x1e8] ss:$24 sps:$4 sm:$0xff]   ;;  %v6464_v18 = vld [vmem:[%s9210_s4 + $0x484] ss:$24 sps:$4 sm:$0xff]  }
  0x9c   :  { %3342 = vmatpush1.bf16.msra.mxu1 %v6393_v24  ;;  %v210_v24 = vsel %vm199_vm0, %v209_v22, %v168_v47  ;;  %v6456_v47 = vld [vmem:[%s9210_s4 + $0x450] ss:$24 sps:$4 sm:$0xff]  }
  0x9d   :  { %3343 = vmatprep.subr.bf16.mxu1 %v6401_v6  ;;  %v41_v6 = vld [vmem:[#allocation2 + $0x8] sm:$0xf]  ;;  %v211_v26 = vsel %vm201_vm1, %v209_v22, %v210_v24 }
  0x9e   :  { %3221 = vmatpush1.bf16.msra.mxu0 %v6357_v2  ;;  %v6390_v2 = vld [vmem:[%s9210_s4 + $0x240] ss:$24 sps:$4 sm:$0xff]   ;;  %v212_v56 = vsel %vm203_vm2, %v209_v22, %v211_v26  ;;  %v6468_v24 = vld [vmem:[%s9210_s4 + $0x4b0] ss:$24 sps:$4 sm:$0xff]  }
  0x9f   :  { %3222 = vmatprep.subr.bf16.mxu0 %v6362_v23  ;;  %v6398_v23 = vld [vmem:[%s9210_s4 + $0x274] ss:$24 sps:$4 sm:$0xff]   ;;  %v213_v27 = vsel %vm205_vm3, %v209_v22, %v212_v56  ;;  %v6474_v26 = vld [vmem:[%s9210_s4 + $0x4e0] ss:$24 sps:$4 sm:$0xff]  }
  0xa0   :  { %3344 = vmatpush1.bf16.msra.mxu1 %v6399_v43  ;;  %v217_v30 = vadd.f32 %v213_v27, %v41_v6  ;;  %v1411_v43 = vcombine.high %v7561_v37, %v7561_v37  ;;  %v6410_v37 = vld [vmem:[%s9210_s4 + $0x2d4] ss:$24 sps:$4 sm:$0xff]   ;;  %v6513_v27 = vld [vmem:[%s9210_s4 + $0x4b8] ss:$24 sps:$4 sm:$0xff]  }
  0xa1   :  { %3345 = vmatprep.subr.bf16.mxu1 %v6407_v44  ;;  %v6435_v44 = vld [vmem:[%s9210_s4 + $0x248] ss:$24 sps:$4 sm:$0xff]   ;;  %v6470_v22 = vld [vmem:[%s9210_s4 + $0x4b4] ss:$24 sps:$4 sm:$0xff]  }
  0xa2   :  { %3223 = vmatpush1.bf16.msra.mxu0 %v6360_v31  ;;  %v6396_v31 = vld [vmem:[%s9210_s4 + $0x270] ss:$24 sps:$4 sm:$0xff]   ;;  %219 = vst [vmem:[#allocation2 + $0x8] sm:$0xf] %v217_v30  ;;  %v7779_v33 = vrot.slane %v1411_v43, %v7420_v10  ;;  %v6515_v6 = vld [vmem:[%s9210_s4 + $0x4bc] ss:$24 sps:$4 sm:$0xff]  }
  0xa3   :  { %3224 = vmatprep.subr.bf16.mxu0 %v6368_v32  ;;  %v6404_v32 = vld [vmem:[%s9210_s4 + $0x2a4] ss:$24 sps:$4 sm:$0xff]   ;;  %v6482_v56 = vld [vmem:[%s9210_s4 + $0x514] ss:$24 sps:$4 sm:$0xff]   ;;  %v6519_v43 = vld [vmem:[%s9210_s4 + $0x4e8] ss:$24 sps:$4 sm:$0xff]  }
  0xa4   :  { %3346 = vmatpush1.bf16.msra.mxu1 %v6405_v35  ;;  %v1427_v55 = vcombine.high %v7779_v33, %v7779_v33  ;;  %v6414_v35 = vld [vmem:[%s9210_s4 + $0x300] ss:$24 sps:$4 sm:$0xff]   ;;  %v6521_v30 = vld [vmem:[%s9210_s4 + $0x4ec] ss:$24 sps:$4 sm:$0xff]  }
  0xa5   :  { %3347 = vmatprep.subr.bf16.mxu1 %v6413_v49  ;;  %v7806_v49 = vpack.c.bf16 %v7574_v60, %v7574_v60  ;;  %v6420_v60 = vld [vmem:[%s9210_s4 + $0x330] ss:$24 sps:$4 sm:$0xff]  }
  0xa6   :  { %3225 = vmatpush1.bf16.msra.mxu0 %v6366_v38  ;;  %v6449_v38 = vld [vmem:[%s9210_s4 + $0x2ac] ss:$24 sps:$4 sm:$0xff]   ;;  %v7811_v3 = vpack.c.bf16 %v1427_v55, %v1427_v55  ;;  %v6539_v55 = vld [vmem:[%s9210_s4 + $0x57c] ss:$24 sps:$4 sm:$0xff]  }
  0xa7   :  { %3226 = vmatprep.subr.bf16.mxu0 %v6374_v34  ;;  %v6455_v34 = vld [vmem:[%s9210_s4 + $0x2dc] ss:$24 sps:$4 sm:$0xff]  }
  0xa8   :  { %3348 = vmatpush1.bf16.msra.mxu1 %v6411_v57  ;;  %v6473_v57 = vld [vmem:[%s9210_s4 + $0x36c] ss:$24 sps:$4 sm:$0xff]  }
  0xa9   :  { %3349 = vmatprep.subr.bf16.mxu1 %v6419_v62  ;;  %v6432_v62 = vld [vmem:[%s9210_s4 + $0x390] ss:$24 sps:$4 sm:$0xff]  }
  0xaa   :  { %3227 = vmatpush1.bf16.msra.mxu0 %v6372_v58  ;;  %v6428_v58 = vld [vmem:[%s9210_s4 + $0x364] ss:$24 sps:$4 sm:$0xff]  }
  0xab   :  { %3228 = vmatprep.subr.bf16.mxu0 %v6380_v53  ;;  %v6465_v53 = vld [vmem:[%s9210_s4 + $0x338] ss:$24 sps:$4 sm:$0xff]  }
  0xac   :  { %3350 = vmatpush1.bf16.msra.mxu1 %v6417_v7  ;;  %v6491_v7 = vld [vmem:[%s9210_s4 + $0x3fc] ss:$24 sps:$4 sm:$0xff]  }
  0xad   :  { %3351 = vmatprep.subr.bf16.mxu1 %v6425_v16  ;;  %v6450_v16 = vld [vmem:[%s9210_s4 + $0x420] ss:$24 sps:$4 sm:$0xff]  }
  0xae   :  { %3229 = vmatpush1.bf16.msra.mxu0 %v6378_v0  ;;  %v6446_v0 = vld [vmem:[%s9210_s4 + $0x3f4] ss:$24 sps:$4 sm:$0xff]  }
  0xaf   :  { %3230 = vmatprep.subr.bf16.mxu0 %v6386_v15  ;;  %v6483_v15 = vld [vmem:[%s9210_s4 + $0x3c8] ss:$24 sps:$4 sm:$0xff]  }
  0xb0   :  { %3352 = vmatpush1.bf16.msra.mxu1 %v6423_v51  ;;  %v6503_v51 = vld [vmem:[%s9210_s4 + $0x45c] ss:$24 sps:$4 sm:$0xff]  }
  0xb1   :  { %3353 = vmatprep.subr.bf16.mxu1 %v6431_v63  ;;  %v6462_v63 = vld [vmem:[%s9210_s4 + $0x480] ss:$24 sps:$4 sm:$0xff]  }
  0xb2   :  { %3231 = vmatpush1.bf16.msra.mxu0 %v6384_v21  ;;  %v6497_v21 = vld [vmem:[%s9210_s4 + $0x42c] ss:$24 sps:$4 sm:$0xff]  }
  0xb3   :  { %3232 = vmatprep.subr.bf16.mxu0 %v6392_v19  ;;  %v6495_v19 = vld [vmem:[%s9210_s4 + $0x428] ss:$24 sps:$4 sm:$0xff]  }
  0xb4   :  { %3354 = vmatpush1.bf16.msra.mxu1 %v6429_v25  ;;  %v6476_v25 = vld [vmem:[%s9210_s4 + $0x4e4] ss:$24 sps:$4 sm:$0xff]  }
  0xb5   :  { %3355 = vmatprep.subr.bf16.mxu1 %v6437_v50  ;;  %v6507_v50 = vld [vmem:[%s9210_s4 + $0x488] ss:$24 sps:$4 sm:$0xff]  }
  0xb6   :  { %3233 = vmatpush1.bf16.msra.mxu0 %v6390_v2  ;;  %v6501_v2 = vld [vmem:[%s9210_s4 + $0x458] ss:$24 sps:$4 sm:$0xff]  }
  0xb7   :  { %3234 = vmatprep.subr.bf16.mxu0 %v6398_v23  ;;  %v6509_v23 = vld [vmem:[%s9210_s4 + $0x48c] ss:$24 sps:$4 sm:$0xff]  }
  0xb8   :  { %3356 = vmatpush1.bf16.msra.mxu1 %v6435_v44  ;;  %v6527_v44 = vld [vmem:[%s9210_s4 + $0x51c] ss:$24 sps:$4 sm:$0xff]  }
  0xb9   :  { %3357 = vmatprep.subr.bf16.mxu1 %v6443_v1  ;;  %v6486_v1 = vld [vmem:[%s9210_s4 + $0x540] ss:$24 sps:$4 sm:$0xff]  }
  0xba   :  { %3235 = vmatpush1.bf16.msra.mxu0 %v6396_v31  ;;  %v6480_v31 = vld [vmem:[%s9210_s4 + $0x510] ss:$24 sps:$4 sm:$0xff]  }
  0xbb   :  { %3236 = vmatprep.subr.bf16.mxu0 %v6404_v32  ;;  %v6488_v32 = vld [vmem:[%s9210_s4 + $0x544] ss:$24 sps:$4 sm:$0xff]  }
  0xbc   :  { %3358 = vmatpush1.bf16.msra.mxu1 %v6441_v36  ;;  %v6533_v36 = vld [vmem:[%s9210_s4 + $0x54c] ss:$24 sps:$4 sm:$0xff]  }
  0xbd   :  { %3359 = vmatprep.subr.bf16.mxu1 %v6449_v38  ;;  %v1406_v38 = vld [vmem:[#allocation2 + $0x8] sm:$0xf] }
  0xbe   :  { %3237 = vmatpush1.bf16.msra.mxu0 %v6402_v4  ;;  %v6494_v4 = vld [vmem:[%s9210_s4 + $0x574] ss:$24 sps:$4 sm:$0xff]  }
  0xbf   :  { %3238 = vmatprep.subr.bf16.mxu0 %v6410_v37  ;;  %v6525_v37 = vld [vmem:[%s9210_s4 + $0x518] ss:$24 sps:$4 sm:$0xff]  }
  0xc0   :  { %3360 = vmatpush1.bf16.msra.mxu1 %v6447_v29  ;;  %v6531_v29 = vld [vmem:[%s9210_s4 + $0x548] ss:$24 sps:$4 sm:$0xff]  }
  0xc1   :  { %3361 = vmatprep.subr.bf16.mxu1 %v6455_v34  ;;  %v1408_v34 = vmul.f32 0.25, %v1406_v38  ;;  %v6591_v38 = vld [vmem:[%s9210_s4 + $0x728] ss:$24 sps:$4 sm:$0xff]  }
  0xc2   :  { %3239 = vmatpush1.bf16.msra.mxu0 %v6408_v39  ;;  %v6492_v39 = vld [vmem:[%s9210_s4 + $0x570] ss:$24 sps:$4 sm:$0xff]  }
  0xc3   :  { %3249 = vmatprep.subr.bf16.mxu0 %v6416_v28  ;;  %v6500_v28 = vld [vmem:[%s9210_s4 + $0x5a4] ss:$24 sps:$4 sm:$0xff]  }
  0xc4   :  { %3362 = vmatpush1.bf16.msra.mxu1 %v6453_v40 }
  0xc5   :  { %3241 = vmatmul.mubr.bf16.vlgmr.msra.gmra.mrb[16].mxu0 %v7806_v49  ;;  %3372 = vmatprep.subr.bf16.mxu1 %v6461_v41  ;;  %v6506_v41 = vld [vmem:[%s9210_s4 + $0x5d4] ss:$24 sps:$4 sm:$0xff]  }
  0xc6   :  { %3250 = vmatpush1.bf16.msra.mxu0 %v6414_v35  ;;  %3281 = vmatprep.mubr.bf16.mxu0 %v7811_v3 }
  0xc7   :  { %3251 = vmatprep.subr.bf16.mxu0 %v6422_v52  ;;  %3364 = vmatmul.mubr.bf16.vlgmr.msra.gmra.mrb[16].mxu1 %v7806_v49  ;;  %v6498_v52 = vld [vmem:[%s9210_s4 + $0x5a0] ss:$24 sps:$4 sm:$0xff]  }
  0xc8   :  { %3373 = vmatpush1.bf16.msra.mxu1 %v6459_v59  ;;  %3404 = vmatprep.mubr.bf16.mxu1 %v7811_v3  ;;  %v6545_v59 = vld [vmem:[%s9210_s4 + $0x5ac] ss:$24 sps:$4 sm:$0xff]  }
  0xc9   :  { %3374 = vmatprep.subr.bf16.mxu1 %v6467_v5  ;;  %v7996_v5 = vrot.slane %v1408_v34, %v7420_v10  ;;  %v6551_v10 = vld [vmem:[%s9210_s4 + $0x5dc] ss:$24 sps:$4 sm:$0xff]   ;;  %v6605_v34 = vld [vmem:[%s9210_s4 + $0x78c] ss:$24 sps:$4 sm:$0xff]  }
  0xca   :  { %3252 = vmatpush1.bf16.msra.mxu0 %v6420_v60 }
  0xcb   :  { %3253 = vmatprep.subr.bf16.mxu0 %v6428_v58  ;;  %v6537_v58 = vld [vmem:[%s9210_s4 + $0x578] ss:$24 sps:$4 sm:$0xff]  }
  0xcc   :  { %3375 = vmatpush1.bf16.msra.mxu1 %v6465_v53  ;;  %v6512_v53 = vld [vmem:[%s9210_s4 + $0x604] ss:$24 sps:$4 sm:$0xff]  }
  0xcd   :  { %3376 = vmatprep.subr.bf16.mxu1 %v6473_v57  ;;  %v6543_v57 = vld [vmem:[%s9210_s4 + $0x5a8] ss:$24 sps:$4 sm:$0xff]  }
  0xce   :  { %3254 = vmatpush1.bf16.msra.mxu0 %v6426_v42 }
  0xcf   :  { %3255 = vmatprep.subr.bf16.mxu0 %v6434_v46  ;;  %v6504_v46 = vld [vmem:[%s9210_s4 + $0x5d0] ss:$24 sps:$4 sm:$0xff]  }
  0xd0   :  { %3377 = vmatpush1.bf16.msra.mxu1 %v6471_v9  ;;  %v8017_v9 = vpack.c.bf16 %v7779_v33, %v7779_v33  ;;  %v6516_v33 = vld [vmem:[%s9210_s4 + $0x630] ss:$24 sps:$4 sm:$0xff]  }
  0xd1   :  { %3378 = vmatprep.subr.bf16.mxu1 %v6479_v48  ;;  %v6518_v48 = vld [vmem:[%s9210_s4 + $0x634] ss:$24 sps:$4 sm:$0xff]  }
  0xd2   :  { %3256 = vmatpush1.bf16.msra.mxu0 %v6432_v62  ;;  %v1435_v62 = vcombine.high %v7996_v5, %v7996_v5 }
  0xd3   :  { %3257 = vmatprep.subr.bf16.mxu0 %v6440_v45  ;;  %v6510_v45 = vld [vmem:[%s9210_s4 + $0x600] ss:$24 sps:$4 sm:$0xff]  }
  0xd4   :  { %3379 = vmatpush1.bf16.msra.mxu1 %v6477_v11  ;;  %v8028_v11 = vpack.c.bf16 %v1435_v62, %v1435_v62  ;;  %v6615_v62 = vld [vmem:[%s9210_s4 + $0x7e8] ss:$24 sps:$4 sm:$0xff]  }
  0xd5   :  { %3380 = vmatprep.subr.bf16.mxu1 %v6485_v12  ;;  %v6524_v12 = vld [vmem:[%s9210_s4 + $0x664] ss:$24 sps:$4 sm:$0xff]  }
  0xd6   :  { %3258 = vmatpush1.bf16.msra.mxu0 %v6438_v61  ;;  %v6549_v61 = vld [vmem:[%s9210_s4 + $0x5d8] ss:$24 sps:$4 sm:$0xff]  }
  0xd7   :  { %3259 = vmatprep.subr.bf16.mxu0 %v6446_v0  ;;  %v6557_v0 = vld [vmem:[%s9210_s4 + $0x60c] ss:$24 sps:$4 sm:$0xff]  }
  0xd8   :  { %3381 = vmatpush1.bf16.msra.mxu1 %v6483_v15  ;;  %v6522_v15 = vld [vmem:[%s9210_s4 + $0x660] ss:$24 sps:$4 sm:$0xff]  }
  0xd9   :  { %3382 = vmatprep.subr.bf16.mxu1 %v6491_v7  ;;  %v6530_v7 = vld [vmem:[%s9210_s4 + $0x694] ss:$24 sps:$4 sm:$0xff]  }
  0xda   :  { %3260 = vmatpush1.bf16.msra.mxu0 %v6444_v13  ;;  %v6555_v13 = vld [vmem:[%s9210_s4 + $0x608] ss:$24 sps:$4 sm:$0xff]  }
  0xdb   :  { %3261 = vmatprep.subr.bf16.mxu0 %v6452_v14  ;;  %v6563_v14 = vld [vmem:[%s9210_s4 + $0x63c] ss:$24 sps:$4 sm:$0xff]  }
  0xdc   :  { %3383 = vmatpush1.bf16.msra.mxu1 %v6489_v20  ;;  %v6528_v20 = vld [vmem:[%s9210_s4 + $0x690] ss:$24 sps:$4 sm:$0xff]  }
  0xdd   :  { %3384 = vmatprep.subr.bf16.mxu1 %v6497_v21  ;;  %v6536_v21 = vld [vmem:[%s9210_s4 + $0x6c4] ss:$24 sps:$4 sm:$0xff]  }
  0xde   :  { %3262 = vmatpush1.bf16.msra.mxu0 %v6450_v16  ;;  %v6561_v16 = vld [vmem:[%s9210_s4 + $0x638] ss:$24 sps:$4 sm:$0xff]  }
  0xdf   :  { %3263 = vmatprep.subr.bf16.mxu0 %v6458_v17  ;;  %v6569_v17 = vld [vmem:[%s9210_s4 + $0x66c] ss:$24 sps:$4 sm:$0xff]  }
  0xe0   :  { %3385 = vmatpush1.bf16.msra.mxu1 %v6495_v19  ;;  %v6534_v19 = vld [vmem:[%s9210_s4 + $0x6c0] ss:$24 sps:$4 sm:$0xff]  }
  0xe1   :  { %3386 = vmatprep.subr.bf16.mxu1 %v6503_v51  ;;  %v6542_v51 = vld [vmem:[%s9210_s4 + $0x6f4] ss:$24 sps:$4 sm:$0xff]  }
  0xe2   :  { %3264 = vmatpush1.bf16.msra.mxu0 %v6456_v47  ;;  %v6567_v47 = vld [vmem:[%s9210_s4 + $0x668] ss:$24 sps:$4 sm:$0xff]  }
  0xe3   :  { %3265 = vmatprep.subr.bf16.mxu0 %v6464_v18  ;;  %v6575_v18 = vld [vmem:[%s9210_s4 + $0x69c] ss:$24 sps:$4 sm:$0xff]  }
  0xe4   :  { %3387 = vmatpush1.bf16.msra.mxu1 %v6501_v2 }
  0xe5   :  { %3388 = vmatprep.subr.bf16.mxu1 %v6509_v23  ;;  %v6540_v23 = vld [vmem:[%s9210_s4 + $0x6f0] ss:$24 sps:$4 sm:$0xff]  }
  0xe6   :  { %3266 = vmatpush1.bf16.msra.mxu0 %v6462_v63  ;;  %v6573_v63 = vld [vmem:[%s9210_s4 + $0x698] ss:$24 sps:$4 sm:$0xff]  }
  0xe7   :  { %3267 = vmatprep.subr.bf16.mxu0 %v6470_v22  ;;  %v6581_v22 = vld [vmem:[%s9210_s4 + $0x6cc] ss:$24 sps:$4 sm:$0xff]  }
  0xe8   :  { %3389 = vmatpush1.bf16.msra.mxu1 %v6507_v50  ;;  %v6587_v50 = vld [vmem:[%s9210_s4 + $0x6fc] ss:$24 sps:$4 sm:$0xff]  }
  0xe9   :  { %3390 = vmatprep.subr.bf16.mxu1 %v6515_v6 }
  0xea   :  { %3268 = vmatpush1.bf16.msra.mxu0 %v6468_v24  ;;  %v6548_v24 = vld [vmem:[%s9210_s4 + $0x724] ss:$24 sps:$4 sm:$0xff]  }
  0xeb   :  { %3269 = vmatprep.subr.bf16.mxu0 %v6476_v25  ;;  %v6579_v25 = vld [vmem:[%s9210_s4 + $0x6c8] ss:$24 sps:$4 sm:$0xff]  }
  0xec   :  { %3391 = vmatpush1.bf16.msra.mxu1 %v6513_v27  ;;  %v6546_v27 = vld [vmem:[%s9210_s4 + $0x720] ss:$24 sps:$4 sm:$0xff]  }
  0xed   :  { %3392 = vmatprep.subr.bf16.mxu1 %v6521_v30 }
  0xee   :  { %3270 = vmatpush1.bf16.msra.mxu0 %v6474_v26 }
  0xef   :  { %3271 = vmatprep.subr.bf16.mxu0 %v6482_v56 }
  0xf0   :  { %3393 = vmatpush1.bf16.msra.mxu1 %v6519_v43 }
  0xf1   :  { %3394 = vmatprep.subr.bf16.mxu1 %v6527_v44  ;;  %v6585_v44 = vld [vmem:[%s9210_s4 + $0x6f8] ss:$24 sps:$4 sm:$0xff]  }
  0xf2   :  { %3272 = vmatpush1.bf16.msra.mxu0 %v6480_v31 }
  0xf3   :  { %3273 = vmatprep.subr.bf16.mxu0 %v6488_v32  ;;  %v6554_v32 = vld [vmem:[%s9210_s4 + $0x754] ss:$24 sps:$4 sm:$0xff]  }
  0xf4   :  { %3395 = vmatpush1.bf16.msra.mxu1 %v6525_v37  ;;  %v6552_v37 = vld [vmem:[%s9210_s4 + $0x750] ss:$24 sps:$4 sm:$0xff]  }
  0xf5   :  { %3396 = vmatprep.subr.bf16.mxu1 %v6533_v36  ;;  %v6560_v36 = vld [vmem:[%s9210_s4 + $0x784] ss:$24 sps:$4 sm:$0xff]  }
  0xf6   :  { %3274 = vmatpush1.bf16.msra.mxu0 %v6486_v1  ;;  %v6593_v1 = vld [vmem:[%s9210_s4 + $0x72c] ss:$24 sps:$4 sm:$0xff]  }
  0xf7   :  { %3275 = vmatprep.subr.bf16.mxu0 %v6494_v4 }
  0xf8   :  { %v7979_v35 = vpop.f32.mrb[0].mxu0  ;;  %3397 = vmatpush1.bf16.msra.mxu1 %v6531_v29  ;;  %v8082_v2 = vpop.f32.mrb[0].mxu1  ;;  %v6566_v29 = vld [vmem:[%s9210_s4 + $0x7b4] ss:$24 sps:$4 sm:$0xff]  }
  0xf9   :  { %v7984_v40 = vpop.f32.mrb[1].mxu0  ;;  %3398 = vmatprep.subr.bf16.mxu1 %v6539_v55  ;;  %v8096_v6 = vpop.f32.mrb[1].mxu1  ;;  %v6597_v55 = vld [vmem:[%s9210_s4 + $0x758] ss:$24 sps:$4 sm:$0xff]  }
  0xfa   :  { %v1115_v60 = vpop.f32.mrb[2].mxu0  ;;  %3276 = vmatpush1.bf16.msra.mxu0 %v6492_v39  ;;  %v1156_v26 = vpop.f32.mrb[2].mxu1  ;;  %v6599_v39 = vld [vmem:[%s9210_s4 + $0x75c] ss:$24 sps:$4 sm:$0xff]  }
  0xfb   :  { %v1116_v42 = vpop.f32.mrb[3].mxu0  ;;  %3277 = vmatprep.subr.bf16.mxu0 %v6500_v28  ;;  %v1157_v30 = vpop.f32.mrb[3].mxu1  ;;  %v6558_v28 = vld [vmem:[%s9210_s4 + $0x780] ss:$24 sps:$4 sm:$0xff]   ;;  %v6647_v26 = vld [vmem:[%s9210_s4 + $0x8dc] ss:$24 sps:$4 sm:$0xff]  }
  0xfc   :  { %3399 = vmatpush1.bf16.msra.mxu1 %v6537_v58  ;;  %v6603_v60 = vld [vmem:[%s9210_s4 + $0x788] ss:$24 sps:$4 sm:$0xff]   ;;  %v6611_v58 = vld [vmem:[%s9210_s4 + $0x7bc] ss:$24 sps:$4 sm:$0xff]   ;;  %v8235_v30 = vpack.c.bf16 %v7996_v5, %v7996_v5 }
  0xfd   :  { %3400 = vmatprep.subr.bf16.mxu1 %v6545_v59  ;;  %v6570_v59 = vld [vmem:[%s9210_s4 + $0x7e0] ss:$24 sps:$4 sm:$0xff]   ;;  %v6578_v42 = vld [vmem:[%s9210_s4 + $0x814] ss:$24 sps:$4 sm:$0xff]  }
  0xfe   :  { %3278 = vmatpush1.bf16.msra.mxu0 %v6498_v52  ;;  %v6564_v52 = vld [vmem:[%s9210_s4 + $0x7b0] ss:$24 sps:$4 sm:$0xff]   ;;  %v6612_v5 = vld [vmem:[%s9210_s4 + $0x40] ss:$24 sps:$4 sm:$0xff]  }
  0xff   :  { %3279 = vmatprep.subr.bf16.mxu0 %v6506_v41  ;;  %v6572_v41 = vld [vmem:[%s9210_s4 + $0x7e4] ss:$24 sps:$4 sm:$0xff]  }
 0x100   :  { %3401 = vmatpush1.bf16.msra.mxu1 %v6543_v57  ;;  %v6576_v57 = vld [vmem:[%s9210_s4 + $0x810] ss:$24 sps:$4 sm:$0xff]  }
 0x101   :  { %3402 = vmatprep.subr.bf16.mxu1 %v6551_v10  ;;  %v6584_v10 = vld [vmem:[%s9210_s4 + $0x844] ss:$24 sps:$4 sm:$0xff]  }
 0x102   :  { %3280 = vmatpush1.bf16.msra.mxu0 %v6504_v46  ;;  %v6609_v46 = vld [vmem:[%s9210_s4 + $0x7b8] ss:$24 sps:$4 sm:$0xff]  }
 0x103   :  { %3290 = vmatprep.subr.bf16.mxu0 %v6512_v53  ;;  %v6617_v53 = vld [vmem:[%s9210_s4 + $0x7ec] ss:$24 sps:$4 sm:$0xff]  }
 0x104   :  { %3403 = vmatpush1.bf16.msra.mxu1 %v6549_v61  ;;  %v6590_v61 = vld [vmem:[%s9210_s4 + $0x874] ss:$24 sps:$4 sm:$0xff]  }
 0x105   :  { %3282 = vmatmul.mubr.bf16.vlgmr.msra.gmra.mrb[16].mxu0 %v8017_v9  ;;  %3413 = vmatprep.subr.bf16.mxu1 %v6557_v0  ;;  %v6621_v0 = vld [vmem:[%s9210_s4 + $0x818] ss:$24 sps:$4 sm:$0xff]  }
 0x106   :  { %3291 = vmatpush1.bf16.msra.mxu0 %v6510_v45  ;;  %3322 = vmatprep.mubr.bf16.mxu0 %v8028_v11  ;;  %v6623_v45 = vld [vmem:[%s9210_s4 + $0x81c] ss:$24 sps:$4 sm:$0xff]  }
 0x107   :  { %3292 = vmatprep.subr.bf16.mxu0 %v6518_v48  ;;  %3405 = vmatmul.mubr.bf16.vlgmr.msra.gmra.mrb[16].mxu1 %v8017_v9  ;;  %v6582_v48 = vld [vmem:[%s9210_s4 + $0x840] ss:$24 sps:$4 sm:$0xff]  }
 0x108   :  { %3414 = vmatpush1.bf16.msra.mxu1 %v6555_v13  ;;  %3445 = vmatprep.mubr.bf16.mxu1 %v8028_v11  ;;  %v6588_v13 = vld [vmem:[%s9210_s4 + $0x870] ss:$24 sps:$4 sm:$0xff]  }
 0x109   :  { %3415 = vmatprep.subr.bf16.mxu1 %v6563_v14  ;;  %v6596_v14 = vld [vmem:[%s9210_s4 + $0x8a4] ss:$24 sps:$4 sm:$0xff]  }
 0x10a   :  { %3293 = vmatpush1.bf16.msra.mxu0 %v6516_v33  ;;  %v6629_v33 = vld [vmem:[%s9210_s4 + $0x84c] ss:$24 sps:$4 sm:$0xff]  }
 0x10b   :  { %3294 = vmatprep.subr.bf16.mxu0 %v6524_v12 }
 0x10c   :  { %3416 = vmatpush1.bf16.msra.mxu1 %v6561_v16 }
 0x10d   :  { %3417 = vmatprep.subr.bf16.mxu1 %v6569_v17 }
 0x10e   :  { %3295 = vmatpush1.bf16.msra.mxu0 %v6522_v15  ;;  %v6627_v15 = vld [vmem:[%s9210_s4 + $0x848] ss:$24 sps:$4 sm:$0xff]  }
 0x10f   :  { %3296 = vmatprep.subr.bf16.mxu0 %v6530_v7  ;;  %v6635_v7 = vld [vmem:[%s9210_s4 + $0x87c] ss:$24 sps:$4 sm:$0xff]  }
 0x110   :  { %3418 = vmatpush1.bf16.msra.mxu1 %v6567_v47 }
 0x111   :  { %3419 = vmatprep.subr.bf16.mxu1 %v6575_v18 }
 0x112   :  { %3297 = vmatpush1.bf16.msra.mxu0 %v6528_v20 }
 0x113   :  { %3298 = vmatprep.subr.bf16.mxu0 %v6536_v21  ;;  %v6594_v21 = vld [vmem:[%s9210_s4 + $0x8a0] ss:$24 sps:$4 sm:$0xff]  }
 0x114   :  { %3420 = vmatpush1.bf16.msra.mxu1 %v6573_v63  ;;  %v6633_v63 = vld [vmem:[%s9210_s4 + $0x878] ss:$24 sps:$4 sm:$0xff]  }
 0x115   :  { %3421 = vmatprep.subr.bf16.mxu1 %v6581_v22  ;;  %v6641_v22 = vld [vmem:[%s9210_s4 + $0x8ac] ss:$24 sps:$4 sm:$0xff]  }
 0x116   :  { %3299 = vmatpush1.bf16.msra.mxu0 %v6534_v19  ;;  %v6602_v19 = vld [vmem:[%s9210_s4 + $0x8d4] ss:$24 sps:$4 sm:$0xff]  }
 0x117   :  { %3300 = vmatprep.subr.bf16.mxu0 %v6542_v51 }
 0x118   :  { %v8098_v56 = vpop.f32.mrb[4].mxu0  ;;  %3422 = vmatpush1.bf16.msra.mxu1 %v6579_v25  ;;  %v6608_v25 = vld [vmem:[%s9210_s4 + $0x14] ss:$24 sps:$4 sm:$0xff]  }
 0x119   :  { %v8103_v31 = vpop.f32.mrb[5].mxu0  ;;  %3423 = vmatprep.subr.bf16.mxu1 %v6587_v50  ;;  %v6639_v50 = vld [vmem:[%s9210_s4 + $0x8a8] ss:$24 sps:$4 sm:$0xff]  }
 0x11a   :  { %v1197_v43 = vpop.f32.mrb[6].mxu0  ;;  %3301 = vmatpush1.bf16.msra.mxu0 %v6540_v23  ;;  %v8186_v12 = vpop.f32.mrb[4].mxu1 }
 0x11b   :  { %v1198_v4 = vpop.f32.mrb[7].mxu0  ;;  %3302 = vmatprep.subr.bf16.mxu0 %v6548_v24  ;;  %v8200_v16 = vpop.f32.mrb[5].mxu1  ;;  %v6600_v24 = vld [vmem:[%s9210_s4 + $0x8d0] ss:$24 sps:$4 sm:$0xff]  }
 0x11c   :  { %3424 = vmatpush1.bf16.msra.mxu1 %v6585_v44  ;;  %v1238_v17 = vpop.f32.mrb[6].mxu1  ;;  %v6645_v43 = vld [vmem:[%s9210_s4 + $0x8d8] ss:$24 sps:$4 sm:$0xff]   ;;  %v6620_v44 = vld [vmem:[%s9210_s4 + $0x74] ss:$24 sps:$4 sm:$0xff]  }
 0x11d   :  { %3425 = vmatprep.subr.bf16.mxu1 %v6593_v1  ;;  %v1239_v47 = vpop.f32.mrb[7].mxu1  ;;  %v6618_v1 = vld [vmem:[%s9210_s4 + $0x70] ss:$24 sps:$4 sm:$0xff]   ;;  %v6626_v4 = vld [vmem:[%s9210_s4 + $0xa4] ss:$24 sps:$4 sm:$0xff]  }
 0x11e   :  { %3303 = vmatpush1.bf16.msra.mxu0 %v6546_v27  ;;  %v6606_v27 = vld [vmem:[%s9210_s4 + $0x10] ss:$24 sps:$4 sm:$0xff]  }
 0x11f   :  { %3304 = vmatprep.subr.bf16.mxu0 %v6554_v32  ;;  %v6614_v32 = vld [vmem:[%s9210_s4 + $0x44] ss:$24 sps:$4 sm:$0xff]  }
 0x120   :  { %3426 = vmatpush1.bf16.msra.mxu1 %v6591_v38  ;;  %v6638_v38 = vld [vmem:[%s9210_s4 + $0x104] ss:$24 sps:$4 sm:$0xff]  }
 0x121   :  { %3427 = vmatprep.subr.bf16.mxu1 %v6599_v39 }
 0x122   :  { %3305 = vmatpush1.bf16.msra.mxu0 %v6552_v37  ;;  %v6624_v37 = vld [vmem:[%s9210_s4 + $0xa0] ss:$24 sps:$4 sm:$0xff]  }
 0x123   :  { %3306 = vmatprep.subr.bf16.mxu0 %v6560_v36  ;;  %v6630_v36 = vld [vmem:[%s9210_s4 + $0xd0] ss:$24 sps:$4 sm:$0xff]  }
 0x124   :  { %3428 = vmatpush1.bf16.msra.mxu1 %v6597_v55 }
 0x125   :  { %3429 = vmatprep.subr.bf16.mxu1 %v6605_v34 }
 0x126   :  { %3307 = vmatpush1.bf16.msra.mxu0 %v6558_v28  ;;  %v6636_v28 = vld [vmem:[%s9210_s4 + $0x100] ss:$24 sps:$4 sm:$0xff]  }
 0x127   :  { %3308 = vmatprep.subr.bf16.mxu0 %v6566_v29  ;;  %v6644_v29 = vld [vmem:[%s9210_s4 + $0x134] ss:$24 sps:$4 sm:$0xff]  }
 0x128   :  { %3430 = vmatpush1.bf16.msra.mxu1 %v6603_v60 }
 0x129   :  { %3431 = vmatprep.subr.bf16.mxu1 %v6611_v58 }
 0x12a   :  { %3309 = vmatpush1.bf16.msra.mxu0 %v6564_v52 }
 0x12b   :  { %3310 = vmatprep.subr.bf16.mxu0 %v6572_v41 }
 0x12c   :  { %3432 = vmatpush1.bf16.msra.mxu1 %v6609_v46 }
 0x12d   :  { %3433 = vmatprep.subr.bf16.mxu1 %v6617_v53  ;;  %v6648_v53 = vld [vmem:[%s9210_s4 + $0x160] ss:$24 sps:$4 sm:$0xff]  }
 0x12e   :  { %3311 = vmatpush1.bf16.msra.mxu0 %v6570_v59  ;;  %v6642_v59 = vld [vmem:[%s9210_s4 + $0x130] ss:$24 sps:$4 sm:$0xff]  }
 0x12f   :  { %3312 = vmatprep.subr.bf16.mxu0 %v6578_v42  ;;  %v6650_v42 = vld [vmem:[%s9210_s4 + $0x164] ss:$24 sps:$4 sm:$0xff]  }
 0x130   :  { %3434 = vmatpush1.bf16.msra.mxu1 %v6615_v62  ;;  %v6656_v62 = vld [vmem:[%s9210_s4 + $0x1c4] ss:$24 sps:$4 sm:$0xff]  }
 0x131   :  { %3435 = vmatprep.subr.bf16.mxu1 %v6623_v45  ;;  %v6654_v45 = vld [vmem:[%s9210_s4 + $0x1c0] ss:$24 sps:$4 sm:$0xff]  }
 0x132   :  { %3313 = vmatpush1.bf16.msra.mxu0 %v6576_v57  ;;  %v6653_v57 = vld [vmem:[%s9210_s4 + $0x194] ss:$24 sps:$4 sm:$0xff]  }
 0x133   :  { %3314 = vmatprep.subr.bf16.mxu0 %v6584_v10  ;;  %v6651_v10 = vld [vmem:[%s9210_s4 + $0x190] ss:$24 sps:$4 sm:$0xff]  }
 0x134   :  { %3436 = vmatpush1.bf16.msra.mxu1 %v6621_v0  ;;  %v6662_v0 = vld [vmem:[%s9210_s4 + $0x224] ss:$24 sps:$4 sm:$0xff]  }
 0x135   :  { %3437 = vmatprep.subr.bf16.mxu1 %v6629_v33  ;;  %v6660_v33 = vld [vmem:[%s9210_s4 + $0x220] ss:$24 sps:$4 sm:$0xff]  }
 0x136   :  { %3315 = vmatpush1.bf16.msra.mxu0 %v6582_v48  ;;  %v6659_v48 = vld [vmem:[%s9210_s4 + $0x1f4] ss:$24 sps:$4 sm:$0xff]  }
 0x137   :  { %3316 = vmatprep.subr.bf16.mxu0 %v6590_v61  ;;  %v6657_v61 = vld [vmem:[%s9210_s4 + $0x1f0] ss:$24 sps:$4 sm:$0xff]  }
 0x138   :  { %v8202_v20 = vpop.f32.mrb[8].mxu0  ;;  %3438 = vmatpush1.bf16.msra.mxu1 %v6627_v15 }
 0x139   :  { %v8207_v18 = vpop.f32.mrb[9].mxu0  ;;  %3439 = vmatprep.subr.bf16.mxu1 %v6635_v7 }
 0x13a   :  { %v1279_v51 = vpop.f32.mrb[10].mxu0  ;;  %3317 = vmatpush1.bf16.msra.mxu0 %v6588_v13  ;;  %v8270_v39 = vpop.f32.mrb[8].mxu1  ;;  %v6665_v13 = vld [vmem:[%s9210_s4 + $0x254] ss:$24 sps:$4 sm:$0xff]  }
 0x13b   :  { %v1280_v23 = vpop.f32.mrb[11].mxu0  ;;  %3318 = vmatprep.subr.bf16.mxu0 %v6596_v14  ;;  %v8278_v55 = vpop.f32.mrb[9].mxu1 }
 0x13c   :  { %3440 = vmatpush1.bf16.msra.mxu1 %v6633_v63  ;;  %v1320_v34 = vpop.f32.mrb[10].mxu1 }
 0x13d   :  { %3441 = vmatprep.subr.bf16.mxu1 %v6641_v22  ;;  %v1321_v41 = vpop.f32.mrb[11].mxu1 }
 0x13e   :  { %3319 = vmatpush1.bf16.msra.mxu0 %v6594_v21 }
 0x13f   :  { %3320 = vmatprep.subr.bf16.mxu0 %v6602_v19 }
 0x140   :  { %3442 = vmatpush1.bf16.msra.mxu1 %v6639_v50 }
 0x141   :  { %3443 = vmatprep.subr.bf16.mxu1 %v6647_v26 }
 0x142   :  { %3321 = vmatpush1.bf16.msra.mxu0 %v6600_v24 }
 0x143   :  { %3454 = vmatprep.subr.bf16.mxu0 %v6608_v25 }
 0x144   :  { %3444 = vmatpush1.bf16.msra.mxu1 %v6645_v43 }
 0x145   :  { %3323 = vmatmul.mubr.bf16.vlgmr.msra.gmra.mrb[16].mxu0 %v8235_v30 }
 0x146   :  { %3455 = vmatpush1.bf16.msra.mxu0 %v6606_v27  ;;  %3486 = vmatprep.mubr.bf16.mxu0 %v7596_v8  ;;  %v6632_v8 = vld [vmem:[%s9210_s4 + $0xd4] ss:$24 sps:$4 sm:$0xff]  }
 0x147   :  { %3456 = vmatprep.subr.bf16.mxu0 %v6614_v32  ;;  %3446 = vmatmul.mubr.bf16.vlgmr.msra.gmra.mrb[16].mxu1 %v8235_v30 }
 0x14a   :  { %3457 = vmatpush1.bf16.msra.mxu0 %v6612_v5 }
 0x14b   :  { %3458 = vmatprep.subr.bf16.mxu0 %v6620_v44 }
 0x14e   :  { %3459 = vmatpush1.bf16.msra.mxu0 %v6618_v1 }
 0x14f   :  { %3460 = vmatprep.subr.bf16.mxu0 %v6626_v4 }
 0x152   :  { %3461 = vmatpush1.bf16.msra.mxu0 %v6624_v37 }
 0x153   :  { %3462 = vmatprep.subr.bf16.mxu0 %v6632_v8 }
 0x156   :  { %3463 = vmatpush1.bf16.msra.mxu0 %v6630_v36 }
 0x157   :  { %3464 = vmatprep.subr.bf16.mxu0 %v6638_v38 }
 0x158   :  { %v8280_v52 = vpop.f32.mrb[12].mxu0 }
 0x159   :  { %v8282_v60 = vpop.f32.mrb[13].mxu0 }
 0x15a   :  { %v1361_v58 = vpop.f32.mrb[14].mxu0  ;;  %3465 = vmatpush1.bf16.msra.mxu0 %v6636_v28 }
 0x15b   :  { %v1362_v46 = vpop.f32.mrb[15].mxu0  ;;  %3466 = vmatprep.subr.bf16.mxu0 %v6644_v29 }
 0x15e   :  { %3467 = vmatpush1.bf16.msra.mxu0 %v6642_v59 }
 0x15f   :  { %3468 = vmatprep.subr.bf16.mxu0 %v6650_v42 }
 0x162   :  { %3469 = vmatpush1.bf16.msra.mxu0 %v6648_v53 }
 0x163   :  { %3470 = vmatprep.subr.bf16.mxu0 %v6653_v57 }
 0x166   :  { %3471 = vmatpush1.bf16.msra.mxu0 %v6651_v10 }
 0x167   :  { %3472 = vmatprep.subr.bf16.mxu0 %v6656_v62 }
 0x16a   :  { %3473 = vmatpush1.bf16.msra.mxu0 %v6654_v45 }
 0x16b   :  { %3474 = vmatprep.subr.bf16.mxu0 %v6659_v48 }
 0x16e   :  { %3475 = vmatpush1.bf16.msra.mxu0 %v6657_v61 }
 0x16f   :  { %3476 = vmatprep.subr.bf16.mxu0 %v6662_v0 }
 0x170   :  { %14 = vsyncpa [#allocation4], 0  ;;  %v383_v14 = vsub.s32 6, %v7375_v54  ;;  %v8324_v15 = vld [vmem:[%s9209_s3 + $0x8] sm:$0xff]  ;;  %v6668_v17 = vld [vmem:[%s9210_s4 + $0x284] ss:$24 sps:$4 sm:$0xff]  }
 0x171   :  { %v6663_v7 = vld [vmem:[%s9210_s4 + $0x250] ss:$24 sps:$4 sm:$0xff]   ;;  %v1398_v47 = vpop.f32.mrb[12].mxu1  ;;  %v387_v19 = vsub.s32 7, %v7375_v54  ;;  %v6666_v63 = vld [vmem:[%s9210_s4 + $0x280] ss:$24 sps:$4 sm:$0xff]  }
 0x172   :  { %3477 = vmatpush1.bf16.msra.mxu0 %v6660_v33  ;;  %v416_v21 = vrot.slane %v8324_v15, %v383_v14  ;;  %v1400_v23 = vpop.f32.mrb[13].mxu1  ;;  %v6671_v24 = vld [vmem:[%s9210_s4 + $0x2b4] ss:$24 sps:$4 sm:$0xff]   ;;  %v6669_v27 = vld [vmem:[%s9210_s4 + $0x2b0] ss:$24 sps:$4 sm:$0xff]   ;;  %v6768_v43 = vld [vmem:[%s9213_s7 + $0x40] sm:$0xff]  }
 0x173   :  { %3478 = vmatprep.subr.bf16.mxu0 %v6665_v13  ;;  %v420_v22 = vrot.slane %v8324_v15, %v387_v19  ;;  %v1402_v25 = vpop.f32.mrb[14].mxu1  ;;  %v6674_v32 = vld [vmem:[%s9210_s4 + $0x2e4] ss:$24 sps:$4 sm:$0xff]   ;;  %v6672_v44 = vld [vmem:[%s9210_s4 + $0x2e0] ss:$24 sps:$4 sm:$0xff]   ;;  %6063 = vmatprep.subr.bf16.mxu1 %v6768_v43  ;;  %v6773_v4 = vld [vmem:[%s9213_s7 + $0x48] sm:$0xff]  }
 0x174   :  { %v8336_v51 = vadd.f32 %v1398_v47, %v416_v21  ;;  %v1403_v26 = vpop.f32.mrb[15].mxu1  ;;  %v6769_v5 = vld [vmem:[%s9213_s7] sm:$0xff]   ;;  %v6677_v1 = vld [vmem:[%s9210_s4 + $0x314] ss:$24 sps:$4 sm:$0xff]   ;;  %v6675_v8 = vld [vmem:[%s9210_s4 + $0x310] ss:$24 sps:$4 sm:$0xff]  }
 0x175   :  { %v8347_v50 = vadd.f32 %v1400_v23, %v420_v22  ;;  %6064 = vmatpush3.bf16.msra.mxu1 %v6769_v5  ;;  %v6774_v37 = vld [vmem:[%s9213_s7 + $0x8] sm:$0xff]   ;;  %v6680_v36 = vld [vmem:[%s9210_s4 + $0x344] ss:$24 sps:$4 sm:$0xff]   ;;  %v6776_v38 = vld [vmem:[%s9213_s7 + $0x50] sm:$0xff]   ;;  %s6975_s12 = smov [#allocation3]  }
 0x176   :  { %3479 = vmatpush1.bf16.msra.mxu0 %v6663_v7  ;;  %6065 = vmatprep.subr.bf16.mxu1 %v6773_v4  ;;  %v6778_v28 = vld [vmem:[%s9213_s7 + $0x10] sm:$0xff]   ;;  %v6678_v29 = vld [vmem:[%s9210_s4 + $0x340] ss:$24 sps:$4 sm:$0xff]   ;;  %v6686_v58 = vld [vmem:[%s9210_s4 + $0x3a4] ss:$24 sps:$4 sm:$0xff]   ;;  %s5462_s13 = sshll.u32 %s6975_s12, 4  ;;  %s5463_s13 = int_to_ptr.vmem [resolvable:$true] %s5462_s13 }
 0x177   :  { %3480 = vmatprep.subr.bf16.mxu0 %v6668_v17  ;;  %v6683_v34 = vld [vmem:[%s9210_s4 + $0x374] ss:$24 sps:$4 sm:$0xff]   ;;  %v6782_v41 = vld [vmem:[%s9213_s7 + $0x18] sm:$0xff]   ;;  %v6784_v59 = vld [vmem:[%s9213_s7 + $0x60] sm:$0xff]   ;;  %s6948_s14 = scalar_lea.vmem %s5463_s13, 32  ;;  %p6953_p1 = scmp.lt.s32.totalorder %s5463_s13, %s5463_s13 }
 0x178   :  { %v6786_v42 = vld [vmem:[%s9213_s7 + $0x20] sm:$0xff]   ;;  %v6689_v53 = vld [vmem:[%s9210_s4 + $0x3d4] ss:$24 sps:$4 sm:$0xff]   ;;  %v6687_v62 = vld [vmem:[%s9210_s4 + $0x3d0] ss:$24 sps:$4 sm:$0xff]   ;;  %p6949_p0 = scmp.ne.s32.totalorder %s5463_s13, %s6948_s14  ;;  %p6954_p2 = scmp.lt.s32.totalorder %s6948_s14, %s6948_s14 }
 0x179   :  { %6066 = vmatpush3.bf16.msra.mxu1 %v6774_v37  ;;  %v6684_v46 = vld [vmem:[%s9210_s4 + $0x3a0] ss:$24 sps:$4 sm:$0xff]   ;;  %v6788_v57 = vld [vmem:[%s9213_s7 + $0x68] sm:$0xff]   ;;  %v6692_v45 = vld [vmem:[%s9210_s4 + $0x404] ss:$24 sps:$4 sm:$0xff]  }
 0x17a   :  { %3481 = vmatpush1.bf16.msra.mxu0 %v6666_v63  ;;  %6067 = vmatprep.subr.bf16.mxu1 %v6776_v38  ;;  %v6790_v10 = vld [vmem:[%s9213_s7 + $0x28] sm:$0xff]   ;;  %v6792_v48 = vld [vmem:[%s9213_s7 + $0x70] sm:$0xff]   ;;  %v6690_v0 = vld [vmem:[%s9210_s4 + $0x400] ss:$24 sps:$4 sm:$0xff]   ;;  %p6955_p3 = por %p6954_p2, %p6953_p1 }
 0x17b   :  { %3482 = vmatprep.subr.bf16.mxu0 %v6671_v24  ;;  %v6794_v61 = vld [vmem:[%s9213_s7 + $0x30] sm:$0xff]   ;;  %v6796_v13 = vld [vmem:[%s9213_s7 + $0x78] sm:$0xff]   ;;  %v6800_v47 = vld [vmem:[%s9213_s7 + $0xc0] sm:$0xff]  }
 0x17c   :  { %v6695_v33 = vld [vmem:[%s9210_s4 + $0x434] ss:$24 sps:$4 sm:$0xff]   ;;  %v6798_v7 = vld [vmem:[%s9213_s7 + $0x38] sm:$0xff]   ;;  %v6693_v17 = vld [vmem:[%s9210_s4 + $0x430] ss:$24 sps:$4 sm:$0xff]   ;;  %p6956_p4 = pnand %p6955_p3, %p6949_p0 }
 0x17d   :  { %6068 = vmatpush3.bf16.msra.mxu1 %v6778_v28  ;;  %v6698_v21 = vld [vmem:[%s9210_s4 + $0x464] ss:$24 sps:$4 sm:$0xff]   ;;  %v6696_v63 = vld [vmem:[%s9210_s4 + $0x460] ss:$24 sps:$4 sm:$0xff]   ;;  %v6701_v22 = vld [vmem:[%s9210_s4 + $0x494] ss:$24 sps:$4 sm:$0xff]  }
 0x17e   :  { %3483 = vmatpush1.bf16.msra.mxu0 %v6669_v27  ;;  %v6699_v23 = vld [vmem:[%s9210_s4 + $0x490] ss:$24 sps:$4 sm:$0xff]   ;;  %v6704_v24 = vld [vmem:[%s9210_s4 + $0x4c4] ss:$24 sps:$4 sm:$0xff]   ;;  %v6702_v25 = vld [vmem:[%s9210_s4 + $0x4c0] ss:$24 sps:$4 sm:$0xff]  }
 0x17f   :  { %3484 = vmatprep.subr.bf16.mxu0 %v6674_v32  ;;  %v6707_v26 = vld [vmem:[%s9210_s4 + $0x4f4] ss:$24 sps:$4 sm:$0xff]   ;;  %v6705_v27 = vld [vmem:[%s9210_s4 + $0x4f0] ss:$24 sps:$4 sm:$0xff]   ;;  %v6710_v32 = vld [vmem:[%s9210_s4 + $0x524] ss:$24 sps:$4 sm:$0xff]  }
 0x180   :  { %v6708_v43 = vld [vmem:[%s9210_s4 + $0x520] ss:$24 sps:$4 sm:$0xff]   ;;  %v6713_v5 = vld [vmem:[%s9210_s4 + $0x554] ss:$24 sps:$4 sm:$0xff]  }
 0x181   :  { %v6714_v4 = vld [vmem:[%s9210_s4 + $0x580] ss:$24 sps:$4 sm:$0xff]   ;;  %v6719_v37 = vld [vmem:[%s9210_s4 + $0x5b4] ss:$24 sps:$4 sm:$0xff]  }
 0x182   :  { %3485 = vmatpush1.bf16.msra.mxu0 %v6672_v44  ;;  %v6711_v44 = vld [vmem:[%s9210_s4 + $0x550] ss:$24 sps:$4 sm:$0xff]   ;;  %v6720_v38 = vld [vmem:[%s9210_s4 + $0x5e0] ss:$24 sps:$4 sm:$0xff]   ;;  %v6725_v28 = vld [vmem:[%s9210_s4 + $0x614] ss:$24 sps:$4 sm:$0xff]  }
 0x183   :  { %3495 = vmatprep.subr.bf16.mxu0 %v6677_v1  ;;  %v6716_v1 = vld [vmem:[%s9210_s4 + $0x584] ss:$24 sps:$4 sm:$0xff]  }
 0x185   :  { %3487 = vmatmul.mubr.bf16.vlgmr.msra.gmra.mrb[20].mxu0 %v7806_v49  ;;  %v6780_v49 = vld [vmem:[%s9213_s7 + $0x58] sm:$0xff]  }
 0x186   :  { %3496 = vmatpush1.bf16.msra.mxu0 %v6675_v8  ;;  %3527 = vmatprep.mubr.bf16.mxu0 %v7811_v3  ;;  %v6681_v3 = vld [vmem:[%s9210_s4 + $0x370] ss:$24 sps:$4 sm:$0xff]  }
 0x187   :  { %3497 = vmatprep.subr.bf16.mxu0 %v6680_v36  ;;  %6069 = vmatprep.subr.bf16.mxu1 %v6780_v49  ;;  %v6717_v8 = vld [vmem:[%s9210_s4 + $0x5b0] ss:$24 sps:$4 sm:$0xff]   ;;  %v6722_v36 = vld [vmem:[%s9210_s4 + $0x5e4] ss:$24 sps:$4 sm:$0xff]   ;;  %v6726_v49 = vld [vmem:[%s9210_s4 + $0x640] ss:$24 sps:$4 sm:$0xff]  }
 0x188   :  { %6070 = vmatpush3.bf16.msra.mxu1 %v6782_v41  ;;  %v6731_v41 = vld [vmem:[%s9210_s4 + $0x674] ss:$24 sps:$4 sm:$0xff]  }
 0x189   :  { %6071 = vmatprep.subr.bf16.mxu1 %v6784_v59  ;;  %v6735_v59 = vld [vmem:[%s9210_s4 + $0x6d0] ss:$24 sps:$4 sm:$0xff]  }
 0x18a   :  { %3498 = vmatpush1.bf16.msra.mxu0 %v6678_v29  ;;  %v6723_v29 = vld [vmem:[%s9210_s4 + $0x610] ss:$24 sps:$4 sm:$0xff]  }
 0x18b   :  { %3499 = vmatprep.subr.bf16.mxu0 %v6683_v34  ;;  %v6728_v34 = vld [vmem:[%s9210_s4 + $0x644] ss:$24 sps:$4 sm:$0xff]  }
 0x18c   :  { %6072 = vmatpush3.bf16.msra.mxu1 %v6786_v42  ;;  %v6740_v42 = vld [vmem:[%s9210_s4 + $0x704] ss:$24 sps:$4 sm:$0xff]  }
 0x18d   :  { %6073 = vmatprep.subr.bf16.mxu1 %v6788_v57  ;;  %v6741_v57 = vld [vmem:[%s9210_s4 + $0x730] ss:$24 sps:$4 sm:$0xff]  }
 0x18e   :  { %3500 = vmatpush1.bf16.msra.mxu0 %v6681_v3  ;;  %v6729_v3 = vld [vmem:[%s9210_s4 + $0x670] ss:$24 sps:$4 sm:$0xff]  }
 0x18f   :  { %3501 = vmatprep.subr.bf16.mxu0 %v6686_v58  ;;  %v6737_v58 = vld [vmem:[%s9210_s4 + $0x6d4] ss:$24 sps:$4 sm:$0xff]  }
 0x190   :  { %6074 = vmatpush3.bf16.msra.mxu1 %v6790_v10  ;;  %v6746_v10 = vld [vmem:[%s9210_s4 + $0x764] ss:$24 sps:$4 sm:$0xff]  }
 0x191   :  { %6075 = vmatprep.subr.bf16.mxu1 %v6792_v48  ;;  %v6747_v48 = vld [vmem:[%s9210_s4 + $0x790] ss:$24 sps:$4 sm:$0xff]  }
 0x192   :  { %3502 = vmatpush1.bf16.msra.mxu0 %v6684_v46  ;;  %v6738_v46 = vld [vmem:[%s9210_s4 + $0x700] ss:$24 sps:$4 sm:$0xff]  }
 0x193   :  { %3503 = vmatprep.subr.bf16.mxu0 %v6689_v53  ;;  %v6743_v53 = vld [vmem:[%s9210_s4 + $0x734] ss:$24 sps:$4 sm:$0xff]  }
 0x194   :  { %6076 = vmatpush3.bf16.msra.mxu1 %v6794_v61  ;;  %v6752_v61 = vld [vmem:[%s9210_s4 + $0x7c4] ss:$24 sps:$4 sm:$0xff]  }
 0x195   :  { %6077 = vmatprep.subr.bf16.mxu1 %v6796_v13  ;;  %v6753_v13 = vld [vmem:[%s9210_s4 + $0x7f0] ss:$24 sps:$4 sm:$0xff]  }
 0x196   :  { %3504 = vmatpush1.bf16.msra.mxu0 %v6687_v62  ;;  %v6744_v62 = vld [vmem:[%s9210_s4 + $0x760] ss:$24 sps:$4 sm:$0xff]  }
 0x197   :  { %3505 = vmatprep.subr.bf16.mxu0 %v6692_v45  ;;  %v6749_v45 = vld [vmem:[%s9210_s4 + $0x794] ss:$24 sps:$4 sm:$0xff]  }
 0x198   :  { %6078 = vmatpush3.bf16.msra.mxu1 %v6798_v7  ;;  %v6758_v7 = vld [vmem:[%s9210_s4 + $0x824] ss:$24 sps:$4 sm:$0xff]  }
 0x199   :  { %6085 = vmatprep.subr.bf16.mxu1 %v6800_v47  ;;  %v6759_v47 = vld [vmem:[%s9210_s4 + $0x850] ss:$24 sps:$4 sm:$0xff]  }
 0x19a   :  { %3506 = vmatpush1.bf16.msra.mxu0 %v6690_v0  ;;  %v6750_v0 = vld [vmem:[%s9210_s4 + $0x7c0] ss:$24 sps:$4 sm:$0xff]  }
 0x19b   :  { %3507 = vmatprep.subr.bf16.mxu0 %v6695_v33  ;;  %v6755_v33 = vld [vmem:[%s9210_s4 + $0x7f4] ss:$24 sps:$4 sm:$0xff]  }
 0x19e   :  { %3508 = vmatpush1.bf16.msra.mxu0 %v6693_v17  ;;  %v6756_v17 = vld [vmem:[%s9210_s4 + $0x820] ss:$24 sps:$4 sm:$0xff]  }
 0x19f   :  { %3509 = vmatprep.subr.bf16.mxu0 %v6698_v21  ;;  %v6761_v21 = vld [vmem:[%s9210_s4 + $0x854] ss:$24 sps:$4 sm:$0xff]  }
 0x1a2   :  { %3510 = vmatpush1.bf16.msra.mxu0 %v6696_v63  ;;  %v6764_v63 = vld [vmem:[%s9210_s4 + $0x884] ss:$24 sps:$4 sm:$0xff]  }
 0x1a3   :  { %3511 = vmatprep.subr.bf16.mxu0 %v6701_v22  ;;  %v6762_v22 = vld [vmem:[%s9210_s4 + $0x880] ss:$24 sps:$4 sm:$0xff]  }
 0x1a6   :  { %3512 = vmatpush1.bf16.msra.mxu0 %v6699_v23  ;;  %v6767_v23 = vld [vmem:[%s9210_s4 + $0x8b4] ss:$24 sps:$4 sm:$0xff]  }
 0x1a7   :  { %3513 = vmatprep.subr.bf16.mxu0 %v6704_v24  ;;  %v6765_v24 = vld [vmem:[%s9210_s4 + $0x8b0] ss:$24 sps:$4 sm:$0xff]  }
 0x1aa   :  { %3514 = vmatpush1.bf16.msra.mxu0 %v6702_v25  ;;  %v8602_v25 = vld [vmem:[%s9209_s3] sm:$0xff] }
 0x1ab   :  { %3515 = vmatprep.subr.bf16.mxu0 %v6707_v26  ;;  %v6772_v26 = vld [vmem:[%s9210_s4 + $0x8e4] ss:$24 sps:$4 sm:$0xff]  }
 0x1ae   :  { %3516 = vmatpush1.bf16.msra.mxu0 %v6705_v27  ;;  %v388_v27 = vrot.slane %v8602_v25, %v387_v19  ;;  %v6779_v19 = vld [vmem:[%s9212_s6 + $0x1c8] sm:$0xff]  }
 0x1af   :  { %3517 = vmatprep.subr.bf16.mxu0 %v6710_v32  ;;  %v6770_v32 = vld [vmem:[%s9210_s4 + $0x8e0] ss:$24 sps:$4 sm:$0xff]  }
 0x1b2   :  { %3518 = vmatpush1.bf16.msra.mxu0 %v6708_v43  ;;  %v6775_v43 = vld [vmem:[%s9212_s6 + $0x1c0] sm:$0xff]  }
 0x1b3   :  { %3519 = vmatprep.subr.bf16.mxu0 %v6713_v5  ;;  %v1237_v5 = vadd.f32 %v8200_v16, %v388_v27  ;;  %v6783_v16 = vld [vmem:[%s9212_s6 + $0x1d0] sm:$0xff]   ;;  %v6806_v27 = vld [vmem:[%s9213_s7 + $0x88] sm:$0xff]  }
 0x1b6   :  { %3520 = vmatpush1.bf16.msra.mxu0 %v6711_v44  ;;  %v6777_v44 = vld [vmem:[%s9212_s6 + $0x180] sm:$0xff]  }
 0x1b7   :  { %3521 = vmatprep.subr.bf16.mxu0 %v6716_v1  ;;  %v3584_v1 = vpack.c.bf16 %v1237_v5, %v1237_v5  ;;  %v6809_v5 = vld [vmem:[%s9212_s6 + $0x280] sm:$0xff]  }
 0x1ba   :  { %3522 = vmatpush1.bf16.msra.mxu0 %v6714_v4  ;;  %v6781_v4 = vld [vmem:[%s9212_s6 + $0x188] sm:$0xff]  }
 0x1bb   :  { %3523 = vmatprep.subr.bf16.mxu0 %v6719_v37  ;;  %v6785_v37 = vld [vmem:[%s9212_s6 + $0x190] sm:$0xff]  }
 0x1be   :  { %3524 = vmatpush1.bf16.msra.mxu0 %v6717_v8  ;;  %v6789_v8 = vld [vmem:[%s9212_s6 + $0x198] sm:$0xff]  }
 0x1bf   :  { %3525 = vmatprep.subr.bf16.mxu0 %v6722_v36  ;;  %v6791_v36 = vld [vmem:[%s9212_s6 + $0x1e0] sm:$0xff]  }
 0x1c2   :  { %3526 = vmatpush1.bf16.msra.mxu0 %v6720_v38  ;;  %v6793_v38 = vld [vmem:[%s9212_s6 + $0x1a0] sm:$0xff]  }
 0x1c3   :  { %3536 = vmatprep.subr.bf16.mxu0 %v6725_v28  ;;  %v8648_v28 = vld [vmem:[%s9211_s5] sm:$0x3f] }
 0x1c5   :  { %3528 = vmatmul.mubr.bf16.vlgmr.msra.gmra.mrb[20].mxu0 %v8017_v9  ;;  %v6734_v9 = vld [vmem:[%s9210_s4 + $0x6a4] ss:$24 sps:$4 sm:$0xff]  }
 0x1c6   :  { %3537 = vmatpush1.bf16.msra.mxu0 %v6723_v29  ;;  %3568 = vmatprep.mubr.bf16.mxu0 %v8028_v11  ;;  %v6732_v11 = vld [vmem:[%s9210_s4 + $0x6a0] ss:$24 sps:$4 sm:$0xff]   ;;  %v8651_v29 = vsub.s32 0, %v7375_v54 }
 0x1c7   :  { %3538 = vmatprep.subr.bf16.mxu0 %v6728_v34  ;;  %v6795_v34 = vld [vmem:[%s9212_s6 + $0x1e8] sm:$0xff]  }
 0x1ca   :  { %3539 = vmatpush1.bf16.msra.mxu0 %v6726_v49  ;;  %v8657_v49 = vsub.s32 1, %v7375_v54 }
 0x1cb   :  { %3540 = vmatprep.subr.bf16.mxu0 %v6731_v41  ;;  %v1741_v41 = vrot.slane %v8648_v28, %v8651_v29 }
 0x1ce   :  { %3541 = vmatpush1.bf16.msra.mxu0 %v6729_v3  ;;  %v1745_v3 = vrot.slane %v8648_v28, %v8657_v49 }
 0x1cf   :  { %3542 = vmatprep.subr.bf16.mxu0 %v6734_v9  ;;  %v6797_v9 = vld [vmem:[%s9212_s6 + $0x1a8] sm:$0xff]  }
 0x1d2   :  { %3543 = vmatpush1.bf16.msra.mxu0 %v6732_v11  ;;  %v6799_v11 = vld [vmem:[%s9212_s6 + $0x1f0] sm:$0xff]  }
 0x1d3   :  { %3544 = vmatprep.subr.bf16.mxu0 %v6737_v58 }
 0x1d6   :  { %3545 = vmatpush1.bf16.msra.mxu0 %v6735_v59  ;;  %v8670_v59 = vsub.s32 3, %v7375_v54 }
 0x1d7   :  { %3546 = vmatprep.subr.bf16.mxu0 %v6740_v42 }
 0x1da   :  { %3547 = vmatpush1.bf16.msra.mxu0 %v6738_v46 }
 0x1db   :  { %3548 = vmatprep.subr.bf16.mxu0 %v6743_v53 }
 0x1de   :  { %3549 = vmatpush1.bf16.msra.mxu0 %v6741_v57 }
 0x1df   :  { %3550 = vmatprep.subr.bf16.mxu0 %v6746_v10  ;;  %v6801_v10 = vld [vmem:[%s9212_s6 + $0x1b0] sm:$0xff]  }
 0x1e2   :  { %3551 = vmatpush1.bf16.msra.mxu0 %v6744_v62  ;;  %v384_v62 = vrot.slane %v8602_v25, %v383_v14  ;;  %v6804_v14 = vld [vmem:[%s9213_s7 + $0xc8] sm:$0xff]  }
 0x1e3   :  { %3552 = vmatprep.subr.bf16.mxu0 %v6749_v45 }
 0x1e6   :  { %3553 = vmatpush1.bf16.msra.mxu0 %v6747_v48  ;;  %v6803_v48 = vld [vmem:[%s9212_s6 + $0x1f8] sm:$0xff]  }
 0x1e7   :  { %3554 = vmatprep.subr.bf16.mxu0 %v6752_v61  ;;  %v1753_v61 = vrot.slane %v8648_v28, %v8670_v59 }
 0x1ea   :  { %3555 = vmatpush1.bf16.msra.mxu0 %v6750_v0  ;;  %v404_v0 = vrot.slane %v8324_v15, %v8670_v59 }
 0x1eb   :  { %3556 = vmatprep.subr.bf16.mxu0 %v6755_v33 }
 0x1ee   :  { %3557 = vmatpush1.bf16.msra.mxu0 %v6753_v13  ;;  %v6802_v13 = vld [vmem:[%s9213_s7 + $0x80] sm:$0xff]  }
 0x1ef   :  { %3558 = vmatprep.subr.bf16.mxu0 %v6758_v7 }
 0x1f2   :  { %3559 = vmatpush1.bf16.msra.mxu0 %v6756_v17 }
 0x1f3   :  { %3560 = vmatprep.subr.bf16.mxu0 %v6761_v21  ;;  %v6805_v21 = vld [vmem:[%s9212_s6 + $0x1b8] sm:$0xff]  }
 0x1f6   :  { %3561 = vmatpush1.bf16.msra.mxu0 %v6759_v47 }
 0x1f7   :  { %3562 = vmatprep.subr.bf16.mxu0 %v6764_v63  ;;  %v1235_v63 = vadd.f32 %v8186_v12, %v384_v62  ;;  %v6808_v12 = vld [vmem:[%s9213_s7 + $0xd0] sm:$0xff]   ;;  %v6828_v62 = vld [vmem:[%s9213_s7 + $0xf8] sm:$0xff]  }
 0x1fa   :  { %3563 = vmatpush1.bf16.msra.mxu0 %v6762_v22  ;;  %v6807_v22 = vld [vmem:[%s9212_s6 + $0x2c0] sm:$0xff]  }
 0x1fb   :  { %3564 = vmatprep.subr.bf16.mxu0 %v6767_v23 }
 0x1fe   :  { %3565 = vmatpush1.bf16.msra.mxu0 %v6765_v24 }
 0x1ff   :  { %3566 = vmatprep.subr.bf16.mxu0 %v6772_v26  ;;  %v1319_v26 = vadd.f32 %v8278_v55, %v404_v0  ;;  %v6811_v55 = vld [vmem:[%s9212_s6 + $0x2c8] sm:$0xff]   ;;  %v6830_v0 = vld [vmem:[%s9213_s7 + $0xb8] sm:$0xff]  }
 0x202   :  { %3567 = vmatpush1.bf16.msra.mxu0 %v6770_v32 }
 0x203   :  { %6195 = vmatprep.subr.bf16.mxu0 %v6775_v43 }
 0x205   :  { %3569 = vmatmul.mubr.bf16.vlgmr.msra.gmra.mrb[20].mxu0 %v8235_v30  ;;  %v6787_v30 = vld [vmem:[%s9212_s6 + $0x1d8] sm:$0xff]  }
 0x206   :  { %6196 = vmatpush3.bf16.msra.mxu0 %v6777_v44  ;;  %5279 = vmatprep.mubr.bf16.mxu0 %v3584_v1  ;;  %v3583_v44 = vpack.c.bf16 %v1235_v63, %v1235_v63  ;;  %v6810_v1 = vld [vmem:[%s9213_s7 + $0x90] sm:$0xff]  }
 0x207   :  { %6197 = vmatprep.subr.bf16.mxu0 %v6779_v19  ;;  %v3588_v19 = vpack.c.bf16 %v1319_v26, %v1319_v26 }
 0x20a   :  { %6198 = vmatpush3.bf16.msra.mxu0 %v6781_v4  ;;  %v6812_v4 = vld [vmem:[%s9213_s7 + $0xd8] sm:$0xff]  }
 0x20b   :  { %6199 = vmatprep.subr.bf16.mxu0 %v6783_v16  ;;  %v6813_v16 = vld [vmem:[%s9212_s6 + $0x288] sm:$0xff]  }
 0x20e   :  { %6200 = vmatpush3.bf16.msra.mxu0 %v6785_v37  ;;  %v6815_v37 = vld [vmem:[%s9212_s6 + $0x2d0] sm:$0xff]  }
 0x20f   :  { %6201 = vmatprep.subr.bf16.mxu0 %v6787_v30  ;;  %v6814_v30 = vld [vmem:[%s9213_s7 + $0x98] sm:$0xff]  }
 0x212   :  { %6202 = vmatpush3.bf16.msra.mxu0 %v6789_v8  ;;  %v6816_v8 = vld [vmem:[%s9213_s7 + $0xe0] sm:$0xff]  }
 0x213   :  { %6203 = vmatprep.subr.bf16.mxu0 %v6791_v36  ;;  %v6817_v36 = vld [vmem:[%s9212_s6 + $0x290] sm:$0xff]  }
 0x216   :  { %6204 = vmatpush3.bf16.msra.mxu0 %v6793_v38  ;;  %v6819_v38 = vld [vmem:[%s9212_s6 + $0x2d8] sm:$0xff]  }
 0x217   :  { %6205 = vmatprep.subr.bf16.mxu0 %v6795_v34  ;;  %v6818_v34 = vld [vmem:[%s9213_s7 + $0xa0] sm:$0xff]  }
 0x218   :  { %v3324_v58 = vpop.f32.mrb[16].mxu0 }
 0x219   :  { %v6305_v42 = vadd.f32 %v3324_v58, %v1741_v41  ;;  %v3326_v46 = vpop.f32.mrb[17].mxu0  ;;  %v6820_v41 = vld [vmem:[%s9213_s7 + $0xe8] sm:$0xff]   ;;  %v8753_v58 = vsub.s32 2, %v7375_v54 }
 0x21a   :  { %v6306_v53 = vadd.f32 %v3326_v46, %v1745_v3  ;;  %v3328_v57 = vpop.f32.mrb[18].mxu0  ;;  %6206 = vmatpush3.bf16.msra.mxu0 %v6797_v9  ;;  %v8691_v17 = vpop.f32.mrb[16].mxu1  ;;  %v6821_v3 = vld [vmem:[%s9212_s6 + $0x298] sm:$0xff]   ;;  %v6823_v9 = vld [vmem:[%s9212_s6 + $0x2e0] sm:$0xff]  }
 0x21b   :  { %v3329_v45 = vpop.f32.mrb[19].mxu0  ;;  %6207 = vmatprep.subr.bf16.mxu0 %v6799_v11  ;;  %v3849_v7 = vpack.c.bf16 %v6305_v42, %v6305_v42  ;;  %v3449_v47 = vpop.f32.mrb[17].mxu1  ;;  %v6822_v11 = vld [vmem:[%s9213_s7 + $0xa8] sm:$0xff]   ;;  %v6824_v42 = vld [vmem:[%s9213_s7 + $0xf0] sm:$0xff]   ;;  %v6825_v46 = vld [vmem:[%s9212_s6 + $0x2a0] sm:$0xff]  }
 0x21c   :  { %v3850_v33 = vpack.c.bf16 %v6306_v53, %v6306_v53  ;;  %v6308_v23 = vadd.f32 %v3449_v47, %v1753_v61  ;;  %v3451_v24 = vpop.f32.mrb[18].mxu1  ;;  %v1749_v53 = vrot.slane %v8648_v28, %v8753_v58  ;;  %v6827_v57 = vld [vmem:[%s9212_s6 + $0x2e8] sm:$0xff]   ;;  %v6831_v61 = vld [vmem:[%s9212_s6 + $0x2f0] sm:$0xff]  }
 0x21d   :  { %v3452_v32 = vpop.f32.mrb[19].mxu1  ;;  %v6829_v45 = vld [vmem:[%s9212_s6 + $0x2a8] sm:$0xff]   ;;  %v6855_v24 = vld [vmem:[%s9213_s7 + $0x150] sm:$0xff]  }
 0x21e   :  { %4271 = vmatprep.mubr.bf16.mxu1 %v3850_v33  ;;  %6208 = vmatpush3.bf16.msra.mxu0 %v6801_v10  ;;  %v3852_v43 = vpack.c.bf16 %v6308_v23, %v6308_v23  ;;  %v6826_v10 = vld [vmem:[%s9213_s7 + $0xb0] sm:$0xff]   ;;  %v6851_v33 = vld [vmem:[%s9213_s7 + $0x140] sm:$0xff]   ;;  %v6853_v47 = vld [vmem:[%s9213_s7 + $0x148] sm:$0xff]   ;;  %v3592_v32 = vpack.c.bf16 %v8347_v50, %v8347_v50 }
 0x21f   :  { %4272 = vmatmul.mubr.bf16.vlgmr.msra.gmra.mrb[20].mxu1 %v3849_v7  ;;  %6209 = vmatprep.subr.bf16.mxu0 %v6803_v48  ;;  %v6307_v48 = vadd.f32 %v8691_v17, %v1749_v53  ;;  %v400_v7 = vrot.slane %v8324_v15, %v8753_v58  ;;  %v6833_v17 = vld [vmem:[%s9212_s6 + $0x2f8] sm:$0xff]   ;;  %v6854_v23 = vld [vmem:[%s9213_s7 + $0x108] sm:$0xff]   ;;  %v6839_v50 = vld [vmem:[%s9212_s6 + $0x3d0] sm:$0xff]  }
 0x220   :  { %6086 = vmatpush3.bf16.msra.mxu1 %v6802_v13  ;;  %4311 = vmatprep.mubr.bf16.mxu1 %v3852_v43  ;;  %v6832_v13 = vld [vmem:[%s9212_s6 + $0x2b0] sm:$0xff]   ;;  %v6834_v15 = vld [vmem:[%s9212_s6 + $0x2b8] sm:$0xff]  }
 0x221   :  { %6087 = vmatprep.subr.bf16.mxu1 %v6804_v14  ;;  %v3851_v14 = vpack.c.bf16 %v6307_v48, %v6307_v48  ;;  %v1317_v63 = vadd.f32 %v8270_v39, %v400_v7  ;;  %v6836_v39 = vld [vmem:[%s9212_s6 + $0x380] sm:$0xff]   ;;  %v6857_v43 = vld [vmem:[%s9213_s7 + $0x158] sm:$0xff]   ;;  %v8901_v48 = vsub.s32 5, %v7375_v54 }
 0x222   :  { %6210 = vmatpush3.bf16.msra.mxu0 %v6805_v21  ;;  %v6852_v21 = vld [vmem:[%s9213_s7 + $0x100] sm:$0xff]   ;;  %v6849_v53 = vld [vmem:[%s9212_s6 + $0x3f8] sm:$0xff]  }
 0x223   :  { %6239 = vmatprep.subr.bf16.mxu0 %v6807_v22  ;;  %v6835_v22 = vld [vmem:[%s9212_s6 + $0x3c0] sm:$0xff]   ;;  %v3587_v26 = vpack.c.bf16 %v1317_v63, %v1317_v63 }
 0x224   :  { %6088 = vmatpush3.bf16.msra.mxu1 %v6806_v27  ;;  %v6837_v27 = vld [vmem:[%s9212_s6 + $0x3c8] sm:$0xff]  }
 0x225   :  { %5280 = vmatmul.mubr.bf16.vlgmr.msra.gmra.mrb[24].mxu0 %v3583_v44  ;;  %6089 = vmatprep.subr.bf16.mxu1 %v6808_v12  ;;  %v6856_v12 = vld [vmem:[%s9213_s7 + $0x110] sm:$0xff]   ;;  %v6858_v44 = vld [vmem:[%s9213_s7 + $0x118] sm:$0xff]  }
 0x226   :  { %6240 = vmatpush3.bf16.msra.mxu0 %v6809_v5  ;;  %5359 = vmatprep.mubr.bf16.mxu0 %v3588_v19  ;;  %v6838_v5 = vld [vmem:[%s9212_s6 + $0x388] sm:$0xff]   ;;  %v6840_v19 = vld [vmem:[%s9212_s6 + $0x390] sm:$0xff]  }
 0x227   :  { %6241 = vmatprep.subr.bf16.mxu0 %v6811_v55  ;;  %v6859_v55 = vld [vmem:[%s9213_s7 + $0x160] sm:$0xff]  }
 0x228   :  { %6090 = vmatpush3.bf16.msra.mxu1 %v6810_v1  ;;  %v6841_v1 = vld [vmem:[%s9212_s6 + $0x3d8] sm:$0xff]  }
 0x229   :  { %6091 = vmatprep.subr.bf16.mxu1 %v6812_v4  ;;  %v6860_v4 = vld [vmem:[%s9213_s7 + $0x120] sm:$0xff]  }
 0x22a   :  { %6242 = vmatpush3.bf16.msra.mxu0 %v6813_v16  ;;  %v6861_v16 = vld [vmem:[%s9213_s7 + $0x168] sm:$0xff]  }
 0x22b   :  { %6243 = vmatprep.subr.bf16.mxu0 %v6815_v37  ;;  %v6842_v37 = vld [vmem:[%s9212_s6 + $0x398] sm:$0xff]  }
 0x22c   :  { %6092 = vmatpush3.bf16.msra.mxu1 %v6814_v30  ;;  %v6843_v30 = vld [vmem:[%s9212_s6 + $0x3e0] sm:$0xff]  }
 0x22d   :  { %6093 = vmatprep.subr.bf16.mxu1 %v6816_v8  ;;  %v6862_v8 = vld [vmem:[%s9213_s7 + $0x128] sm:$0xff]  }
 0x22e   :  { %6244 = vmatpush3.bf16.msra.mxu0 %v6817_v36  ;;  %v6863_v36 = vld [vmem:[%s9213_s7 + $0x170] sm:$0xff]  }
 0x22f   :  { %6245 = vmatprep.subr.bf16.mxu0 %v6819_v38  ;;  %v6844_v38 = vld [vmem:[%s9212_s6 + $0x3a0] sm:$0xff]  }
 0x230   :  { %6094 = vmatpush3.bf16.msra.mxu1 %v6818_v34  ;;  %v6845_v34 = vld [vmem:[%s9212_s6 + $0x3e8] sm:$0xff]  }
 0x231   :  { %6095 = vmatprep.subr.bf16.mxu1 %v6820_v41  ;;  %v6864_v41 = vld [vmem:[%s9213_s7 + $0x130] sm:$0xff]  }
 0x232   :  { %6246 = vmatpush3.bf16.msra.mxu0 %v6821_v3  ;;  %v6846_v3 = vld [vmem:[%s9212_s6 + $0x3a8] sm:$0xff]  }
 0x233   :  { %6247 = vmatprep.subr.bf16.mxu0 %v6823_v9  ;;  %v6847_v9 = vld [vmem:[%s9212_s6 + $0x3f0] sm:$0xff]  }
 0x234   :  { %6096 = vmatpush3.bf16.msra.mxu1 %v6822_v11  ;;  %v6865_v11 = vld [vmem:[%s9213_s7 + $0x178] sm:$0xff]  }
 0x235   :  { %6097 = vmatprep.subr.bf16.mxu1 %v6824_v42  ;;  %v6848_v42 = vld [vmem:[%s9212_s6 + $0x3b0] sm:$0xff]  }
 0x236   :  { %6248 = vmatpush3.bf16.msra.mxu0 %v6825_v46  ;;  %v6866_v46 = vld [vmem:[%s9213_s7 + $0x138] sm:$0xff]  }
 0x237   :  { %6249 = vmatprep.subr.bf16.mxu0 %v6827_v57  ;;  %v6867_v57 = vld [vmem:[%s9212_s6 + $0x40] sm:$0xff]  }
 0x238   :  { %6098 = vmatpush3.bf16.msra.mxu1 %v6826_v10  ;;  %v6850_v10 = vld [vmem:[%s9212_s6 + $0x3b8] sm:$0xff]  }
 0x239   :  { %6099 = vmatprep.subr.bf16.mxu1 %v6828_v62  ;;  %v3591_v62 = vpack.c.bf16 %v8336_v51, %v8336_v51 }
 0x23a   :  { %6250 = vmatpush3.bf16.msra.mxu0 %v6829_v45  ;;  %v8898_v45 = vsub.s32 4, %v7375_v54  ;;  %v6868_v54 = vld [vmem:[%s9212_s6] sm:$0xff]  }
 0x23b   :  { %6251 = vmatprep.subr.bf16.mxu0 %v6831_v61 }
 0x23c   :  { %6100 = vmatpush3.bf16.msra.mxu1 %v6830_v0  ;;  %v1757_v61 = vrot.slane %v8648_v28, %v8898_v45  ;;  %v364_v0 = vrot.slane %v8602_v25, %v8657_v49 }
 0x23d   :  { %6107 = vmatprep.subr.bf16.mxu1 %v6851_v33  ;;  %v1761_v33 = vrot.slane %v8648_v28, %v8901_v48  ;;  %v6871_v28 = vld [vmem:[%s9212_s6 + $0x50] sm:$0xff]  }
 0x23e   :  { %6252 = vmatpush3.bf16.msra.mxu0 %v6832_v13  ;;  %v1114_v51 = vadd.f32 %v7984_v40, %v364_v0  ;;  %v6870_v40 = vld [vmem:[%s9212_s6 + $0x8] sm:$0xff]   ;;  %v6891_v0 = vld [vmem:[%s9212_s6 + $0xe0] sm:$0xff]  }
 0x23f   :  { %4312 = vmatmul.mubr.bf16.vlgmr.msra.gmra.mrb[24].mxu1 %v3851_v14  ;;  %6253 = vmatprep.subr.bf16.mxu0 %v6833_v17 }
 0x240   :  { %6108 = vmatpush3.bf16.msra.mxu1 %v6852_v21 }
 0x241   :  { %6109 = vmatprep.subr.bf16.mxu1 %v6853_v47 }
 0x242   :  { %6254 = vmatpush3.bf16.msra.mxu0 %v6834_v15 }
 0x243   :  { %6283 = vmatprep.subr.bf16.mxu0 %v6835_v22  ;;  %v6869_v22 = vld [vmem:[%s9212_s6 + $0x48] sm:$0xff]  }
 0x244   :  { %6110 = vmatpush3.bf16.msra.mxu1 %v6854_v23  ;;  %v3578_v23 = vpack.c.bf16 %v1114_v51, %v1114_v51 }
 0x245   :  { %5360 = vmatmul.mubr.bf16.vlgmr.msra.gmra.mrb[28].mxu0 %v3587_v26  ;;  %6111 = vmatprep.subr.bf16.mxu1 %v6855_v24  ;;  %v6872_v24 = vld [vmem:[%s9212_s6 + $0x10] sm:$0xff]   ;;  %v6874_v26 = vld [vmem:[%s9212_s6 + $0x18] sm:$0xff]  }
 0x246   :  { %6284 = vmatpush3.bf16.msra.mxu0 %v6836_v39  ;;  %5439 = vmatprep.mubr.bf16.mxu0 %v3592_v32  ;;  %v6873_v39 = vld [vmem:[%s9212_s6 + $0x58] sm:$0xff]   ;;  %v6876_v32 = vld [vmem:[%s9212_s6 + $0x20] sm:$0xff]  }
 0x247   :  { %6285 = vmatprep.subr.bf16.mxu0 %v6837_v27  ;;  %v6875_v27 = vld [vmem:[%s9212_s6 + $0x60] sm:$0xff]  }
 0x248   :  { %6112 = vmatpush3.bf16.msra.mxu1 %v6856_v12  ;;  %v6877_v12 = vld [vmem:[%s9212_s6 + $0x68] sm:$0xff]  }
 0x249   :  { %6113 = vmatprep.subr.bf16.mxu1 %v6857_v43  ;;  %v6878_v43 = vld [vmem:[%s9212_s6 + $0x28] sm:$0xff]  }
 0x24a   :  { %6286 = vmatpush3.bf16.msra.mxu0 %v6838_v5  ;;  %v6879_v5 = vld [vmem:[%s9212_s6 + $0x70] sm:$0xff]  }
 0x24b   :  { %6287 = vmatprep.subr.bf16.mxu0 %v6839_v50 }
 0x24c   :  { %6114 = vmatpush3.bf16.msra.mxu1 %v6858_v44 }
 0x24d   :  { %6115 = vmatprep.subr.bf16.mxu1 %v6859_v55 }
 0x24e   :  { %6288 = vmatpush3.bf16.msra.mxu0 %v6840_v19 }
 0x24f   :  { %6289 = vmatprep.subr.bf16.mxu0 %v6841_v1  ;;  %v6880_v1 = vld [vmem:[%s9212_s6 + $0x30] sm:$0xff]  }
 0x250   :  { %6116 = vmatpush3.bf16.msra.mxu1 %v6860_v4  ;;  %v360_v4 = vrot.slane %v8602_v25, %v8651_v29 }
 0x251   :  { %6117 = vmatprep.subr.bf16.mxu1 %v6861_v16 }
 0x252   :  { %6290 = vmatpush3.bf16.msra.mxu0 %v6842_v37  ;;  %v6881_v37 = vld [vmem:[%s9212_s6 + $0x78] sm:$0xff]  }
 0x253   :  { %6291 = vmatprep.subr.bf16.mxu0 %v6843_v30  ;;  %v372_v30 = vrot.slane %v8602_v25, %v8670_v59 }
 0x254   :  { %6118 = vmatpush3.bf16.msra.mxu1 %v6862_v8 }
 0x255   :  { %6119 = vmatprep.subr.bf16.mxu1 %v6863_v36  ;;  %v6882_v36 = vld [vmem:[%s9212_s6 + $0x38] sm:$0xff]  }
 0x256   :  { %6292 = vmatpush3.bf16.msra.mxu0 %v6844_v38  ;;  %v1112_v38 = vadd.f32 %v7979_v35, %v360_v4  ;;  %v6885_v35 = vld [vmem:[%s9212_s6 + $0xc8] sm:$0xff]   ;;  %v6906_v4 = vld [vmem:[%s9212_s6 + $0x118] sm:$0xff]  }
 0x257   :  { %6293 = vmatprep.subr.bf16.mxu0 %v6845_v34 }
 0x258   :  { %6120 = vmatpush3.bf16.msra.mxu1 %v6864_v41  ;;  %v6883_v41 = vld [vmem:[%s9212_s6 + $0xc0] sm:$0xff]  }
 0x259   :  { %6121 = vmatprep.subr.bf16.mxu1 %v6865_v11 }
 0x25a   :  { %6294 = vmatpush3.bf16.msra.mxu0 %v6846_v3  ;;  %v1155_v3 = vadd.f32 %v8096_v6, %v372_v30  ;;  %v6886_v6 = vld [vmem:[%s9212_s6 + $0x88] sm:$0xff]  }
 0x25b   :  { %6295 = vmatprep.subr.bf16.mxu0 %v6847_v9  ;;  %v6909_v30 = vld [vmem:[%s9212_s6 + $0x168] sm:$0xff]  }
 0x25c   :  { %6122 = vmatpush3.bf16.msra.mxu1 %v6866_v46  ;;  %v3577_v46 = vpack.c.bf16 %v1112_v38, %v1112_v38  ;;  %v6912_v38 = vld [vmem:[%s9212_s6 + $0x130] sm:$0xff]  }
 0x25d   :  { %6129 = vmatprep.subr.bf16.mxu1 %v6867_v57  ;;  %v6887_v57 = vld [vmem:[%s9212_s6 + $0xd0] sm:$0xff]  }
 0x25e   :  { %6296 = vmatpush3.bf16.msra.mxu0 %v6848_v42  ;;  %v6884_v42 = vld [vmem:[%s9212_s6 + $0x80] sm:$0xff]  }
 0x25f   :  { %6297 = vmatprep.subr.bf16.mxu0 %v6849_v53  ;;  %v3580_v53 = vpack.c.bf16 %v1155_v3, %v1155_v3  ;;  %v9071_v3 = vld [vmem:[%s9209_s3 + $0x8] sm:$0xff] }
 0x262   :  { %6298 = vmatpush3.bf16.msra.mxu0 %v6850_v10  ;;  %v6888_v10 = vld [vmem:[%s9212_s6 + $0x90] sm:$0xff]  }
 0x265   :  { %5440 = vmatmul.mubr.bf16.vlgmr.msra.gmra.mrb[32].mxu0 %v3591_v62  ;;  %v6889_v62 = vld [vmem:[%s9212_s6 + $0xd8] sm:$0xff]  }
 0x2d8   :  { %v3570_v13 = vpop.f32.mrb[20].mxu0 }
 0x2d9   :  { %v6309_v7 = vadd.f32 %v3570_v13, %v1757_v61  ;;  %v3572_v14 = vpop.f32.mrb[21].mxu0  ;;  %v6890_v61 = vld [vmem:[%s9212_s6 + $0x98] sm:$0xff]   ;;  %v6893_v13 = vld [vmem:[%s9212_s6 + $0xe8] sm:$0xff]  }
 0x2da   :  { %v6310_v17 = vadd.f32 %v3572_v14, %v1761_v33  ;;  %v3574_v21 = vpop.f32.mrb[22].mxu0  ;;  %v6892_v33 = vld [vmem:[%s9212_s6 + $0xa0] sm:$0xff]   ;;  %v6895_v14 = vld [vmem:[%s9212_s6 + $0xf0] sm:$0xff]  }
 0x2db   :  { %v3575_v47 = vpop.f32.mrb[23].mxu0  ;;  %v3853_v63 = vpack.c.bf16 %v6309_v7, %v6309_v7  ;;  %v6894_v7 = vld [vmem:[%s9212_s6 + $0xa8] sm:$0xff]  }
 0x2dc   :  { %v3854_v15 = vpack.c.bf16 %v6310_v17, %v6310_v17 }
 0x2de   :  { %4351 = vmatprep.mubr.bf16.mxu1 %v3854_v15  ;;  %v6896_v15 = vld [vmem:[%s9212_s6 + $0xb0] sm:$0xff]  }
 0x2df   :  { %4352 = vmatmul.mubr.bf16.vlgmr.msra.gmra.mrb[28].mxu1 %v3853_v63 }
 0x2e0   :  { %6130 = vmatpush3.bf16.msra.mxu1 %v6868_v54  ;;  %5159 = vmatprep.mubr.bf16.mxu1 %v3578_v23  ;;  %v368_v54 = vrot.slane %v8602_v25, %v8753_v58  ;;  %v380_v23 = vrot.slane %v8602_v25, %v8901_v48 }
 0x2e1   :  { %6131 = vmatprep.subr.bf16.mxu1 %v6869_v22  ;;  %v6897_v22 = vld [vmem:[%s9212_s6 + $0xf8] sm:$0xff]  }
 0x2e4   :  { %6132 = vmatpush3.bf16.msra.mxu1 %v6870_v40 }
 0x2e5   :  { %6133 = vmatprep.subr.bf16.mxu1 %v6871_v28 }
 0x2e8   :  { %6134 = vmatpush3.bf16.msra.mxu1 %v6872_v24  ;;  %v6898_v24 = vld [vmem:[%s9212_s6 + $0xb8] sm:$0xff]  }
 0x2e9   :  { %6135 = vmatprep.subr.bf16.mxu1 %v6873_v39  ;;  %v1153_v39 = vadd.f32 %v8082_v2, %v368_v54  ;;  %v6901_v2 = vld [vmem:[%s9212_s6 + $0x148] sm:$0xff]   ;;  %v392_v54 = vrot.slane %v9071_v3, %v8651_v29  ;;  %v6931_v29 = vld [vmem:[%s9212_s6 + $0x340] sm:$0xff]  }
 0x2ec   :  { %6136 = vmatpush3.bf16.msra.mxu1 %v6874_v26  ;;  %v6899_v26 = vld [vmem:[%s9212_s6 + $0x140] sm:$0xff]  }
 0x2ed   :  { %6137 = vmatprep.subr.bf16.mxu1 %v6875_v27  ;;  %v1196_v27 = vadd.f32 %v8103_v31, %v380_v23  ;;  %v6902_v31 = vld [vmem:[%s9212_s6 + $0x108] sm:$0xff]   ;;  %v6930_v23 = vld [vmem:[%s9212_s6 + $0x238] sm:$0xff]  }
 0x2f0   :  { %6138 = vmatpush3.bf16.msra.mxu1 %v6876_v32 }
 0x2f1   :  { %6139 = vmatprep.subr.bf16.mxu1 %v6877_v12 }
 0x2f2   :  { %v6079_v50 = vpop.f32.mrb[20].mxu1 }
 0x2f3   :  { %v6080_v44 = vpop.f32.mrb[21].mxu1 }
 0x2f4   :  { %v6081_v55 = vadd.f32 %v6080_v44, %v6079_v50  ;;  %6140 = vmatpush3.bf16.msra.mxu1 %v6878_v43  ;;  %v6082_v19 = vpop.f32.mrb[22].mxu1  ;;  %v3579_v50 = vpack.c.bf16 %v1153_v39, %v1153_v39  ;;  %v3582_v44 = vpack.c.bf16 %v1196_v27, %v1196_v27  ;;  %v6932_v39 = vld [vmem:[%s9212_s6 + $0x300] sm:$0xff]   ;;  %v6936_v27 = vld [vmem:[%s9212_s6 + $0x310] sm:$0xff]  }
 0x2f5   :  { %v6083_v16 = vpop.f32.mrb[23].mxu1  ;;  %6141 = vmatprep.subr.bf16.mxu1 %v6879_v5  ;;  %v6900_v5 = vld [vmem:[%s9212_s6 + $0x100] sm:$0xff]   ;;  %v6904_v19 = vld [vmem:[%s9212_s6 + $0x110] sm:$0xff]  }
 0x2f6   :  { %v6907_v16 = vld [vmem:[%s9212_s6 + $0x160] sm:$0xff]  }
 0x2f8   :  { %6142 = vmatpush3.bf16.msra.mxu1 %v6880_v1  ;;  %v6211_v8 = vpop.f32.mrb[24].mxu0  ;;  %v6905_v1 = vld [vmem:[%s9212_s6 + $0x158] sm:$0xff]  }
 0x2f9   :  { %v6212_v34 = vpop.f32.mrb[25].mxu0  ;;  %6143 = vmatprep.subr.bf16.mxu1 %v6881_v37  ;;  %v6908_v37 = vld [vmem:[%s9212_s6 + $0x120] sm:$0xff]  }
 0x2fa   :  { %v8964_v9 = vadd.f32 %v6212_v34, %v6211_v8  ;;  %v6214_v11 = vpop.f32.mrb[26].mxu0  ;;  %v6910_v8 = vld [vmem:[%s9212_s6 + $0x128] sm:$0xff]   ;;  %v376_v34 = vrot.slane %v8602_v25, %v8898_v45 }
 0x2fb   :  { %v6215_v59 = vpop.f32.mrb[27].mxu0  ;;  %v396_v11 = vrot.slane %v9071_v3, %v8657_v49 }
 0x2fc   :  { %6144 = vmatpush3.bf16.msra.mxu1 %v6882_v36  ;;  %v6911_v36 = vld [vmem:[%s9212_s6 + $0x170] sm:$0xff]   ;;  %v1194_v25 = vadd.f32 %v8098_v56, %v376_v34  ;;  %v6917_v56 = vld [vmem:[%s9212_s6 + $0x248] sm:$0xff]  }
 0x2fd   :  { %6151 = vmatprep.subr.bf16.mxu1 %v6883_v41  ;;  %v6913_v41 = vld [vmem:[%s9212_s6 + $0x178] sm:$0xff]  }
 0x2ff   :  { %5160 = vmatmul.mubr.bf16.vlgmr.msra.gmra.mrb[32].mxu1 %v3577_v46 }
 0x300   :  { %6152 = vmatpush3.bf16.msra.mxu1 %v6884_v42  ;;  %5199 = vmatprep.mubr.bf16.mxu1 %v3580_v53  ;;  %v6914_v42 = vld [vmem:[%s9212_s6 + $0x138] sm:$0xff]   ;;  %v1278_v53 = vadd.f32 %v8207_v18, %v396_v11  ;;  %v6918_v18 = vld [vmem:[%s9212_s6 + $0x208] sm:$0xff]  }
 0x301   :  { %6153 = vmatprep.subr.bf16.mxu1 %v6885_v35  ;;  %v6915_v35 = vld [vmem:[%s9212_s6 + $0x240] sm:$0xff]  }
 0x304   :  { %6154 = vmatpush3.bf16.msra.mxu1 %v6886_v6 }
 0x305   :  { %6155 = vmatprep.subr.bf16.mxu1 %v6887_v57 }
 0x308   :  { %6156 = vmatpush3.bf16.msra.mxu1 %v6888_v10  ;;  %v6916_v10 = vld [vmem:[%s9212_s6 + $0x200] sm:$0xff]  }
 0x309   :  { %6157 = vmatprep.subr.bf16.mxu1 %v6889_v62  ;;  %v3581_v62 = vpack.c.bf16 %v1194_v25, %v1194_v25 }
 0x30c   :  { %6158 = vmatpush3.bf16.msra.mxu1 %v6890_v61  ;;  %v3586_v61 = vpack.c.bf16 %v1278_v53, %v1278_v53 }
 0x30d   :  { %6159 = vmatprep.subr.bf16.mxu1 %v6891_v0  ;;  %v6919_v0 = vld [vmem:[%s9212_s6 + $0x250] sm:$0xff]  }
 0x310   :  { %6160 = vmatpush3.bf16.msra.mxu1 %v6892_v33  ;;  %v6920_v33 = vld [vmem:[%s9212_s6 + $0x210] sm:$0xff]  }
 0x311   :  { %6161 = vmatprep.subr.bf16.mxu1 %v6893_v13  ;;  %v6921_v13 = vld [vmem:[%s9212_s6 + $0x258] sm:$0xff]  }
 0x312   :  { %v6101_v51 = vpop.f32.mrb[24].mxu1 }
 0x313   :  { %v6102_v17 = vpop.f32.mrb[25].mxu1 }
 0x314   :  { %v6103_v21 = vadd.f32 %v6102_v17, %v6101_v51  ;;  %v6104_v47 = vpop.f32.mrb[26].mxu1  ;;  %6162 = vmatpush3.bf16.msra.mxu1 %v6894_v7  ;;  %v6922_v7 = vld [vmem:[%s9212_s6 + $0x218] sm:$0xff]   ;;  %v6924_v51 = vld [vmem:[%s9212_s6 + $0x220] sm:$0xff]   ;;  %v6925_v17 = vld [vmem:[%s9212_s6 + $0x268] sm:$0xff]  }
 0x315   :  { %v6105_v63 = vpop.f32.mrb[27].mxu1  ;;  %6163 = vmatprep.subr.bf16.mxu1 %v6895_v14  ;;  %v6923_v14 = vld [vmem:[%s9212_s6 + $0x260] sm:$0xff]   ;;  %v6927_v47 = vld [vmem:[%s9212_s6 + $0x270] sm:$0xff]  }
 0x316   :  { %v9012_v40 = vadd.f32 %v6103_v21, %v6081_v55  ;;  %v6903_v55 = vld [vmem:[%s9212_s6 + $0x150] sm:$0xff]   ;;  %v6926_v21 = vld [vmem:[%s9212_s6 + $0x228] sm:$0xff]   ;;  %v6929_v63 = vld [vmem:[%s9212_s6 + $0x278] sm:$0xff]  }
 0x318   :  { %6164 = vmatpush3.bf16.msra.mxu1 %v6896_v15  ;;  %v6255_v28 = vpop.f32.mrb[28].mxu0  ;;  %v6928_v15 = vld [vmem:[%s9212_s6 + $0x230] sm:$0xff]  }
 0x319   :  { %v6256_v58 = vpop.f32.mrb[29].mxu0  ;;  %6165 = vmatprep.subr.bf16.mxu1 %v6897_v22  ;;  %v412_v22 = vrot.slane %v9071_v3, %v8901_v48 }
 0x31a   :  { %v9022_v32 = vadd.f32 %v6256_v58, %v6255_v28  ;;  %v6258_v12 = vpop.f32.mrb[30].mxu0  ;;  %v1276_v28 = vadd.f32 %v8202_v20, %v392_v54  ;;  %v6933_v58 = vld [vmem:[%s9212_s6 + $0x348] sm:$0xff]  }
 0x31b   :  { %v6259_v43 = vpop.f32.mrb[31].mxu0  ;;  %v6934_v20 = vld [vmem:[%s9212_s6 + $0x308] sm:$0xff]   ;;  %v6937_v12 = vld [vmem:[%s9212_s6 + $0x358] sm:$0xff]  }
 0x31c   :  { %6166 = vmatpush3.bf16.msra.mxu1 %v6898_v24  ;;  %v1360_v24 = vadd.f32 %v8282_v60, %v412_v22  ;;  %v3585_v48 = vpack.c.bf16 %v1276_v28, %v1276_v28  ;;  %v6935_v60 = vld [vmem:[%s9212_s6 + $0x350] sm:$0xff]   ;;  %v6938_v43 = vld [vmem:[%s9212_s6 + $0x318] sm:$0xff]   ;;  %v6062_v28 = vld [vmem:[%s9214_s8] ss:$0 sm:$0xff] }
 0x31d   :  { %6173 = vmatprep.subr.bf16.mxu1 %v6899_v26 }
 0x31e   :  { %v3590_v26 = vpack.c.bf16 %v1360_v24, %v1360_v24 }
 0x31f   :  { %5200 = vmatmul.mubr.bf16.vlgmr.msra.gmra.mrb[36].mxu1 %v3579_v50  ;;  %v6940_v50 = vld [vmem:[%s9212_s6 + $0x320] sm:$0xff]  }
 0x320   :  { %6174 = vmatpush3.bf16.msra.mxu1 %v6900_v5  ;;  %5239 = vmatprep.mubr.bf16.mxu1 %v3582_v44  ;;  %v6939_v5 = vld [vmem:[%s9212_s6 + $0x360] sm:$0xff]   ;;  %v6942_v44 = vld [vmem:[%s9212_s6 + $0x328] sm:$0xff]  }
 0x321   :  { %6175 = vmatprep.subr.bf16.mxu1 %v6901_v2  ;;  %v6941_v2 = vld [vmem:[%s9212_s6 + $0x368] sm:$0xff]  }
 0x324   :  { %6176 = vmatpush3.bf16.msra.mxu1 %v6902_v31  ;;  %v6943_v31 = vld [vmem:[%s9212_s6 + $0x370] sm:$0xff]  }
 0x325   :  { %6177 = vmatprep.subr.bf16.mxu1 %v6903_v55  ;;  %v6944_v55 = vld [vmem:[%s9212_s6 + $0x330] sm:$0xff]  }
 0x328   :  { %6178 = vmatpush3.bf16.msra.mxu1 %v6904_v19  ;;  %v408_v19 = vrot.slane %v9071_v3, %v8898_v45 }
 0x329   :  { %6179 = vmatprep.subr.bf16.mxu1 %v6905_v1  ;;  %v6945_v1 = vld [vmem:[%s9212_s6 + $0x378] sm:$0xff]  }
 0x32c   :  { %6180 = vmatpush3.bf16.msra.mxu1 %v6906_v4  ;;  %v6946_v4 = vld [vmem:[%s9212_s6 + $0x338] sm:$0xff]  }
 0x32d   :  { %6181 = vmatprep.subr.bf16.mxu1 %v6907_v16  ;;  %v1358_v16 = vadd.f32 %v8280_v52, %v408_v19 }
 0x330   :  { %6182 = vmatpush3.bf16.msra.mxu1 %v6908_v37  ;;  %v3589_v37 = vpack.c.bf16 %v1358_v16, %v1358_v16 }
 0x331   :  { %6183 = vmatprep.subr.bf16.mxu1 %v6909_v30 }
 0x334   :  { %6184 = vmatpush3.bf16.msra.mxu1 %v6910_v8 }
 0x335   :  { %6185 = vmatprep.subr.bf16.mxu1 %v6911_v36 }
 0x338   :  { %6186 = vmatpush3.bf16.msra.mxu1 %v6912_v38  ;;  %v6299_v59 = vpop.f32.mrb[32].mxu0 }
 0x339   :  { %v6300_v46 = vpop.f32.mrb[33].mxu0  ;;  %6187 = vmatprep.subr.bf16.mxu1 %v6913_v41 }
 0x33a   :  { %v9083_v6 = vadd.f32 %v6300_v46, %v6299_v59  ;;  %v6302_v57 = vpop.f32.mrb[34].mxu0 }
 0x33b   :  { %v6303_v49 = vpop.f32.mrb[35].mxu0 }
 0x33c   :  { %6188 = vmatpush3.bf16.msra.mxu1 %v6914_v42 }
 0x33d   :  { %6217 = vmatprep.subr.bf16.mxu1 %v6915_v35 }
 0x33f   :  { %5240 = vmatmul.mubr.bf16.vlgmr.msra.gmra.mrb[40].mxu1 %v3581_v62 }
 0x340   :  { %6218 = vmatpush3.bf16.msra.mxu1 %v6916_v10  ;;  %5319 = vmatprep.mubr.bf16.mxu1 %v3586_v61 }
 0x341   :  { %6219 = vmatprep.subr.bf16.mxu1 %v6917_v56 }
 0x344   :  { %6220 = vmatpush3.bf16.msra.mxu1 %v6918_v18 }
 0x345   :  { %6221 = vmatprep.subr.bf16.mxu1 %v6919_v0 }
 0x348   :  { %6222 = vmatpush3.bf16.msra.mxu1 %v6920_v33 }
 0x349   :  { %6223 = vmatprep.subr.bf16.mxu1 %v6921_v13 }
 0x34c   :  { %6224 = vmatpush3.bf16.msra.mxu1 %v6922_v7 }
 0x34d   :  { %6225 = vmatprep.subr.bf16.mxu1 %v6923_v14 }
 0x350   :  { %6226 = vmatpush3.bf16.msra.mxu1 %v6924_v51 }
 0x351   :  { %6227 = vmatprep.subr.bf16.mxu1 %v6925_v17 }
 0x354   :  { %6228 = vmatpush3.bf16.msra.mxu1 %v6926_v21 }
 0x355   :  { %6229 = vmatprep.subr.bf16.mxu1 %v6927_v47 }
 0x358   :  { %6230 = vmatpush3.bf16.msra.mxu1 %v6928_v15 }
 0x359   :  { %6231 = vmatprep.subr.bf16.mxu1 %v6929_v63 }
 0x35c   :  { %6232 = vmatpush3.bf16.msra.mxu1 %v6930_v23 }
 0x35d   :  { %6261 = vmatprep.subr.bf16.mxu1 %v6931_v29 }
 0x35f   :  { %5320 = vmatmul.mubr.bf16.vlgmr.msra.gmra.mrb[44].mxu1 %v3585_v48 }
 0x360   :  { %6262 = vmatpush3.bf16.msra.mxu1 %v6932_v39  ;;  %5399 = vmatprep.mubr.bf16.mxu1 %v3590_v26 }
 0x361   :  { %6263 = vmatprep.subr.bf16.mxu1 %v6933_v58 }
 0x364   :  { %6264 = vmatpush3.bf16.msra.mxu1 %v6934_v20 }
 0x365   :  { %6265 = vmatprep.subr.bf16.mxu1 %v6935_v60 }
 0x368   :  { %6266 = vmatpush3.bf16.msra.mxu1 %v6936_v27 }
 0x369   :  { %6267 = vmatprep.subr.bf16.mxu1 %v6937_v12 }
 0x36c   :  { %6268 = vmatpush3.bf16.msra.mxu1 %v6938_v43 }
 0x36d   :  { %6269 = vmatprep.subr.bf16.mxu1 %v6939_v5 }
 0x370   :  { %6270 = vmatpush3.bf16.msra.mxu1 %v6940_v50 }
 0x371   :  { %6271 = vmatprep.subr.bf16.mxu1 %v6941_v2 }
 0x374   :  { %6272 = vmatpush3.bf16.msra.mxu1 %v6942_v44 }
 0x375   :  { %6273 = vmatprep.subr.bf16.mxu1 %v6943_v31 }
 0x378   :  { %6274 = vmatpush3.bf16.msra.mxu1 %v6944_v55 }
 0x379   :  { %6275 = vmatprep.subr.bf16.mxu1 %v6945_v1 }
 0x37c   :  { %6276 = vmatpush3.bf16.msra.mxu1 %v6946_v4 }
 0x37f   :  { %5400 = vmatmul.mubr.bf16.vlgmr.msra.gmra.mrb[48].mxu1 %v3589_v37 }
 0x3b2   :  { %v6123_v30 = vpop.f32.mrb[28].mxu1 }
 0x3b3   :  { %v6124_v8 = vpop.f32.mrb[29].mxu1 }
 0x3b4   :  { %v6125_v36 = vadd.f32 %v6124_v8, %v6123_v30  ;;  %v6126_v45 = vpop.f32.mrb[30].mxu1 }
 0x3b5   :  { %v6127_v38 = vpop.f32.mrb[31].mxu1 }
 0x3b6   :  { %v4354_v34 = vadd.f32 %v6125_v36, %v9012_v40 }
 0x3d2   :  { %v6145_v41 = vpop.f32.mrb[32].mxu1 }
 0x3d3   :  { %v6146_v3 = vpop.f32.mrb[33].mxu1 }
 0x3d4   :  { %v6147_v11 = vadd.f32 %v6146_v3, %v6145_v41  ;;  %v6148_v59 = vpop.f32.mrb[34].mxu1 }
 0x3d5   :  { %v6149_v42 = vpop.f32.mrb[35].mxu1 }
 0x3d6   :  { %v5162_v25 = vadd.f32 %v6147_v11, %v4354_v34 }
 0x3f2   :  { %v6167_v46 = vpop.f32.mrb[36].mxu1 }
 0x3f3   :  { %v6168_v35 = vpop.f32.mrb[37].mxu1 }
 0x3f4   :  { %v6169_v52 = vadd.f32 %v6168_v35, %v6167_v46  ;;  %v6170_v53 = vpop.f32.mrb[38].mxu1 }
 0x3f5   :  { %v6171_v57 = vpop.f32.mrb[39].mxu1 }
 0x3f6   :  { %v5202_v49 = vadd.f32 %v6169_v52, %v5162_v25 }
 0x412   :  { %v6189_v10 = vpop.f32.mrb[40].mxu1 }
 0x413   :  { %v6190_v62 = vpop.f32.mrb[41].mxu1 }
 0x414   :  { %v6191_v56 = vadd.f32 %v6190_v62, %v6189_v10  ;;  %v6192_v61 = vpop.f32.mrb[42].mxu1 }
 0x415   :  { %v6193_v18 = vpop.f32.mrb[43].mxu1 }
 0x416   :  { %v5242_v0 = vadd.f32 %v6191_v56, %v5202_v49 }
 0x418   :  { %v5282_v40 = vadd.f32 %v8964_v9, %v5242_v0 }
 0x432   :  { %v6233_v33 = vpop.f32.mrb[44].mxu1 }
 0x433   :  { %v6234_v13 = vpop.f32.mrb[45].mxu1 }
 0x434   :  { %v6235_v7 = vadd.f32 %v6234_v13, %v6233_v33  ;;  %v6236_v14 = vpop.f32.mrb[46].mxu1 }
 0x435   :  { %v6237_v51 = vpop.f32.mrb[47].mxu1 }
 0x436   :  { %v5322_v17 = vadd.f32 %v6235_v7, %v5282_v40 }
 0x438   :  { %v5362_v21 = vadd.f32 %v9022_v32, %v5322_v17 }
 0x452   :  { %v6277_v47 = vpop.f32.mrb[48].mxu1 }
 0x453   :  { %v6278_v15 = vpop.f32.mrb[49].mxu1 }
 0x454   :  { %v6279_v54 = vadd.f32 %v6278_v15, %v6277_v47  ;;  %v6280_v63 = vpop.f32.mrb[50].mxu1 }
 0x455   :  { %v6281_v22 = vpop.f32.mrb[51].mxu1 }
 0x456   :  { %v5402_v23 = vadd.f32 %v6279_v54, %v5362_v21 }
 0x458   :  { %v5442_v9 = vadd.f32 %v9083_v6, %v5402_v23 }
 0x45a   :  { %v5454_v29 = vadd.f32 %v6062_v28, %v5442_v9 }
 0x45c   :  { %5455 = vst [vmem:[#allocation3] sm:$0x3] %v5454_v29 }
 0x45d   :  { %6959 = shalt.err (!%p6956_p4)
}
 0x45e   :  { %s6960_s4 = scalar_lea.hbm %s9215_s9, 32 }
 0x45f   :  { %p6961_p5 = scmp.ne.s32.totalorder %s9215_s9, %s6960_s4  ;;  %p6964_p6 = scmp.lt.u32.totalorder %s6960_s4, %s9215_s9 }
 0x461   :  { %p6966_p7 = pnand %p6964_p6, %p6961_p5 }
 0x463   :  { %6969 = shalt.err (!%p6966_p7)
}
 0x464   :  { %5465 = dma.vmem_to_hbm [thread:$0]  %s5463_s13, 32, %s9215_s9, [#allocation4]  }
 0x465   :  { %6970 = dma.done.wait [#allocation4], 32  }
 0x466   :  { %6971 = vsyncadd [#allocation4], 4294967264 }
 0x467   :  { %5469 = vsyncpa [#allocation4], 1 }

</bundles_post_ra>
